<compile_context>
chip_gen: v5e
topology: v5e:2x2
jax: 0.10.0
libtpu: 0.0.40
codegen_flags: <defaults>
</compile_context>

<pallas_src>
import jax
import jax.numpy as jnp
import numpy as np
from jax import lax
from jax.experimental import pallas as pl
from jax.experimental.pallas import tpu as pltpu

EPS = 1e-12          # torch F.normalize / spectral_norm default eps
M_TARGET = 1024      # target per-step matmul rows (TR * W)


def _round_up(x, m):
    return (x + m - 1) // m * m


def _vmem_capacity_bytes():
    """Generation-aware VMEM capacity (v5e/v6e: 128 MiB, v7x: 64 MiB per TC)."""
    try:
        return int(pltpu.get_tpu_info().vmem_capacity_bytes)
    except Exception:
        return 64 * 1024 * 1024   # conservative fallback (v7x per-TensorCore)


def _vmem_bytes(TR, W, C_p, OC_p, KHW):
    """Rough per-step VMEM footprint: double-buffered pipeline blocks + temporaries."""
    x_blk = 2 * (TR + 2) * _round_up(W + 2, 16) * C_p * 2    # bf16 input slab, 2 buffers
    w_blk = 2 * KHW * _round_up(C_p, 16) * OC_p * 2          # resident bf16 weight (2x margin)
    o_blk = 2 * TR * _round_up(W, 8) * OC_p * 4              # f32 output block, 2 buffers
    acc = 2 * _round_up(TR * W, 8) * OC_p * 4                # f32 accumulator + epilogue temp
    patch = 2 * _round_up(TR * W, 16) * C_p * 2              # bf16 patch temporaries
    return x_blk + w_blk + o_blk + acc + patch


def _power_iteration(weight, u):
    """One torch-style power iteration in f32 (plain JAX; not a hot-path kernel)."""
    OC = weight.shape[0]
    W_mat = weight.reshape(OC, -1).astype(jnp.float32)
    hp = lax.Precision.HIGHEST
    v = jnp.dot(W_mat.T, u.astype(jnp.float32), precision=hp)
    v = v / jnp.maximum(jnp.linalg.norm(v), EPS)
    Wv = jnp.dot(W_mat, v, precision=hp)
    u_new = Wv / jnp.maximum(jnp.linalg.norm(Wv), EPS)
    sigma = jnp.dot(u_new, Wv, precision=hp)
    return u_new, v, sigma


def _make_conv_kernel(KH, KW, TR, W, C_p, OC_p):
    def kernel(inv_sigma_ref, x_ref, w_ref, o_ref):
        # inv_sigma_ref : (1, 1) f32 in SMEM (resident scalar)
        # x_ref         : (1, TR + KH - 1, W + KW - 1, C_p) bf16 row slab (halo included)
        # w_ref         : (KH * KW, C_p, OC_p) bf16, VMEM-resident (constant index_map)
        # o_ref         : (1, TR, W, OC_p) f32
        acc = jnp.zeros((TR * W, OC_p), jnp.float32)
        for kh in range(KH):
            for kw in range(KW):
                patch = x_ref[0, kh:kh + TR, kw:kw + W, :].reshape(TR * W, C_p)
                acc = acc + jnp.dot(patch, w_ref[kh * KW + kw],
                                    preferred_element_type=jnp.float32)
        y = acc * inv_sigma_ref[0, 0]
        o_ref[...] = y.reshape(1, TR, W, OC_p).astype(o_ref.dtype)
    return kernel


def spectral_norm_conv2d(x, weight, u):
    """Forward of SNConv2d: spectral_norm(Conv2d(C, OC, 3, 1, 1, bias=False))(x).

    x: (N, C, H, W) f32, weight: (OC, C, KH, KW), u: (OC,) power-iteration buffer.
    Returns (y_nchw, u_new, v_new).
    """
    N, C, H, Wd = x.shape
    OC, _, KH, KW = weight.shape
    pad_h, pad_w = KH // 2, KW // 2
    # TODO(synk): only the module defaults (odd kernel, stride=1, 'same' padding) are
    #             implemented; stride != 1 would need a strided output index_map.

    # ---- power iteration + sigma (f32, plain JAX per review) ----
    u_new, v_new, sigma = _power_iteration(weight, u)
    inv_sigma = (1.0 / sigma).reshape(1, 1).astype(jnp.float32)

    # ---- lane-dense padding + generation-aware tile sizing ----
    C_p = _round_up(C, 128)
    OC_p = _round_up(OC, 128)
    vmem_cap = _vmem_capacity_bytes()
    TR = min(H, max(1, M_TARGET // Wd))
    while TR > 1 and _vmem_bytes(TR, Wd, C_p, OC_p, KH * KW) > vmem_cap // 2:
        TR = max(1, TR // 2)
    RT = pl.cdiv(H, TR)
    H_p = RT * TR
    vmem_limit = int(min(int(vmem_cap * 0.85),
                         max(4 * _vmem_bytes(TR, Wd, C_p, OC_p, KH * KW),
                             32 * 1024 * 1024)))

    # ---- weight: pre-transposed once to (KH*KW, C_p, OC_p), bf16, VMEM-resident ----
    w_taps = jnp.transpose(weight, (2, 3, 1, 0)).reshape(KH * KW, C, OC)
    w_taps = jnp.pad(w_taps, ((0, 0), (0, C_p - C), (0, OC_p - OC))).astype(jnp.bfloat16)

    # ---- input: NHWC bf16 row slabs with 1-row halo (no 9x im2col in HBM) ----
    x_nhwc = jnp.transpose(x, (0, 2, 3, 1)).astype(jnp.bfloat16)          # (N, H, W, C)
    x_padded = jnp.pad(x_nhwc, ((0, 0), (pad_h, pad_h + H_p - H),
                                (pad_w, pad_w), (0, C_p - C)))
    halo = TR + 2 * pad_h
    row_idx = (np.arange(RT, dtype=np.int32)[:, None] * TR
               + np.arange(halo, dtype=np.int32)[None, :])                # (RT, halo)
    x_slab = x_padded[:, row_idx]                          # (N, RT, halo, W+2pw, C_p)
    x_slab = x_slab.reshape(N * RT, halo, Wd + 2 * pad_w, C_p)

    # ---- Pallas conv: KH*KW shifted bf16 matmuls, f32 accumulation, sigma epilogue ----
    kernel = _make_conv_kernel(KH, KW, TR, Wd, C_p, OC_p)
    out = pl.pallas_call(
        kernel,
        grid=(N, RT),
        in_specs=[
            pl.BlockSpec(memory_space=pltpu.MemorySpace.SMEM),             # 1/sigma
            pl.BlockSpec((1, halo, Wd + 2 * pad_w, C_p),
                         lambda n, r: (n * RT + r, 0, 0, 0)),              # input slab
            pl.BlockSpec((KH * KW, C_p, OC_p), lambda n, r: (0, 0, 0)),    # resident W
        ],
        out_specs=pl.BlockSpec((1, TR, Wd, OC_p), lambda n, r: (n, r, 0, 0)),
        out_shape=jax.ShapeDtypeStruct((N, H_p, Wd, OC_p), jnp.float32),
        compiler_params=pltpu.CompilerParams(
            dimension_semantics=("parallel", "parallel"),   # megacore shards (N, row) tiles
            vmem_limit_bytes=vmem_limit),
    )(inv_sigma, x_slab, w_taps)

    y = jnp.transpose(out[:, :H, :, :OC], (0, 3, 1, 2)).astype(x.dtype)
    return y, u_new, v_new


# ---------------------------------------------------------------------------
# Pure-JAX reference matching torch spectral_norm + conv2d(bias=False)
# ---------------------------------------------------------------------------
def reference(x, weight, u):
    _, _, KH, KW = weight.shape
    u_new, v, sigma = _power_iteration(weight, u)
    y = lax.conv_general_dilated(
        x, weight / sigma, window_strides=(1, 1),
        padding=((KH // 2, KH // 2), (KW // 2, KW // 2)),
        dimension_numbers=("NCHW", "OIHW", "NCHW"))
    return y, u_new, v


if __name__ == "__main__":
    key = jax.random.PRNGKey(0)
    kx, kw_, ku = jax.random.split(key, 3)

    N, C, H, W = 2, 4, 16, 16
    OC, KH, KW = 8, 3, 3

    x = jax.random.normal(kx, (N, C, H, W), dtype=jnp.float32)
    weight = jax.random.normal(kw_, (OC, C, KH, KW), dtype=jnp.float32)  # InitWeights: normal_
    u0 = jax.random.normal(ku, (OC,), dtype=jnp.float32)
    u0 = u0 / jnp.maximum(jnp.linalg.norm(u0), EPS)     # torch init: normalized normal

    fwd = jax.jit(spectral_norm_conv2d)
    y, u_new, v_new = fwd(x, weight, u0)
    jax.block_until_ready((y, u_new, v_new))

    y_ref, u_ref, v_ref = reference(x, weight, u0)
    # bf16 MXU operands -> loosened conv tolerance (review note); sigma/u/v path is f32.
    np.testing.assert_allclose(np.asarray(y), np.asarray(y_ref), rtol=1e-2, atol=1e-2)
    np.testing.assert_allclose(np.asarray(u_new), np.asarray(u_ref), rtol=1e-4, atol=1e-5)
    np.testing.assert_allclose(np.asarray(v_new), np.asarray(v_ref), rtol=1e-4, atol=1e-5)

    print("KERNEL_OK")
</pallas_src>

<mosaic_0001>
module attributes {stable_mosaic.version = 11 : i64} {
  func.func @kernel(%arg0: i32, %arg1: i32, %arg2: memref<1x1xf32, #tpu.memory_space<smem>>, %arg3: memref<1x18x18x128xbf16, #tpu.memory_space<vmem>>, %arg4: memref<9x128x128xbf16, #tpu.memory_space<vmem>>, %arg5: memref<1x16x16x128xf32, #tpu.memory_space<vmem>>) attributes {dimension_semantics = [#tpu.dimension_semantics<parallel>, #tpu.dimension_semantics<parallel>], iteration_bounds = array<i64: 2, 1>, scalar_prefetch = 0 : i64, scratch_operands = 0 : i64, tpu.core_type = #tpu.core_type<tc>, window_params = [{transform_indices = @transform_0, window_bounds = array<i64: 1, 1>}, {transform_indices = @transform_1, window_bounds = array<i64: 1, 18, 18, 128>}, {pipeline_mode = #tpu.pipeline_mode<synchronous>, transform_indices = @transform_2, window_bounds = array<i64: 9, 128, 128>}, {transform_indices = @transform_3, window_bounds = array<i64: 1, 16, 16, 128>}]} {
    %cst = arith.constant 0.000000e+00 : f32
    %0 = vector.broadcast %cst : f32 to vector<256x128xf32>
    %c0 = arith.constant 0 : index
    %c0_0 = arith.constant 0 : index
    %c0_1 = arith.constant 0 : index
    %c0_2 = arith.constant 0 : index
    %1 = vector.load %arg3[%c0, %c0_0, %c0_1, %c0_2] : memref<1x18x18x128xbf16, #tpu.memory_space<vmem>>, vector<1x16x16x128xbf16>
    %2 = vector.shape_cast %1 : vector<1x16x16x128xbf16> to vector<16x16x128xbf16>
    %3 = vector.shape_cast %2 : vector<16x16x128xbf16> to vector<256x128xbf16>
    %c0_3 = arith.constant 0 : index
    %c0_4 = arith.constant 0 : index
    %c0_5 = arith.constant 0 : index
    %4 = vector.load %arg4[%c0_3, %c0_4, %c0_5] : memref<9x128x128xbf16, #tpu.memory_space<vmem>>, vector<1x128x128xbf16>
    %5 = vector.shape_cast %4 : vector<1x128x128xbf16> to vector<128x128xbf16>
    %cst_6 = arith.constant dense<0.000000e+00> : vector<256x128xf32>
    %6 = tpu.matmul %3, %5, %cst_6 {dimension_numbers = #tpu.dot_dimension_numbers<[1], [0], [0], [1], [0, 0, 1, 1], [], []>} : vector<256x128xbf16>, vector<128x128xbf16>, vector<256x128xf32> -> vector<256x128xf32>
    %7 = arith.addf %0, %6 : vector<256x128xf32>
    %c0_7 = arith.constant 0 : index
    %c0_8 = arith.constant 0 : index
    %c1 = arith.constant 1 : index
    %c0_9 = arith.constant 0 : index
    %8 = vector.load %arg3[%c0_7, %c0_8, %c1, %c0_9] : memref<1x18x18x128xbf16, #tpu.memory_space<vmem>>, vector<1x16x16x128xbf16>
    %9 = vector.shape_cast %8 : vector<1x16x16x128xbf16> to vector<16x16x128xbf16>
    %10 = vector.shape_cast %9 : vector<16x16x128xbf16> to vector<256x128xbf16>
    %c1_10 = arith.constant 1 : index
    %c0_11 = arith.constant 0 : index
    %c0_12 = arith.constant 0 : index
    %11 = vector.load %arg4[%c1_10, %c0_11, %c0_12] : memref<9x128x128xbf16, #tpu.memory_space<vmem>>, vector<1x128x128xbf16>
    %12 = vector.shape_cast %11 : vector<1x128x128xbf16> to vector<128x128xbf16>
    %cst_13 = arith.constant dense<0.000000e+00> : vector<256x128xf32>
    %13 = tpu.matmul %10, %12, %cst_13 {dimension_numbers = #tpu.dot_dimension_numbers<[1], [0], [0], [1], [0, 0, 1, 1], [], []>} : vector<256x128xbf16>, vector<128x128xbf16>, vector<256x128xf32> -> vector<256x128xf32>
    %14 = arith.addf %7, %13 : vector<256x128xf32>
    %c0_14 = arith.constant 0 : index
    %c0_15 = arith.constant 0 : index
    %c2 = arith.constant 2 : index
    %c0_16 = arith.constant 0 : index
    %15 = vector.load %arg3[%c0_14, %c0_15, %c2, %c0_16] : memref<1x18x18x128xbf16, #tpu.memory_space<vmem>>, vector<1x16x16x128xbf16>
    %16 = vector.shape_cast %15 : vector<1x16x16x128xbf16> to vector<16x16x128xbf16>
    %17 = vector.shape_cast %16 : vector<16x16x128xbf16> to vector<256x128xbf16>
    %c2_17 = arith.constant 2 : index
    %c0_18 = arith.constant 0 : index
    %c0_19 = arith.constant 0 : index
    %18 = vector.load %arg4[%c2_17, %c0_18, %c0_19] : memref<9x128x128xbf16, #tpu.memory_space<vmem>>, vector<1x128x128xbf16>
    %19 = vector.shape_cast %18 : vector<1x128x128xbf16> to vector<128x128xbf16>
    %cst_20 = arith.constant dense<0.000000e+00> : vector<256x128xf32>
    %20 = tpu.matmul %17, %19, %cst_20 {dimension_numbers = #tpu.dot_dimension_numbers<[1], [0], [0], [1], [0, 0, 1, 1], [], []>} : vector<256x128xbf16>, vector<128x128xbf16>, vector<256x128xf32> -> vector<256x128xf32>
    %21 = arith.addf %14, %20 : vector<256x128xf32>
    %c0_21 = arith.constant 0 : index
    %c1_22 = arith.constant 1 : index
    %c0_23 = arith.constant 0 : index
    %c0_24 = arith.constant 0 : index
    %22 = vector.load %arg3[%c0_21, %c1_22, %c0_23, %c0_24] : memref<1x18x18x128xbf16, #tpu.memory_space<vmem>>, vector<1x16x16x128xbf16>
    %23 = vector.shape_cast %22 : vector<1x16x16x128xbf16> to vector<16x16x128xbf16>
    %24 = vector.shape_cast %23 : vector<16x16x128xbf16> to vector<256x128xbf16>
    %c3 = arith.constant 3 : index
    %c0_25 = arith.constant 0 : index
    %c0_26 = arith.constant 0 : index
    %25 = vector.load %arg4[%c3, %c0_25, %c0_26] : memref<9x128x128xbf16, #tpu.memory_space<vmem>>, vector<1x128x128xbf16>
    %26 = vector.shape_cast %25 : vector<1x128x128xbf16> to vector<128x128xbf16>
    %cst_27 = arith.constant dense<0.000000e+00> : vector<256x128xf32>
    %27 = tpu.matmul %24, %26, %cst_27 {dimension_numbers = #tpu.dot_dimension_numbers<[1], [0], [0], [1], [0, 0, 1, 1], [], []>} : vector<256x128xbf16>, vector<128x128xbf16>, vector<256x128xf32> -> vector<256x128xf32>
    %28 = arith.addf %21, %27 : vector<256x128xf32>
    %c0_28 = arith.constant 0 : index
    %c1_29 = arith.constant 1 : index
    %c1_30 = arith.constant 1 : index
    %c0_31 = arith.constant 0 : index
    %29 = vector.load %arg3[%c0_28, %c1_29, %c1_30, %c0_31] : memref<1x18x18x128xbf16, #tpu.memory_space<vmem>>, vector<1x16x16x128xbf16>
    %30 = vector.shape_cast %29 : vector<1x16x16x128xbf16> to vector<16x16x128xbf16>
    %31 = vector.shape_cast %30 : vector<16x16x128xbf16> to vector<256x128xbf16>
    %c4 = arith.constant 4 : index
    %c0_32 = arith.constant 0 : index
    %c0_33 = arith.constant 0 : index
    %32 = vector.load %arg4[%c4, %c0_32, %c0_33] : memref<9x128x128xbf16, #tpu.memory_space<vmem>>, vector<1x128x128xbf16>
    %33 = vector.shape_cast %32 : vector<1x128x128xbf16> to vector<128x128xbf16>
    %cst_34 = arith.constant dense<0.000000e+00> : vector<256x128xf32>
    %34 = tpu.matmul %31, %33, %cst_34 {dimension_numbers = #tpu.dot_dimension_numbers<[1], [0], [0], [1], [0, 0, 1, 1], [], []>} : vector<256x128xbf16>, vector<128x128xbf16>, vector<256x128xf32> -> vector<256x128xf32>
    %35 = arith.addf %28, %34 : vector<256x128xf32>
    %c0_35 = arith.constant 0 : index
    %c1_36 = arith.constant 1 : index
    %c2_37 = arith.constant 2 : index
    %c0_38 = arith.constant 0 : index
    %36 = vector.load %arg3[%c0_35, %c1_36, %c2_37, %c0_38] : memref<1x18x18x128xbf16, #tpu.memory_space<vmem>>, vector<1x16x16x128xbf16>
    %37 = vector.shape_cast %36 : vector<1x16x16x128xbf16> to vector<16x16x128xbf16>
    %38 = vector.shape_cast %37 : vector<16x16x128xbf16> to vector<256x128xbf16>
    %c5 = arith.constant 5 : index
    %c0_39 = arith.constant 0 : index
    %c0_40 = arith.constant 0 : index
    %39 = vector.load %arg4[%c5, %c0_39, %c0_40] : memref<9x128x128xbf16, #tpu.memory_space<vmem>>, vector<1x128x128xbf16>
    %40 = vector.shape_cast %39 : vector<1x128x128xbf16> to vector<128x128xbf16>
    %cst_41 = arith.constant dense<0.000000e+00> : vector<256x128xf32>
    %41 = tpu.matmul %38, %40, %cst_41 {dimension_numbers = #tpu.dot_dimension_numbers<[1], [0], [0], [1], [0, 0, 1, 1], [], []>} : vector<256x128xbf16>, vector<128x128xbf16>, vector<256x128xf32> -> vector<256x128xf32>
    %42 = arith.addf %35, %41 : vector<256x128xf32>
    %c0_42 = arith.constant 0 : index
    %c2_43 = arith.constant 2 : index
    %c0_44 = arith.constant 0 : index
    %c0_45 = arith.constant 0 : index
    %43 = vector.load %arg3[%c0_42, %c2_43, %c0_44, %c0_45] : memref<1x18x18x128xbf16, #tpu.memory_space<vmem>>, vector<1x16x16x128xbf16>
    %44 = vector.shape_cast %43 : vector<1x16x16x128xbf16> to vector<16x16x128xbf16>
    %45 = vector.shape_cast %44 : vector<16x16x128xbf16> to vector<256x128xbf16>
    %c6 = arith.constant 6 : index
    %c0_46 = arith.constant 0 : index
    %c0_47 = arith.constant 0 : index
    %46 = vector.load %arg4[%c6, %c0_46, %c0_47] : memref<9x128x128xbf16, #tpu.memory_space<vmem>>, vector<1x128x128xbf16>
    %47 = vector.shape_cast %46 : vector<1x128x128xbf16> to vector<128x128xbf16>
    %cst_48 = arith.constant dense<0.000000e+00> : vector<256x128xf32>
    %48 = tpu.matmul %45, %47, %cst_48 {dimension_numbers = #tpu.dot_dimension_numbers<[1], [0], [0], [1], [0, 0, 1, 1], [], []>} : vector<256x128xbf16>, vector<128x128xbf16>, vector<256x128xf32> -> vector<256x128xf32>
    %49 = arith.addf %42, %48 : vector<256x128xf32>
    %c0_49 = arith.constant 0 : index
    %c2_50 = arith.constant 2 : index
    %c1_51 = arith.constant 1 : index
    %c0_52 = arith.constant 0 : index
    %50 = vector.load %arg3[%c0_49, %c2_50, %c1_51, %c0_52] : memref<1x18x18x128xbf16, #tpu.memory_space<vmem>>, vector<1x16x16x128xbf16>
    %51 = vector.shape_cast %50 : vector<1x16x16x128xbf16> to vector<16x16x128xbf16>
    %52 = vector.shape_cast %51 : vector<16x16x128xbf16> to vector<256x128xbf16>
    %c7 = arith.constant 7 : index
    %c0_53 = arith.constant 0 : index
    %c0_54 = arith.constant 0 : index
    %53 = vector.load %arg4[%c7, %c0_53, %c0_54] : memref<9x128x128xbf16, #tpu.memory_space<vmem>>, vector<1x128x128xbf16>
    %54 = vector.shape_cast %53 : vector<1x128x128xbf16> to vector<128x128xbf16>
    %cst_55 = arith.constant dense<0.000000e+00> : vector<256x128xf32>
    %55 = tpu.matmul %52, %54, %cst_55 {dimension_numbers = #tpu.dot_dimension_numbers<[1], [0], [0], [1], [0, 0, 1, 1], [], []>} : vector<256x128xbf16>, vector<128x128xbf16>, vector<256x128xf32> -> vector<256x128xf32>
    %56 = arith.addf %49, %55 : vector<256x128xf32>
    %c0_56 = arith.constant 0 : index
    %c2_57 = arith.constant 2 : index
    %c2_58 = arith.constant 2 : index
    %c0_59 = arith.constant 0 : index
    %57 = vector.load %arg3[%c0_56, %c2_57, %c2_58, %c0_59] : memref<1x18x18x128xbf16, #tpu.memory_space<vmem>>, vector<1x16x16x128xbf16>
    %58 = vector.shape_cast %57 : vector<1x16x16x128xbf16> to vector<16x16x128xbf16>
    %59 = vector.shape_cast %58 : vector<16x16x128xbf16> to vector<256x128xbf16>
    %c8 = arith.constant 8 : index
    %c0_60 = arith.constant 0 : index
    %c0_61 = arith.constant 0 : index
    %60 = vector.load %arg4[%c8, %c0_60, %c0_61] : memref<9x128x128xbf16, #tpu.memory_space<vmem>>, vector<1x128x128xbf16>
    %61 = vector.shape_cast %60 : vector<1x128x128xbf16> to vector<128x128xbf16>
    %cst_62 = arith.constant dense<0.000000e+00> : vector<256x128xf32>
    %62 = tpu.matmul %59, %61, %cst_62 {dimension_numbers = #tpu.dot_dimension_numbers<[1], [0], [0], [1], [0, 0, 1, 1], [], []>} : vector<256x128xbf16>, vector<128x128xbf16>, vector<256x128xf32> -> vector<256x128xf32>
    %63 = arith.addf %56, %62 : vector<256x128xf32>
    %c0_63 = arith.constant 0 : index
    %c0_64 = arith.constant 0 : index
    %64 = memref.load %arg2[%c0_63, %c0_64] : memref<1x1xf32, #tpu.memory_space<smem>>
    %65 = vector.broadcast %64 : f32 to vector<256x128xf32>
    %66 = arith.mulf %63, %65 : vector<256x128xf32>
    %67 = vector.shape_cast %66 : vector<256x128xf32> to vector<1x16x16x128xf32>
    %c0_65 = arith.constant 0 : index
    %c0_66 = arith.constant 0 : index
    %c0_67 = arith.constant 0 : index
    %c0_68 = arith.constant 0 : index
    %68 = vector.load %arg5[%c0_65, %c0_66, %c0_67, %c0_68] : memref<1x16x16x128xf32, #tpu.memory_space<vmem>>, vector<1x16x16x128xf32>
    tpu.vector_store %arg5[%c0_65, %c0_66, %c0_67, %c0_68], %67 {strides = array<i32>} : memref<1x16x16x128xf32, #tpu.memory_space<vmem>>, vector<1x16x16x128xf32>,
    return
  }
  func.func @transform_0(%arg0: i32, %arg1: i32) -> (i32, i32) {
    %c0_i32 = arith.constant 0 : i32
    %c0_i32_0 = arith.constant 0 : i32
    %c0_i32_1 = arith.constant 0 : i32
    return %c0_i32, %c0_i32_0 : i32, i32
  }
  func.func @transform_1(%arg0: i32, %arg1: i32) -> (i32, i32, i32, i32) {
    %c1_i32 = arith.constant 1 : i32
    %0 = arith.muli %arg0, %c1_i32 : i32
    %1 = arith.addi %0, %arg1 : i32
    %c0_i32 = arith.constant 0 : i32
    %c0_i32_0 = arith.constant 0 : i32
    %c0_i32_1 = arith.constant 0 : i32
    %c0_i32_2 = arith.constant 0 : i32
    return %1, %c0_i32, %c0_i32_0, %c0_i32_1 : i32, i32, i32, i32
  }
  func.func @transform_2(%arg0: i32, %arg1: i32) -> (i32, i32, i32) {
    %c0_i32 = arith.constant 0 : i32
    %c0_i32_0 = arith.constant 0 : i32
    %c0_i32_1 = arith.constant 0 : i32
    %c0_i32_2 = arith.constant 0 : i32
    return %c0_i32, %c0_i32_0, %c0_i32_1 : i32, i32, i32
  }
  func.func @transform_3(%arg0: i32, %arg1: i32) -> (i32, i32, i32, i32) {
    %c0_i32 = arith.constant 0 : i32
    %c0_i32_0 = arith.constant 0 : i32
    %c0_i32_1 = arith.constant 0 : i32
    return %arg0, %arg1, %c0_i32, %c0_i32_0 : i32, i32, i32, i32
  }
}

</mosaic_0001>

<bundles_post_ra>
// kernel: spectral_norm_conv2d.1
= control target key start
LH: loop header
LB: loop body
LE: loop exit
PB: predicated region body
PF: predicated region fallthrough
CT: control target
= control target key end

     0   :  { %s5646_s14 = smov 0   ;;  %s5648_s15 = smov 0   ;;  %s7126_s0 = inlined_call_operand.<no memory space> [shape: f32[1,1], index: 0, kind: input, shape index: {}]   ;;  %s7127_s1 = inlined_call_operand.vmem [shape: bf16[2,18,18,128], index: 1, kind: input, shape index: {}]   ;;  %s7128_s2 = inlined_call_operand.vmem [shape: bf16[9,128,128], index: 2, kind: input, shape index: {}]   ;;  %s7129_s3 = inlined_call_operand.vmem [shape: f32[2,16,16,128], index: 3, kind: output, shape index: {}]  }
   0x1   :  { %8 = sst [smem:[#allocation2]] %s7126_s0  ;;  %s5650_s16 = smov 0  }
   0x2 LB: > { %s26_s0 = sadd.s32 1, %s5617_s15  ;;  %p4522_p0 = scmp.ge.s32.totalorder %s5621_s16, 1  ;;  %s5621_s16 = sphi %s5650_s16, %s14_s16   ;;  %s5617_s15 = sphi %s5648_s15, %s7139_s15   ;;  %s5613_s14 = sphi %s5646_s14, %s7138_s14  }
   0x3   : > { %p28_p1 = scmp.ge.s32.totalorder %s26_s0, 2  ;;  %p156_p2 = scmp.lt.s32.totalorder %s5621_s16, 3 }
   0x5   : > { %s7141_s0 = smov (%p28_p1, %s26_s0), 0  ;;  %p157_p3 = pnand %p4522_p0, %p156_p2 }
   0x7   : > { %160 = sbr.rel (%p157_p3) target bundleno = 757 (0x2f5), region = 32 }
   0xc   : > { %v5408_v0 = vld [vmem:[%s7128_s2 + $0x78] sm:$0xff]  ;;  %p187_p4 = scmp.lt.s32.totalorder %s5613_s14, 1  ;;  %v5407_v1 = vld [vmem:[%s7128_s2 + $0x70] sm:$0xff]  ;;  %v5406_v2 = vld [vmem:[%s7128_s2 + $0x68] sm:$0xff]  ;;  %vm268_vm0 = vsmask.f32 3328 }
   0xd   : > { %5497 = vmatpush.bf16.msra.mxu1 %v5408_v0  ;;  %5498 = vmatpush.bf16.msra.mxu2 %v5408_v0  ;;  %vm269_vm1 = vsmask.f32 7440  ;;  %v5405_v6 = vld [vmem:[%s7128_s2 + $0x60] sm:$0xff]  ;;  %v5404_v35 = vld [vmem:[%s7128_s2 + $0x58] sm:$0xff]  ;;  %v5403_v54 = vld [vmem:[%s7128_s2 + $0x50] sm:$0xff]  ;;  %vm1154_vm3 = vcmask 1042432  }
   0xe   : > { %s7143_s14 = smov (!%p187_p4, %s5613_s14), 1  ;;  %5499 = vmatpush.bf16.msra.mxu3 %v5408_v0  ;;  %784 = vmatpush.bf16.msra.mxu0 %v5408_v0  ;;  %vm5694_vm2 = vmor %vm268_vm0, %vm269_vm1  ;;  %vm1155_vm4 = vcmask 1046532   ;;  %s6809_s27 = sld [smem:[#allocation2]] }
   0xf   : > { %s5521_s21 = smul.u32 216, %s7143_s14  ;;  %vm5994_vm5 = vmor %vm1154_vm3, %vm1155_vm4  ;;  %s5376_s28 = sshll.u32 %s7143_s14, 8 }
  0x10   : > { %s6842_s30 = scalar_lea.vmem %s7129_s3, %s5376_s28 }
  0x11   : > { %5500 = vmatpush.bf16.msra.mxu1 %v5407_v1  ;;  %5501 = vmatpush.bf16.msra.mxu2 %v5407_v1  ;;  %s5679_s26 = scalar_lea.vmem %s7127_s1, %s5521_s21 }
  0x12   : > { %5502 = vmatpush.bf16.msra.mxu3 %v5407_v1  ;;  %785 = vmatpush.bf16.msra.mxu0 %v5407_v1  ;;  %v212_v3 = vld [vmem:[%s5679_s26 + $0x30] sm:$0xf]  ;;  %v213_v4 = vld [vmem:[%s5679_s26 + $0x34] sm:$0xf]  ;;  %v256_v5 = vld [vmem:[%s5679_s26 + $0x38] sm:$0x1] }
  0x13   : > { %v368_v7 = vshrl.u32 %v212_v3, 16  ;;  %v371_v8 = vshll.u32 %v212_v3, 16  ;;  %v377_v9 = vshll.u32 %v213_v4, 16  ;;  %v381_v10 = vshrl.u32 %v213_v4, 16  ;;  %v220_v11 = vld [vmem:[%s5679_s26 + $0x60] sm:$0xf] }
  0x14   : > { %v387_v12 = vshll.u32 %v256_v5, 16  ;;  %v221_v13 = vld [vmem:[%s5679_s26 + $0x64] sm:$0xf]  ;;  %v260_v14 = vld [vmem:[%s5679_s26 + $0x68] sm:$0x1]  ;;  %v464_v15 = vshrl.u32 %v220_v11, 16 }
  0x15   : > { %5503 = vmatpush.bf16.msra.mxu1 %v5406_v2  ;;  %5504 = vmatpush.bf16.msra.mxu2 %v5406_v2  ;;  %v370_v16 = vrot.slane %v368_v7, 4  ;;  %v373_v17 = vrot.slane %v371_v8, 5  ;;  %v379_v18 = vrot.slane %v377_v9, 5  ;;  %v383_v19 = vrot.slane %v381_v10, 4  ;;  %v228_v20 = vld [vmem:[%s5679_s26 + $0x90] sm:$0xf] }
  0x16   : > { %5505 = vmatpush.bf16.msra.mxu3 %v5406_v2  ;;  %786 = vmatpush.bf16.msra.mxu0 %v5406_v2  ;;  %v389_v21 = vrot.slane %v387_v12, 5  ;;  %v466_v22 = vrot.slane %v464_v15, 4  ;;  %v467_v23 = vshll.u32 %v220_v11, 16  ;;  %v473_v24 = vshll.u32 %v221_v13, 16  ;;  %v229_v29 = vld [vmem:[%s5679_s26 + $0x94] sm:$0xf] }
  0x17   : > { %v374_v25 = vor.u32 %v373_v17, %v370_v16  ;;  %v384_v26 = vor.u32 %v383_v19, %v379_v18  ;;  %v477_v27 = vshrl.u32 %v221_v13, 16  ;;  %v483_v28 = vshll.u32 %v260_v14, 16  ;;  %v264_v41 = vld [vmem:[%s5679_s26 + $0x98] sm:$0x1]  ;;  %v204_v49 = vld [vmem:[%s5679_s26] sm:$0xf] }
  0x18   : > { %v469_v31 = vrot.slane %v467_v23, 5  ;;  %v475_v32 = vrot.slane %v473_v24, 5  ;;  %v560_v33 = vshrl.u32 %v228_v20, 16  ;;  %v563_v34 = vshll.u32 %v228_v20, 16  ;;  %v5719_v62 = vld [vmem:[%s5679_s26 + $0x4] sm:$0xf] }
  0x19   : > { %5506 = vmatpush.bf16.msra.mxu1 %v5405_v6  ;;  %5507 = vmatpush.bf16.msra.mxu2 %v5405_v6  ;;  %v375_v36 = vrot.slane %v374_v25, 4  ;;  %v385_v37 = vrot.slane %v384_v26, 4  ;;  %v479_v38 = vrot.slane %v477_v27, 4  ;;  %v485_v39 = vrot.slane %v483_v28, 5  ;;  %v5726_v4 = vld [vmem:[%s5679_s26 + $0x8] sm:$0x1] }
  0x1a   : > { %5508 = vmatpush.bf16.msra.mxu3 %v5405_v6  ;;  %787 = vmatpush.bf16.msra.mxu0 %v5405_v6  ;;  %v470_v40 = vor.u32 %v469_v31, %v466_v22  ;;  %v562_v42 = vrot.slane %v560_v33, 4  ;;  %v565_v43 = vrot.slane %v563_v34, 5  ;;  %v569_v44 = vshll.u32 %v229_v29, 16  ;;  %v214_v5 = vld [vmem:[%s5679_s26 + $0x3c] sm:$0xf]  ;;  %v5402_v10 = vld [vmem:[%s7128_s2 + $0x48] sm:$0xff] }
  0x1b   : > { %v380_v45 = vsel %vm5694_vm2, %v375_v36, %v379_v18  ;;  %v390_v46 = vsel %vm5694_vm2, %v385_v37, %v389_v21  ;;  %v480_v47 = vor.u32 %v479_v38, %v475_v32  ;;  %v573_v48 = vshrl.u32 %v229_v29, 16  ;;  %v215_v15 = vld [vmem:[%s5679_s26 + $0x40] sm:$0xf]  ;;  %v257_v19 = vld [vmem:[%s5679_s26 + $0x44] sm:$0x1]  ;;  %v5416_v37 = vld [vmem:[%s7128_s2 + $0xb8] sm:$0xff] }
  0x1c   : > { %v5707_v50 = vunpack.c.l.b16 %v380_v45  ;;  %v5709_v51 = vunpack.c.l.b16 %v390_v46  ;;  %v471_v52 = vrot.slane %v470_v40, 4  ;;  %v566_v53 = vor.u32 %v565_v43, %v562_v42  ;;  %v222_v25 = vld [vmem:[%s5679_s26 + $0x6c] sm:$0xf]  ;;  %v5401_v31 = vld [vmem:[%s7128_s2 + $0x40] sm:$0xff]  ;;  %v223_v40 = vld [vmem:[%s5679_s26 + $0x70] sm:$0xf] }
  0x1d   : > { %5509 = vmatpush.bf16.msra.mxu1 %v5404_v35  ;;  %5510 = vmatpush.bf16.msra.mxu2 %v5404_v35  ;;  %v481_v55 = vrot.slane %v480_v47, 4  ;;  %v571_v56 = vrot.slane %v569_v44, 5  ;;  %v575_v57 = vrot.slane %v573_v48, 4  ;;  %v579_v58 = vshll.u32 %v264_v41, 16  ;;  %v5440_v43 = vld [vmem:[%s7128_s2 + $0xf8] sm:$0xff] }
  0x1e   : > { %5511 = vmatpush.bf16.msra.mxu3 %v5404_v35  ;;  %788 = vmatpush.bf16.msra.mxu0 %v5404_v35  ;;  %v708_v59 = vpack.c.b16 %v5709_v51, %v5707_v50  ;;  %v476_v60 = vsel %vm5694_vm2, %v471_v52, %v475_v32  ;;  %v567_v61 = vrot.slane %v566_v53, 4  ;;  %v272_v63 = vshrl.u32 %v204_v49, 16  ;;  %v261_v47 = vld [vmem:[%s5679_s26 + $0x74] sm:$0x1] }
  0x1f   : > { %v486_v0 = vsel %vm5694_vm2, %v481_v55, %v485_v39  ;;  %v5723_v1 = vunpack.c.l.b16 %v476_v60  ;;  %v576_v2 = vor.u32 %v575_v57, %v571_v56  ;;  %v581_v3 = vrot.slane %v579_v58, 5  ;;  %v5400_v57 = vld [vmem:[%s7128_s2 + $0x38] sm:$0xff] }
  0x20   : > { %v5729_v6 = vunpack.c.l.b16 %v486_v0  ;;  %v572_v7 = vsel %vm5694_vm2, %v567_v61, %v571_v56  ;;  %v274_v8 = vrot.slane %v272_v63, 4  ;;  %v275_v9 = vshll.u32 %v204_v49, 16  ;;  %v5415_v63 = vld [vmem:[%s7128_s2 + $0xb0] sm:$0xff] }
  0x21   : > { %5512 = vmatpush.bf16.msra.mxu1 %v5403_v54  ;;  %5513 = vmatpush.bf16.msra.mxu2 %v5403_v54  ;;  %v577_v11 = vrot.slane %v576_v2, 4  ;;  %v5736_v12 = vunpack.c.l.b16 %v572_v7  ;;  %v281_v13 = vshll.u32 %v5719_v62, 16  ;;  %v285_v14 = vshrl.u32 %v5719_v62, 16 }
  0x22   : > { %5514 = vmatpush.bf16.msra.mxu3 %v5403_v54  ;;  %789 = vmatpush.bf16.msra.mxu0 %v5403_v54  ;;  %v712_v16 = vpack.c.b16 %v5729_v6, %v5723_v1  ;;  %v277_v17 = vrot.slane %v275_v9, 5  ;;  %v291_v18 = vshll.u32 %v5726_v4, 16  ;;  %v392_v20 = vshrl.u32 %v214_v5, 16  ;;  %v230_v54 = vld [vmem:[%s5679_s26 + $0x9c] sm:$0xf] }
  0x23   : > { %v582_v21 = vsel %vm5694_vm2, %v577_v11, %v581_v3  ;;  %v283_v22 = vrot.slane %v281_v13, 5  ;;  %v287_v23 = vrot.slane %v285_v14, 4  ;;  %v395_v24 = vshll.u32 %v214_v5, 16  ;;  %v5439_v3 = vld [vmem:[%s7128_s2 + $0xf0] sm:$0xff]  ;;  %v5448_v11 = vld [vmem:[%s7128_s2 + $0x138] sm:$0xff] }
  0x24   : > { %v697_v26 = vunpack.c.l.b16 %v582_v21  ;;  %v278_v27 = vor.u32 %v277_v17, %v274_v8  ;;  %v293_v28 = vrot.slane %v291_v18, 5  ;;  %v394_v29 = vrot.slane %v392_v20, 4  ;;  %v231_v8 = vld [vmem:[%s5679_s26 + $0xa0] sm:$0xf]  ;;  %v206_v17 = vld [vmem:[%s5679_s26 + $0xc] sm:$0xf] }
  0x25   : > { %5515 = vmatpush.bf16.msra.mxu1 %v5402_v10  ;;  %5516 = vmatpush.bf16.msra.mxu2 %v5402_v10  ;;  %v288_v32 = vor.u32 %v287_v23, %v283_v22  ;;  %v397_v33 = vrot.slane %v395_v24, 5  ;;  %v401_v34 = vshll.u32 %v215_v15, 16  ;;  %v405_v35 = vshrl.u32 %v215_v15, 16  ;;  %v265_v15 = vld [vmem:[%s5679_s26 + $0xa4] sm:$0x1]  ;;  %v5399_v18 = vld [vmem:[%s7128_s2 + $0x30] sm:$0xff] }
  0x26   : > { %5517 = vmatpush.bf16.msra.mxu3 %v5402_v10  ;;  %790 = vmatpush.bf16.msra.mxu0 %v5402_v10  ;;  %v716_v36 = vpack.c.b16 %v697_v26, %v5736_v12  ;;  %v279_v38 = vrot.slane %v278_v27, 4  ;;  %v411_v39 = vshll.u32 %v257_v19, 16  ;;  %v488_v41 = vshrl.u32 %v222_v25, 16  ;;  %v5414_v23 = vld [vmem:[%s7128_s2 + $0xa8] sm:$0xff]  ;;  %v5798_v27 = vld [vmem:[%s5679_s26 + $0x10] sm:$0xf] }
  0x27   : > { %v289_v42 = vrot.slane %v288_v32, 4  ;;  %v398_v44 = vor.u32 %v397_v33, %v394_v29  ;;  %v403_v45 = vrot.slane %v401_v34, 5  ;;  %v407_v46 = vrot.slane %v405_v35, 4  ;;  %v5438_v29 = vld [vmem:[%s7128_s2 + $0xe8] sm:$0xff]  ;;  %v5808_v35 = vld [vmem:[%s5679_s26 + $0x14] sm:$0x1] }
  0x28   : > { %v284_v48 = vsel %vm5694_vm2, %v279_v38, %v283_v22  ;;  %v413_v49 = vrot.slane %v411_v39, 5  ;;  %v490_v52 = vrot.slane %v488_v41, 4  ;;  %v491_v53 = vshll.u32 %v222_v25, 16  ;;  %v5398_v41 = vld [vmem:[%s7128_s2 + $0x28] sm:$0xff] }
  0x29   : > { %5518 = vmatpush.bf16.msra.mxu1 %v5401_v31  ;;  %5519 = vmatpush.bf16.msra.mxu2 %v5401_v31  ;;  %v294_v55 = vsel %vm5694_vm2, %v289_v42, %v293_v28  ;;  %v672_v56 = vunpack.c.l.b16 %v284_v48  ;;  %v399_v58 = vrot.slane %v398_v44, 4  ;;  %v408_v60 = vor.u32 %v407_v46, %v403_v45  ;;  %v216_v46 = vld [vmem:[%s5679_s26 + $0x48] sm:$0xf] }
  0x2a   : > { %5520 = vmatpush.bf16.msra.mxu3 %v5401_v31  ;;  %791 = vmatpush.bf16.msra.mxu0 %v5401_v31  ;;  %v673_v61 = vunpack.c.l.b16 %v294_v55  ;;  %v493_v0 = vrot.slane %v491_v53, 5  ;;  %v497_v1 = vshll.u32 %v223_v40, 16  ;;  %v501_v2 = vshrl.u32 %v223_v40, 16  ;;  %v5413_v53 = vld [vmem:[%s7128_s2 + $0xa0] sm:$0xff] }
  0x2b   : > { %v404_v5 = vsel %vm5694_vm2, %v399_v58, %v403_v45  ;;  %v409_v6 = vrot.slane %v408_v60, 4  ;;  %v507_v7 = vshll.u32 %v261_v47, 16  ;;  %v584_v9 = vshrl.u32 %v230_v54, 16  ;;  %v5446_v60 = vld [vmem:[%s7128_s2 + $0x128] sm:$0xff] }
  0x2c   : > { %812 = vmatmul.bf16.vlgmr.msra.gmra.mxu1 %v708_v59  ;;  %832 = vmatmul.bf16.vlgmr.msra.gmra.mxu2 %v712_v16  ;;  %v704_v10 = vpack.c.b16 %v673_v61, %v672_v56  ;;  %v5783_v12 = vunpack.c.l.b16 %v404_v5  ;;  %v494_v13 = vor.u32 %v493_v0, %v490_v52  ;;  %v499_v14 = vrot.slane %v497_v1, 5  ;;  %v5397_v61 = vld [vmem:[%s7128_s2 + $0x20] sm:$0xff] }
  0x2d   : > { %1398 = vmatpush.bf16.msrb.mxu2 %v5416_v37  ;;  %852 = vmatmul.bf16.vlgmr.msra.gmra.mxu3 %v716_v36  ;;  %v414_v50 = vsel %vm5694_vm2, %v409_v6, %v413_v49  ;;  %v503_v51 = vrot.slane %v501_v2, 4  ;;  %v509_v59 = vrot.slane %v507_v7, 5  ;;  %v586_v16 = vrot.slane %v584_v9, 4  ;;  %v5447_v36 = vld [vmem:[%s7128_s2 + $0x130] sm:$0xff]  ;;  %v5837_v2 = vld [vmem:[%s5679_s26 + $0x4c] sm:$0xf] }
  0x2e   : > { %1713 = vmatpush.bf16.msrb.mxu3 %v5440_v43  ;;  %1017 = vmatpush.bf16.msrb.mxu1 %v5400_v57  ;;  %v5792_v19 = vunpack.c.l.b16 %v414_v50  ;;  %v495_v20 = vrot.slane %v494_v13, 4  ;;  %v587_v21 = vshll.u32 %v230_v54, 16  ;;  %v593_v22 = vshll.u32 %v231_v8, 16  ;;  %v5437_v54 = vld [vmem:[%s7128_s2 + $0xe0] sm:$0xff] }
  0x2f   : > { %792 = vmatmul.bf16.vlgmr.msra.gmra.mxu0 %v704_v10  ;;  %v504_v24 = vor.u32 %v503_v51, %v499_v14  ;;  %v597_v25 = vshrl.u32 %v231_v8, 16  ;;  %v603_v26 = vshll.u32 %v265_v15, 16  ;;  %v296_v28 = vshrl.u32 %v206_v17, 16  ;;  %v258_v8 = vld [vmem:[%s5679_s26 + $0x50] sm:$0x1] }
  0x30   : > { %2395 = vmatpush.bf16.msrb.mxu0 %v5448_v11  ;;  %v709_v31 = vpack.c.b16 %v5792_v19, %v5783_v12  ;;  %v500_v32 = vsel %vm5694_vm2, %v495_v20, %v499_v14  ;;  %v589_v33 = vrot.slane %v587_v21, 5  ;;  %v595_v34 = vrot.slane %v593_v22, 5  ;;  %v224_v10 = vld [vmem:[%s5679_s26 + $0x78] sm:$0xf] }
  0x31   : > { %1399 = vmatpush.bf16.msrb.mxu2 %v5415_v63  ;;  %v505_v37 = vrot.slane %v504_v24, 4  ;;  %v5813_v38 = vunpack.c.l.b16 %v500_v32  ;;  %v599_v39 = vrot.slane %v597_v25, 4  ;;  %v605_v40 = vrot.slane %v603_v26, 5  ;;  %v5445_v24 = vld [vmem:[%s7128_s2 + $0x120] sm:$0xff]  ;;  %v225_v32 = vld [vmem:[%s5679_s26 + $0x7c] sm:$0xf] }
  0x32   : > { %1714 = vmatpush.bf16.msrb.mxu3 %v5439_v3  ;;  %1018 = vmatpush.bf16.msrb.mxu1 %v5399_v18  ;;  %v590_v42 = vor.u32 %v589_v33, %v586_v16  ;;  %v298_v43 = vrot.slane %v296_v28, 4  ;;  %v299_v44 = vshll.u32 %v206_v17, 16  ;;  %v305_v45 = vshll.u32 %v5798_v27, 16  ;;  %v5412_v17 = vld [vmem:[%s7128_s2 + $0x98] sm:$0xff]  ;;  %v262_v33 = vld [vmem:[%s5679_s26 + $0x80] sm:$0x1] }
  0x33   : > { %v510_v47 = vsel %vm5694_vm2, %v505_v37, %v509_v59  ;;  %v600_v48 = vor.u32 %v599_v39, %v595_v34  ;;  %v309_v49 = vshrl.u32 %v5798_v27, 16  ;;  %v315_v52 = vshll.u32 %v5808_v35, 16  ;;  %v5436_v18 = vld [vmem:[%s7128_s2 + $0xd8] sm:$0xff] }
  0x34   : > { %v691_v55 = vunpack.c.l.b16 %v510_v47  ;;  %v591_v56 = vrot.slane %v590_v42, 4  ;;  %v301_v57 = vrot.slane %v299_v44, 5  ;;  %v307_v58 = vrot.slane %v305_v45, 5  ;;  %2396 = vmatpush.bf16.msrb.mxu0 %v5447_v36  ;;  %v5435_v42 = vld [vmem:[%s7128_s2 + $0xd0] sm:$0xff] }
  0x35   : > { %1400 = vmatpush.bf16.msrb.mxu2 %v5414_v23  ;;  %v601_v63 = vrot.slane %v600_v48, 4  ;;  %v311_v0 = vrot.slane %v309_v49, 4  ;;  %v317_v1 = vrot.slane %v315_v52, 5  ;;  %v416_v3 = vshrl.u32 %v216_v46, 16 }
  0x36   : > { %1715 = vmatpush.bf16.msrb.mxu3 %v5438_v29  ;;  %1019 = vmatpush.bf16.msrb.mxu1 %v5398_v41  ;;  %v713_v5 = vpack.c.b16 %v691_v55, %v5813_v38  ;;  %v596_v6 = vsel %vm5694_vm2, %v591_v56, %v595_v34  ;;  %v302_v7 = vor.u32 %v301_v57, %v298_v43  ;;  %v419_v9 = vshll.u32 %v216_v46, 16  ;;  %v5396_v34 = vld [vmem:[%s7128_s2 + $0x18] sm:$0xff]  ;;  %v5411_v41 = vld [vmem:[%s7128_s2 + $0x90] sm:$0xff] }
  0x37   : > { %v606_v11 = vsel %vm5694_vm2, %v601_v63, %v605_v40  ;;  %v698_v13 = vunpack.c.l.b16 %v596_v6  ;;  %v312_v14 = vor.u32 %v311_v0, %v307_v58  ;;  %v418_v15 = vrot.slane %v416_v3, 4  ;;  %v232_v40 = vld [vmem:[%s5679_s26 + $0xa8] sm:$0xf]  ;;  %v5395_v56 = vld [vmem:[%s7128_s2 + $0x10] sm:$0xff]  ;;  %v208_v6 = vld [vmem:[%s5679_s26 + $0x18] sm:$0xf] }
  0x38   : > { %v699_v50 = vunpack.c.l.b16 %v606_v11  ;;  %v303_v51 = vrot.slane %v302_v7, 4  ;;  %2397 = vmatpush.bf16.msrb.mxu0 %v5446_v60  ;;  %v421_v59 = vrot.slane %v419_v9, 5  ;;  %v425_v16 = vshll.u32 %v5837_v2, 16  ;;  %v266_v63 = vld [vmem:[%s5679_s26 + $0xb0] sm:$0x1] }
  0x39   : > { %1401 = vmatpush.bf16.msrb.mxu2 %v5413_v53  ;;  %v313_v20 = vrot.slane %v312_v14, 4  ;;  %v429_v21 = vshrl.u32 %v5837_v2, 16  ;;  %v435_v22 = vshll.u32 %v258_v8, 16  ;;  %v512_v23 = vshrl.u32 %v224_v10, 16  ;;  %v5444_v53 = vld [vmem:[%s7128_s2 + $0x118] sm:$0xff] }
  0x3a   : > { %1716 = vmatpush.bf16.msrb.mxu3 %v5437_v54  ;;  %1020 = vmatpush.bf16.msrb.mxu1 %v5397_v61  ;;  %v717_v25 = vpack.c.b16 %v699_v50, %v698_v13  ;;  %v308_v26 = vsel %vm5694_vm2, %v303_v51, %v307_v58  ;;  %v422_v28 = vor.u32 %v421_v59, %v418_v15  ;;  %v427_v29 = vrot.slane %v425_v16, 5  ;;  %v5895_v59 = vld [vmem:[%s5679_s26 + $0x1c] sm:$0xf] }
  0x3b   : > { %v318_v36 = vsel %vm5694_vm2, %v313_v20, %v317_v1  ;;  %v674_v37 = vunpack.c.l.b16 %v308_v26  ;;  %v431_v38 = vrot.slane %v429_v21, 4  ;;  %v437_v39 = vrot.slane %v435_v22, 5 }
  0x3c   : > { %817 = vmatmul.bf16.gmra.mxu1 %v709_v31  ;;  %837 = vmatmul.bf16.gmra.mxu2 %v713_v5  ;;  %v675_v43 = vunpack.c.l.b16 %v318_v36  ;;  %v423_v44 = vrot.slane %v422_v28, 4  ;;  %v514_v45 = vrot.slane %v512_v23, 4  ;;  %v515_v46 = vshll.u32 %v224_v10, 16  ;;  %v233_v31 = vld [vmem:[%s5679_s26 + $0xac] sm:$0xf] }
  0x3d   : > { %1402 = vmatpush.bf16.msrb.mxu2 %v5412_v17  ;;  %857 = vmatmul.bf16.gmra.mxu3 %v717_v25  ;;  %v432_v47 = vor.u32 %v431_v38, %v427_v29  ;;  %v521_v48 = vshll.u32 %v225_v32, 16  ;;  %v525_v49 = vshrl.u32 %v225_v32, 16  ;;  %v531_v52 = vshll.u32 %v262_v33, 16  ;;  %v5410_v17 = vld [vmem:[%s7128_s2 + $0x88] sm:$0xff]  ;;  %v218_v25 = vld [vmem:[%s5679_s26 + $0x54] sm:$0xf] }
  0x3e   : > { %1717 = vmatpush.bf16.msrb.mxu3 %v5436_v18  ;;  %2398 = vmatpush.bf16.msrb.mxu0 %v5445_v24  ;;  %v705_v54 = vpack.c.b16 %v675_v43, %v674_v37  ;;  %v428_v12 = vsel %vm5694_vm2, %v423_v44, %v427_v29  ;;  %v517_v19 = vrot.slane %v515_v46, 5  ;;  %v608_v55 = vshrl.u32 %v232_v40, 16  ;;  %v5901_v24 = vld [vmem:[%s5679_s26 + $0x20] sm:$0x1]  ;;  %v5434_v38 = vld [vmem:[%s7128_s2 + $0xc8] sm:$0xff] }
  0x3f   : > { %1021 = vmatpush.bf16.msrb.mxu1 %v5396_v34  ;;  %v433_v57 = vrot.slane %v432_v47, 4  ;;  %v5885_v58 = vunpack.c.l.b16 %v428_v12  ;;  %v523_v60 = vrot.slane %v521_v48, 5  ;;  %v527_v61 = vrot.slane %v525_v49, 4 }
  0x40   : > { %797 = vmatmul.bf16.gmra.mxu0 %v705_v54  ;;  %v518_v0 = vor.u32 %v517_v19, %v514_v45  ;;  %v533_v1 = vrot.slane %v531_v52, 5  ;;  %v610_v3 = vrot.slane %v608_v55, 4  ;;  %v611_v5 = vshll.u32 %v232_v40, 16  ;;  %v5394_v40 = vld [vmem:[%s7128_s2 + $0x8] sm:$0xff]  ;;  %v5409_v45 = vld [vmem:[%s7128_s2 + $0x80] sm:$0xff] }
  0x41   : > { %1403 = vmatpush.bf16.msrb.mxu2 %v5411_v41  ;;  %v438_v7 = vsel %vm5694_vm2, %v433_v57, %v437_v39  ;;  %v528_v8 = vor.u32 %v527_v61, %v523_v60  ;;  %v617_v9 = vshll.u32 %v233_v31, 16  ;;  %v621_v10 = vshrl.u32 %v233_v31, 16  ;;  %v5443_v39 = vld [vmem:[%s7128_s2 + $0x110] sm:$0xff]  ;;  %v5924_v52 = vld [vmem:[%s5679_s26 + $0x58] sm:$0xf]  ;;  %v5442_v57 = vld [vmem:[%s7128_s2 + $0x108] sm:$0xff] }
  0x42   : > { %1718 = vmatpush.bf16.msrb.mxu3 %v5435_v42  ;;  %2399 = vmatpush.bf16.msrb.mxu0 %v5444_v53  ;;  %v685_v11 = vunpack.c.l.b16 %v438_v7  ;;  %v519_v13 = vrot.slane %v518_v0, 4  ;;  %v613_v14 = vrot.slane %v611_v5, 5  ;;  %v627_v15 = vshll.u32 %v266_v63, 16  ;;  %v5927_v53 = vld [vmem:[%s5679_s26 + $0x5c] sm:$0x1]  ;;  %v5393_v0 = vld [vmem:[%s7128_s2] sm:$0xff] }
  0x43   : > { %1022 = vmatpush.bf16.msrb.mxu1 %v5395_v56  ;;  %v529_v18 = vrot.slane %v528_v8, 4  ;;  %v619_v50 = vrot.slane %v617_v9, 5  ;;  %v623_v51 = vrot.slane %v621_v10, 4  ;;  %v320_v16 = vshrl.u32 %v208_v6, 16  ;;  %v226_v55 = vld [vmem:[%s5679_s26 + $0x84] sm:$0xf] }
  0x44   : > { %v710_v20 = vpack.c.b16 %v685_v11, %v5885_v58  ;;  %v524_v21 = vsel %vm5694_vm2, %v519_v13, %v523_v60  ;;  %v614_v22 = vor.u32 %v613_v14, %v610_v3  ;;  %v629_v23 = vrot.slane %v627_v15, 5  ;;  %v5433_v56 = vld [vmem:[%s7128_s2 + $0xc0] sm:$0xff]  ;;  %v227_v10 = vld [vmem:[%s5679_s26 + $0x88] sm:$0xf] }
  0x45   : > { %1404 = vmatpush.bf16.msrb.mxu2 %v5410_v17  ;;  %v534_v26 = vsel %vm5694_vm2, %v529_v18, %v533_v1  ;;  %v692_v28 = vunpack.c.l.b16 %v524_v21  ;;  %v624_v29 = vor.u32 %v623_v51, %v619_v50  ;;  %v322_v32 = vrot.slane %v320_v16, 4  ;;  %v5441_v18 = vld [vmem:[%s7128_s2 + $0x100] sm:$0xff]  ;;  %v263_v16 = vld [vmem:[%s5679_s26 + $0x8c] sm:$0x1] }
  0x46   : > { %v693_v33 = vunpack.c.l.b16 %v534_v26  ;;  %v615_v34 = vrot.slane %v614_v22, 4  ;;  %v323_v36 = vshll.u32 %v208_v6, 16  ;;  %v329_v37 = vshll.u32 %v5895_v59, 16  ;;  %1719 = vmatpush.bf16.msrb.mxu3 %v5434_v38  ;;  %2400 = vmatpush.bf16.msrb.mxu0 %v5443_v39  ;;  %v234_v22 = vld [vmem:[%s5679_s26 + $0xb4] sm:$0xf] }
  0x47   : > { %v625_v41 = vrot.slane %v624_v29, 4  ;;  %v333_v42 = vshrl.u32 %v5895_v59, 16  ;;  %v339_v43 = vshll.u32 %v5901_v24, 16  ;;  %v440_v44 = vshrl.u32 %v218_v25, 16  ;;  %1023 = vmatpush.bf16.msrb.mxu1 %v5394_v40  ;;  %v235_v39 = vld [vmem:[%s5679_s26 + $0xb8] sm:$0xf] }
  0x48   : > { %v714_v46 = vpack.c.b16 %v693_v33, %v692_v28  ;;  %v620_v47 = vsel %vm5694_vm2, %v615_v34, %v619_v50  ;;  %v325_v48 = vrot.slane %v323_v36, 5  ;;  %v331_v49 = vrot.slane %v329_v37, 5 }
  0x49   : > { %v630_v54 = vsel %vm5694_vm2, %v625_v41, %v629_v23  ;;  %v700_v12 = vunpack.c.l.b16 %v620_v47  ;;  %v335_v19 = vrot.slane %v333_v42, 4  ;;  %v341_v31 = vrot.slane %v339_v43, 5  ;;  %1405 = vmatpush.bf16.msrb.mxu2 %v5409_v45  ;;  %v267_v45 = vld [vmem:[%s5679_s26 + $0xbc] sm:$0x1] }
  0x4a   : > { %v701_v58 = vunpack.c.l.b16 %v630_v54  ;;  %v326_v60 = vor.u32 %v325_v48, %v322_v32  ;;  %v442_v61 = vrot.slane %v440_v44, 4  ;;  %v443_v63 = vshll.u32 %v218_v25, 16  ;;  %1720 = vmatpush.bf16.msrb.mxu3 %v5433_v56  ;;  %2401 = vmatpush.bf16.msrb.mxu0 %v5442_v57  ;;  %v5480_v47 = vld [vmem:[%s7128_s2 + $0x1b8] sm:$0xff] }
  0x4b   : > { %v336_v1 = vor.u32 %v335_v19, %v331_v49  ;;  %v449_v3 = vshll.u32 %v5924_v52, 16  ;;  %v453_v5 = vshrl.u32 %v5924_v52, 16  ;;  %v459_v6 = vshll.u32 %v5927_v53, 16  ;;  %1024 = vmatpush.bf16.msrb.mxu1 %v5393_v0 }
  0x4c   : > { %822 = vmatmul.bf16.gmra.mxu1 %v710_v20  ;;  %842 = vmatmul.bf16.gmra.mxu2 %v714_v46  ;;  %v718_v7 = vpack.c.b16 %v701_v58, %v700_v12  ;;  %v327_v8 = vrot.slane %v326_v60, 4  ;;  %v445_v9 = vrot.slane %v443_v63, 5  ;;  %v536_v11 = vshrl.u32 %v226_v55, 16  ;;  %v210_v46 = vld [vmem:[%s5679_s26 + $0x24] sm:$0xf] }
  0x4d   : > { %v337_v13 = vrot.slane %v336_v1, 4  ;;  %v451_v14 = vrot.slane %v449_v3, 5  ;;  %v455_v15 = vrot.slane %v453_v5, 4  ;;  %v461_v17 = vrot.slane %v459_v6, 5  ;;  %3136 = vmatpush.bf16.msra.mxu2 %v5480_v47  ;;  %v5488_v6 = vld [vmem:[%s7128_s2 + $0x1f8] sm:$0xff] }
  0x4e   : > { %862 = vmatmul.bf16.gmra.mxu3 %v718_v7  ;;  %v332_v50 = vsel %vm5694_vm2, %v327_v8, %v331_v49  ;;  %v446_v51 = vor.u32 %v445_v9, %v442_v61  ;;  %v538_v20 = vrot.slane %v536_v11, 4  ;;  %v539_v21 = vshll.u32 %v226_v55, 16  ;;  %2402 = vmatpush.bf16.msrb.mxu0 %v5441_v18  ;;  %v5965_v61 = vld [vmem:[%s5679_s26 + $0x28] sm:$0xf]  ;;  %v5456_v7 = vld [vmem:[%s7128_s2 + $0x178] sm:$0xff] }
  0x4f   : > { %v342_v23 = vsel %vm5694_vm2, %v337_v13, %v341_v31  ;;  %v676_v25 = vunpack.c.l.b16 %v332_v50  ;;  %v456_v26 = vor.u32 %v455_v15, %v451_v14  ;;  %v545_v28 = vshll.u32 %v227_v10, 16  ;;  %v5496_v8 = vld [vmem:[%s7128_s2 + $0x238] sm:$0xff]  ;;  %3818 = vmatpush.bf16.msra.mxu3 %v5488_v6  ;;  %2821 = vmatpush.bf16.msra.mxu1 %v5456_v7 }
  0x50   : > { %v677_v29 = vunpack.c.l.b16 %v342_v23  ;;  %v447_v32 = vrot.slane %v446_v51, 4  ;;  %v541_v33 = vrot.slane %v539_v21, 5  ;;  %v549_v34 = vshrl.u32 %v227_v10, 16 }
  0x51   : > { %v457_v36 = vrot.slane %v456_v26, 4  ;;  %v547_v37 = vrot.slane %v545_v28, 5  ;;  %v555_v38 = vshll.u32 %v263_v16, 16  ;;  %v632_v40 = vshrl.u32 %v234_v22, 16  ;;  %v1106_v26 = vld [vmem:[%s5679_s26] sm:$0xe] }
  0x52   : > { %v706_v41 = vpack.c.b16 %v677_v29, %v676_v25  ;;  %v452_v42 = vsel %vm5694_vm2, %v447_v32, %v451_v14  ;;  %v542_v43 = vor.u32 %v541_v33, %v538_v20  ;;  %v551_v44 = vrot.slane %v549_v34, 4  ;;  %v5979_v14 = vld [vmem:[%s5679_s26 + $0x2c] sm:$0x1]  ;;  %4244 = vmatpush.bf16.msra.mxu0 %v5496_v8 }
  0x53   : > { %v462_v48 = vsel %vm5694_vm2, %v457_v36, %v461_v17  ;;  %v686_v49 = vunpack.c.l.b16 %v452_v42  ;;  %v557_v54 = vrot.slane %v555_v38, 5  ;;  %v634_v12 = vrot.slane %v632_v40, 4  ;;  %v4878_v38 = vld [vmem:[%s5679_s26 + $0xc] sm:$0xf] }
  0x54   : > { %802 = vmatmul.bf16.gmra.mxu0 %v706_v41  ;;  %v687_v19 = vunpack.c.l.b16 %v462_v48  ;;  %v543_v31 = vrot.slane %v542_v43, 4  ;;  %v552_v55 = vor.u32 %v551_v44, %v547_v37  ;;  %v635_v56 = vshll.u32 %v234_v22, 16 }
  0x55   : > { %v641_v57 = vshll.u32 %v235_v39, 16  ;;  %v645_v58 = vshrl.u32 %v235_v39, 16  ;;  %v651_v60 = vshll.u32 %v267_v45, 16  ;;  %v344_v63 = vshrl.u32 %v210_v46, 16  ;;  %v4879_v39 = vld [vmem:[%s5679_s26 + $0x10] sm:$0xf] }
  0x56   : > { %v711_v0 = vpack.c.b16 %v687_v19, %v686_v49  ;;  %v548_v1 = vsel %vm5694_vm2, %v543_v31, %v547_v37  ;;  %v553_v3 = vrot.slane %v552_v55, 4  ;;  %v637_v5 = vrot.slane %v635_v56, 5 }
  0x57   : > { %v694_v9 = vunpack.c.l.b16 %v548_v1  ;;  %v643_v10 = vrot.slane %v641_v57, 5  ;;  %v647_v11 = vrot.slane %v645_v58, 4  ;;  %v653_v13 = vrot.slane %v651_v60, 5  ;;  %v4880_v58 = vld [vmem:[%s5679_s26 + $0x14] sm:$0x1] }
  0x58   : > { %v558_v15 = vsel %vm5694_vm2, %v553_v3, %v557_v54  ;;  %v638_v17 = vor.u32 %v637_v5, %v634_v12  ;;  %v346_v18 = vrot.slane %v344_v63, 4  ;;  %v347_v50 = vshll.u32 %v210_v46, 16 }
  0x59   : > { %v695_v51 = vunpack.c.l.b16 %v558_v15  ;;  %v648_v16 = vor.u32 %v647_v11, %v643_v10  ;;  %v353_v20 = vshll.u32 %v5965_v61, 16  ;;  %v357_v21 = vshrl.u32 %v5965_v61, 16 }
  0x5a   : > { %v639_v22 = vrot.slane %v638_v17, 4  ;;  %v349_v23 = vrot.slane %v347_v50, 5  ;;  %v363_v25 = vshll.u32 %v5979_v14, 16  ;;  %v4670_v44 = vrot.slane %v1106_v26, 9  ;;  %v4881_v50 = vld [vmem:[%s5679_s26 + $0x18] sm:$0xf] }
  0x5b   : > { %v715_v28 = vpack.c.b16 %v695_v51, %v694_v9  ;;  %v649_v29 = vrot.slane %v648_v16, 4  ;;  %v355_v32 = vrot.slane %v353_v20, 5  ;;  %v359_v33 = vrot.slane %v357_v21, 4  ;;  %v5377_v51 = vld [vmem:[%s5679_s26] sm:$0xff]  ;;  %v4882_v16 = vld [vmem:[%s5679_s26 + $0x1c] sm:$0xf] }
  0x5c   : > { %827 = vmatmul.bf16.gmra.mxu1 %v711_v0  ;;  %v644_v34 = vsel %vm5694_vm2, %v639_v22, %v643_v10  ;;  %v350_v36 = vor.u32 %v349_v23, %v346_v18  ;;  %v365_v37 = vrot.slane %v363_v25, 5  ;;  %v1159_v47 = vrot.slane %v5719_v62, 5  ;;  %v1107_v21 = vld [vmem:[%s5679_s26 + $0xc] sm:$0xe] }
  0x5d   : > { %847 = vmatmul.bf16.gmra.mxu2 %v715_v28  ;;  %v654_v40 = vsel %vm5694_vm2, %v649_v29, %v653_v13  ;;  %v702_v41 = vunpack.c.l.b16 %v644_v34  ;;  %v360_v42 = vor.u32 %v359_v33, %v355_v32  ;;  %v1162_v48 = vrot.slane %v5726_v4, 5  ;;  %v5417_v34 = vld [vmem:[%s5679_s26 + $0xc] sm:$0xff] }
  0x5e   : > { %v703_v45 = vunpack.c.l.b16 %v654_v40  ;;  %v351_v46 = vrot.slane %v350_v36, 4  ;;  %v1883_v54 = vshrl.u32 %v4878_v38, 16  ;;  %v1886_v12 = vshll.u32 %v4878_v38, 16 }
  0x5f   : > { %v361_v49 = vrot.slane %v360_v42, 4  ;;  %v1892_v19 = vshll.u32 %v4879_v39, 16  ;;  %v1160_v56 = vsel %vm5994_vm5, %v4670_v44, %v1159_v47  ;;  %v1161_v57 = vrot.slane %v1159_v47, 4  ;;  %v4883_v44 = vld [vmem:[%s5679_s26 + $0x20] sm:$0x1] }
  0x60   : > { %v719_v31 = vpack.c.b16 %v703_v45, %v702_v41  ;;  %v356_v55 = vsel %vm5694_vm2, %v351_v46, %v355_v32  ;;  %v1286_v62 = vunpack.c.l.b16 %v1160_v56  ;;  %v1885_v0 = vrot.slane %v1883_v54, 4  ;;  %v5455_v56 = vld [vmem:[%s7128_s2 + $0x170] sm:$0xff] }
  0x61   : > { %v366_v60 = vsel %vm5694_vm2, %v361_v49, %v365_v37  ;;  %v678_v63 = vunpack.c.l.b16 %v356_v55  ;;  %v1163_v1 = vsel %vm5994_vm5, %v1161_v57, %v1162_v48  ;;  %v1888_v3 = vrot.slane %v1886_v12, 5  ;;  %v5479_v48 = vld [vmem:[%s7128_s2 + $0x1b0] sm:$0xff]  ;;  %2822 = vmatpush.bf16.msra.mxu1 %v5455_v56 }
  0x62   : > { %867 = vmatmul.bf16.gmra.mxu3 %v719_v31  ;;  %v679_v4 = vunpack.c.l.b16 %v366_v60  ;;  %v1287_v5 = vunpack.c.l.b16 %v1163_v1  ;;  %v1894_v6 = vrot.slane %v1892_v19, 5  ;;  %v1896_v7 = vshrl.u32 %v4879_v39, 16  ;;  %3137 = vmatpush.bf16.msra.mxu2 %v5479_v48  ;;  %v4884_v31 = vld [vmem:[%s5679_s26 + $0x24] sm:$0xf]  ;;  %v5487_v55 = vld [vmem:[%s7128_s2 + $0x1f0] sm:$0xff] }
  0x63   : > { %v1902_v8 = vshll.u32 %v4880_v58, 16  ;;  %v1889_v10 = vor.u32 %v1888_v3, %v1885_v0  ;;  %v1166_v22 = vrot.slane %v5798_v27, 5  ;;  %v1907_v23 = vshrl.u32 %v4881_v50, 16  ;;  %v5495_v57 = vld [vmem:[%s7128_s2 + $0x230] sm:$0xff]  ;;  %3819 = vmatpush.bf16.msra.mxu3 %v5487_v55  ;;  %v1109_v48 = vld [vmem:[%s5679_s26 + $0x24] sm:$0xe] }
  0x64   : > { %v707_v9 = vpack.c.b16 %v679_v4, %v678_v63  ;;  %v1318_v11 = vpack.c.b16 %v1287_v5, %v1286_v62  ;;  %v1898_v13 = vrot.slane %v1896_v7, 4  ;;  %v1910_v25 = vshll.u32 %v4881_v50, 16  ;;  %v4885_v62 = vld [vmem:[%s5679_s26 + $0x28] sm:$0xf]  ;;  %v5378_v0 = vld [vmem:[%s5679_s26 + $0xc] sm:$0xff]  ;;  %4245 = vmatpush.bf16.msra.mxu0 %v5495_v57 }
  0x65   : > { %v1890_v15 = vrot.slane %v1889_v10, 4  ;;  %v1904_v18 = vrot.slane %v1902_v8, 5  ;;  %v1916_v29 = vshll.u32 %v4882_v16, 16  ;;  %v1920_v32 = vshrl.u32 %v4882_v16, 16 }
  0x66   : > { %807 = vmatmul.bf16.gmra.mxu0 %v707_v9  ;;  %v1899_v17 = vor.u32 %v1898_v13, %v1894_v6  ;;  %v4671_v33 = vrot.slane %v1107_v21, 9  ;;  %v1168_v38 = vrot.slane %v1166_v22, 4  ;;  %v1169_v27 = vrot.slane %v5808_v35, 5  ;;  %v4886_v21 = vld [vmem:[%s5679_s26 + $0x2c] sm:$0x1] }
  0x67   : > { %v1895_v26 = vsel %vm5694_vm2, %v1890_v15, %v1894_v6  ;;  %v1909_v39 = vrot.slane %v1907_v23, 4  ;;  %v1912_v40 = vrot.slane %v1910_v25, 5  ;;  %v1918_v41 = vrot.slane %v1916_v29, 5  ;;  %v1108_v6 = vld [vmem:[%s5679_s26 + $0x18] sm:$0xe] }
  0x68   : > { %v1900_v20 = vrot.slane %v1899_v17, 4  ;;  %v2283_v36 = vunpack.c.l.b16 %v1895_v26  ;;  %v1922_v42 = vrot.slane %v1920_v32, 4  ;;  %v1167_v46 = vsel %vm5994_vm5, %v4671_v33, %v1166_v22 }
  0x69   : > { %v1170_v47 = vsel %vm5994_vm5, %v1168_v38, %v1169_v27  ;;  %v1913_v35 = vor.u32 %v1912_v40, %v1909_v39  ;;  %v1926_v54 = vshll.u32 %v4883_v44, 16  ;;  %v1288_v12 = vunpack.c.l.b16 %v1167_v46  ;;  %v4888_v38 = vld [vmem:[%s5679_s26 + $0x34] sm:$0xf]  ;;  %v5379_v27 = vld [vmem:[%s5679_s26 + $0x18] sm:$0xff] }
  0x6a   : > { %v1905_v28 = vsel %vm5694_vm2, %v1900_v20, %v1904_v18  ;;  %v1923_v49 = vor.u32 %v1922_v42, %v1918_v41  ;;  %v1289_v19 = vunpack.c.l.b16 %v1170_v47  ;;  %v1173_v1 = vrot.slane %v5895_v59, 5  ;;  %v5418_v18 = vld [vmem:[%s5679_s26 + $0x18] sm:$0xff] }
  0x6b   : > { %v2284_v37 = vunpack.c.l.b16 %v1905_v28  ;;  %v1914_v58 = vrot.slane %v1913_v35, 4  ;;  %v1928_v63 = vrot.slane %v1926_v54, 5  ;;  %v1931_v3 = vshrl.u32 %v4884_v31, 16 }
  0x6c   : > { %1025 = vmatmul.bf16.vlgmr.msrb.gmra.mxu1 %v5377_v51  ;;  %v1924_v60 = vrot.slane %v1923_v49, 4  ;;  %v1319_v4 = vpack.c.b16 %v1289_v19, %v1288_v12  ;;  %v1934_v5 = vshll.u32 %v4884_v31, 16  ;;  %v1940_v7 = vshll.u32 %v4885_v62, 16  ;;  %v5419_v31 = vld [vmem:[%s5679_s26 + $0x24] sm:$0xff] }
  0x6d   : > { %1406 = vmatmul.bf16.vlgmr.msrb.gmra.mxu2 %v1318_v11  ;;  %v2315_v45 = vpack.c.b16 %v2284_v37, %v2283_v36  ;;  %v1944_v8 = vshrl.u32 %v4885_v62, 16  ;;  %v1919_v9 = vsel %vm5694_vm2, %v1914_v58, %v1918_v41  ;;  %v1176_v11 = vrot.slane %v5901_v24, 5  ;;  %v4887_v37 = vld [vmem:[%s5679_s26 + $0x30] sm:$0xf] }
  0x6e   : > { %v1929_v10 = vsel %vm5694_vm2, %v1924_v60, %v1928_v63  ;;  %v4672_v13 = vrot.slane %v1108_v6, 9  ;;  %v1175_v59 = vrot.slane %v1173_v1, 4  ;;  %v1933_v15 = vrot.slane %v1931_v3, 4  ;;  %v4890_v6 = vld [vmem:[%s5679_s26 + $0x3c] sm:$0xf] }
  0x6f   : > { %v1936_v17 = vrot.slane %v1934_v5, 5  ;;  %v2285_v50 = vunpack.c.l.b16 %v1919_v9  ;;  %v2286_v51 = vunpack.c.l.b16 %v1929_v10  ;;  %v1942_v16 = vrot.slane %v1940_v7, 5  ;;  %v4891_v7 = vld [vmem:[%s5679_s26 + $0x40] sm:$0xf] }
  0x70   : > { %v1946_v20 = vrot.slane %v1944_v8, 4  ;;  %v1174_v22 = vsel %vm5994_vm5, %v4672_v13, %v1173_v1  ;;  %v1177_v25 = vsel %vm5994_vm5, %v1175_v59, %v1176_v11  ;;  %v1950_v28 = vshll.u32 %v4886_v21, 16  ;;  %v5478_v1 = vld [vmem:[%s7128_s2 + $0x1a8] sm:$0xff]  ;;  %v5546_v21 = vld [vmem:[%s5679_s26 + $0x34] sm:$0xf] }
  0x71   : > { %v1937_v23 = vor.u32 %v1936_v17, %v1933_v15  ;;  %v2316_v24 = vpack.c.b16 %v2286_v51, %v2285_v50  ;;  %v1290_v29 = vunpack.c.l.b16 %v1174_v22  ;;  %v1291_v32 = vunpack.c.l.b16 %v1177_v25  ;;  %3138 = vmatpush.bf16.msra.mxu2 %v5478_v1  ;;  %v5486_v11 = vld [vmem:[%s7128_s2 + $0x1e8] sm:$0xff]  ;;  %v1111_v1 = vld [vmem:[%s5679_s26 + $0x3c] sm:$0xe] }
  0x72   : > { %1721 = vmatmul.bf16.vlgmr.msrb.gmra.mxu3 %v5417_v34  ;;  %v1947_v26 = vor.u32 %v1946_v20, %v1942_v16  ;;  %v1952_v36 = vrot.slane %v1950_v28, 5  ;;  %v1955_v41 = vshrl.u32 %v4887_v37, 16  ;;  %v1958_v42 = vshll.u32 %v4887_v37, 16  ;;  %v5454_v13 = vld [vmem:[%s7128_s2 + $0x168] sm:$0xff]  ;;  %v5547_v37 = vld [vmem:[%s5679_s26 + $0x38] sm:$0x1] }
  0x73   : > { %v1938_v33 = vrot.slane %v1937_v23, 4  ;;  %v1320_v39 = vpack.c.b16 %v1291_v32, %v1290_v29  ;;  %v1964_v46 = vshll.u32 %v4888_v38, 16  ;;  %v1968_v47 = vshrl.u32 %v4888_v38, 16  ;;  %v5494_v59 = vld [vmem:[%s7128_s2 + $0x228] sm:$0xff]  ;;  %3820 = vmatpush.bf16.msra.mxu3 %v5486_v11  ;;  %2823 = vmatpush.bf16.msra.mxu1 %v5454_v13  ;;  %v5549_v13 = vld [vmem:[%s5679_s26 + $0x44] sm:$0x1] }
  0x74   : > { %v1948_v34 = vrot.slane %v1947_v26, 4  ;;  %v1183_v54 = vrot.slane %v5979_v14, 5  ;;  %v1957_v12 = vrot.slane %v1955_v41, 4  ;;  %v1960_v19 = vrot.slane %v1958_v42, 5  ;;  %v5380_v15 = vld [vmem:[%s5679_s26 + $0x24] sm:$0xff]  ;;  %4246 = vmatpush.bf16.msra.mxu0 %v5494_v59 }
  0x75   : > { %v1943_v40 = vsel %vm5694_vm2, %v1938_v33, %v1942_v16  ;;  %v4673_v55 = vrot.slane %v1109_v48, 9  ;;  %v1966_v57 = vrot.slane %v1964_v46, 5  ;;  %v1970_v58 = vrot.slane %v1968_v47, 4  ;;  %v5420_v33 = vld [vmem:[%s5679_s26 + $0x30] sm:$0xff] }
  0x76   : > { %2403 = vmatmul.bf16.vlgmr.msrb.gmra.mxu0 %v2315_v45  ;;  %v1953_v44 = vsel %vm5694_vm2, %v1948_v34, %v1952_v36  ;;  %v1180_v45 = vrot.slane %v5965_v61, 5  ;;  %v2287_v35 = vunpack.c.l.b16 %v1943_v40  ;;  %v4889_v61 = vld [vmem:[%s5679_s26 + $0x38] sm:$0x1]  ;;  %v1961_v63 = vor.u32 %v1960_v19, %v1957_v12  ;;  %v4893_v12 = vld [vmem:[%s5679_s26 + $0x48] sm:$0xf] }
  0x77   : > { %v2288_v49 = vunpack.c.l.b16 %v1953_v44  ;;  %v1971_v14 = vor.u32 %v1970_v58, %v1966_v57  ;;  %v1979_v17 = vshrl.u32 %v4890_v6, 16  ;;  %v1988_v51 = vshll.u32 %v4891_v7, 16  ;;  %v4894_v19 = vld [vmem:[%s5679_s26 + $0x4c] sm:$0xf] }
  0x78   : > { %v1182_v56 = vrot.slane %v1180_v45, 4  ;;  %v1181_v62 = vsel %vm5994_vm5, %v4673_v55, %v1180_v45  ;;  %v1962_v8 = vrot.slane %v1961_v63, 4  ;;  %v1187_v22 = vrot.slane %v5546_v21, 5 }
  0x79   : > { %v2317_v60 = vpack.c.b16 %v2288_v49, %v2287_v35  ;;  %v1292_v3 = vunpack.c.l.b16 %v1181_v62  ;;  %v1972_v9 = vrot.slane %v1971_v14, 4  ;;  %v1992_v23 = vshrl.u32 %v4891_v7, 16  ;;  %v5548_v62 = vld [vmem:[%s5679_s26 + $0x40] sm:$0xf] }
  0x7a   : > { %v1967_v16 = vsel %vm5694_vm2, %v1962_v8, %v1966_v57  ;;  %v1981_v25 = vrot.slane %v1979_v17, 4  ;;  %v1990_v32 = vrot.slane %v1988_v51, 5  ;;  %v1189_v36 = vrot.slane %v1187_v22, 4 }
  0x7b   : > { %v2289_v28 = vunpack.c.l.b16 %v1967_v16  ;;  %v1190_v38 = vrot.slane %v5547_v37, 5  ;;  %v2003_v58 = vshrl.u32 %v4893_v12, 16  ;;  %v2016_v14 = vshrl.u32 %v4894_v19, 16  ;;  %v4897_v37 = vld [vmem:[%s5679_s26 + $0x58] sm:$0xf] }
  0x7c   : > { %1030 = vmatmul.bf16.gmra.mxu1 %v5378_v0  ;;  %v1184_v0 = vsel %vm5994_vm5, %v1182_v56, %v1183_v54  ;;  %v1197_v59 = vrot.slane %v5549_v13, 5 }
  0x7d   : > { %1411 = vmatmul.bf16.gmra.mxu2 %v1319_v4  ;;  %v1974_v4 = vshll.u32 %v4889_v61, 16  ;;  %v1293_v5 = vunpack.c.l.b16 %v1184_v0  ;;  %v1191_v44 = vsel %vm5994_vm5, %v1189_v36, %v1190_v38  ;;  %v2006_v61 = vshll.u32 %v4893_v12, 16  ;;  %v5485_v38 = vld [vmem:[%s7128_s2 + $0x1e0] sm:$0xff] }
  0x7e   : > { %v1295_v35 = vunpack.c.l.b16 %v1191_v44  ;;  %v1194_v0 = vrot.slane %v5548_v62, 5  ;;  %3821 = vmatpush.bf16.msra.mxu3 %v5485_v38  ;;  %v2040_v12 = vshrl.u32 %v4897_v37, 16 }
  0x7f   : > { %v1976_v10 = vrot.slane %v1974_v4, 5  ;;  %v1321_v50 = vpack.c.b16 %v1293_v5, %v1292_v3  ;;  %v2008_v7 = vrot.slane %v2006_v61, 5 }
  0x80   : > { %v1196_v11 = vrot.slane %v1194_v0, 4 }
  0x81   : > { %v1977_v20 = vsel %vm5694_vm2, %v1972_v9, %v1976_v10  ;;  %v5421_v9 = vld [vmem:[%s5679_s26 + $0x3c] sm:$0xff]  ;;  %v4675_v10 = vrot.slane %v1111_v1, 9 }
  0x82   : > { %1726 = vmatmul.bf16.gmra.mxu3 %v5418_v18  ;;  %v1982_v18 = vshll.u32 %v4890_v6, 16  ;;  %v2290_v29 = vunpack.c.l.b16 %v1977_v20  ;;  %v2005_v6 = vrot.slane %v2003_v58, 4 }
  0x83   : > { %v1195_v21 = vsel %vm5994_vm5, %v4675_v10, %v1194_v0 }
  0x84   : > { %v1984_v26 = vrot.slane %v1982_v18, 5  ;;  %v2318_v41 = vpack.c.b16 %v2290_v29, %v2289_v28  ;;  %v4895_v18 = vld [vmem:[%s5679_s26 + $0x50] sm:$0x1]  ;;  %v2009_v20 = vor.u32 %v2008_v7, %v2005_v6  ;;  %v1296_v28 = vunpack.c.l.b16 %v1195_v21 }
  0x86   : > { %2408 = vmatmul.bf16.gmra.mxu0 %v2316_v24  ;;  %v1110_v24 = vld [vmem:[%s5679_s26 + $0x30] sm:$0xe]  ;;  %v1985_v40 = vor.u32 %v1984_v26, %v1981_v25  ;;  %v5477_v25 = vld [vmem:[%s7128_s2 + $0x1a0] sm:$0xff] }
  0x87   : > { %v4674_v34 = vrot.slane %v1110_v24, 9  ;;  %v2022_v24 = vshll.u32 %v4895_v18, 16  ;;  %3139 = vmatpush.bf16.msra.mxu2 %v5477_v25 }
  0x88   : > { %v1986_v47 = vrot.slane %v1985_v40, 4 }
  0x89   : > { %v1188_v42 = vsel %vm5994_vm5, %v4674_v34, %v1187_v22  ;;  %v1198_v22 = vsel %vm5994_vm5, %v1196_v11, %v1197_v59  ;;  %v2024_v36 = vrot.slane %v2022_v24, 5 }
  0x8a   : > { %v1294_v48 = vunpack.c.l.b16 %v1188_v42  ;;  %v1991_v55 = vsel %vm5694_vm2, %v1986_v47, %v1990_v32  ;;  %v1297_v29 = vunpack.c.l.b16 %v1198_v22  ;;  %v2036_v47 = vshll.u32 %v4897_v37, 16  ;;  %v4899_v22 = vld [vmem:[%s5679_s26 + $0x60] sm:$0xf] }
  0x8b   : > { %v2291_v3 = vunpack.c.l.b16 %v1991_v55  ;;  %v2054_v37 = vshll.u32 %v4899_v22, 16 }
  0x8c   : > { %1035 = vmatmul.bf16.gmra.mxu1 %v5379_v27  ;;  %v1994_v27 = vrot.slane %v1992_v23, 4  ;;  %v1322_v57 = vpack.c.b16 %v1295_v35, %v1294_v48  ;;  %v5493_v48 = vld [vmem:[%s7128_s2 + $0x220] sm:$0xff] }
  0x8d   : > { %1416 = vmatmul.bf16.gmra.mxu2 %v1320_v39  ;;  %v4892_v39 = vld [vmem:[%s5679_s26 + $0x44] sm:$0x1]  ;;  %4247 = vmatpush.bf16.msra.mxu0 %v5493_v48 }
  0x8e   : > { %v1995_v45 = vor.u32 %v1994_v27, %v1990_v32  ;;  %v1998_v46 = vshll.u32 %v4892_v39, 16  ;;  %v2010_v32 = vrot.slane %v2009_v20, 4  ;;  %v5453_v27 = vld [vmem:[%s7128_s2 + $0x160] sm:$0xff] }
  0x8f   : > { %2824 = vmatpush.bf16.msra.mxu1 %v5453_v27 }
  0x90   : > { %v1996_v49 = vrot.slane %v1995_v45, 4  ;;  %v2000_v54 = vrot.slane %v1998_v46, 5  ;;  %v1323_v46 = vpack.c.b16 %v1297_v29, %v1296_v28  ;;  %v5383_v29 = vld [vmem:[%s5679_s26 + $0x48] sm:$0xff] }
  0x92   : > { %1731 = vmatmul.bf16.gmra.mxu3 %v5419_v31  ;;  %v5381_v31 = vld [vmem:[%s5679_s26 + $0x30] sm:$0xff]  ;;  %v2001_v63 = vsel %vm5694_vm2, %v1996_v49, %v2000_v54  ;;  %v1201_v54 = vrot.slane %v5837_v2, 5 }
  0x93   : > { %v2292_v5 = vunpack.c.l.b16 %v2001_v63  ;;  %v5422_v63 = vld [vmem:[%s5679_s26 + $0x48] sm:$0xff] }
  0x94   : > { %v1203_v0 = vrot.slane %v1201_v54, 4 }
  0x95   : > { %v2319_v51 = vpack.c.b16 %v2292_v5, %v2291_v3  ;;  %v2042_v3 = vrot.slane %v2040_v12, 4  ;;  %v4898_v5 = vld [vmem:[%s5679_s26 + $0x5c] sm:$0x1] }
  0x96   : > { %2413 = vmatmul.bf16.gmra.mxu0 %v2317_v60  ;;  %v2012_v60 = vshll.u32 %v4894_v19, 16  ;;  %v1112_v19 = vld [vmem:[%s5679_s26 + $0x48] sm:$0xe]  ;;  %v2046_v59 = vshll.u32 %v4898_v5, 16  ;;  %v5476_v5 = vld [vmem:[%s7128_s2 + $0x198] sm:$0xff] }
  0x97   : > { %v4676_v62 = vrot.slane %v1112_v19, 9  ;;  %3140 = vmatpush.bf16.msra.mxu2 %v5476_v5 }
  0x98   : > { %v2014_v8 = vrot.slane %v2012_v60, 5  ;;  %v2038_v60 = vrot.slane %v2036_v47, 5  ;;  %v2048_v21 = vrot.slane %v2046_v59, 5  ;;  %v4902_v59 = vld [vmem:[%s5679_s26 + $0x6c] sm:$0xf] }
  0x99   : > { %v1202_v10 = vsel %vm5994_vm5, %v4676_v62, %v1201_v54  ;;  %v5423_v54 = vld [vmem:[%s5679_s26 + $0x54] sm:$0xff] }
  0x9a   : > { %v2015_v35 = vsel %vm5694_vm2, %v2010_v32, %v2014_v8  ;;  %v2043_v13 = vor.u32 %v2042_v3, %v2038_v60  ;;  %v1298_v18 = vunpack.c.l.b16 %v1202_v10 }
  0x9b   : > { %v2293_v58 = vunpack.c.l.b16 %v2015_v35  ;;  %v2056_v35 = vrot.slane %v2054_v37, 5  ;;  %v5551_v37 = vld [vmem:[%s5679_s26 + $0x64] sm:$0xf] }
  0x9c   : > { %1040 = vmatmul.bf16.gmra.mxu1 %v5380_v15  ;;  %v2018_v15 = vrot.slane %v2016_v14, 4  ;;  %v5550_v14 = vld [vmem:[%s5679_s26 + $0x50] sm:$0x1]  ;;  %v2044_v20 = vrot.slane %v2043_v13, 4 }
  0x9d   : > { %1421 = vmatmul.bf16.gmra.mxu2 %v1321_v50  ;;  %v1204_v1 = vrot.slane %v5550_v14, 5 }
  0x9e   : > { %v2019_v23 = vor.u32 %v2018_v15, %v2014_v8  ;;  %v2049_v27 = vsel %vm5694_vm2, %v2044_v20, %v2048_v21  ;;  %v5384_v20 = vld [vmem:[%s5679_s26 + $0x54] sm:$0xff]  ;;  %v4903_v21 = vld [vmem:[%s5679_s26 + $0x70] sm:$0xf] }
  0x9f   : > { %v1205_v11 = vsel %vm5994_vm5, %v1203_v0, %v1204_v1  ;;  %v2296_v47 = vunpack.c.l.b16 %v2049_v27  ;;  %v2078_v27 = vshll.u32 %v4902_v59, 16 }
  0xa0   : > { %v2020_v34 = vrot.slane %v2019_v23, 4  ;;  %v4900_v23 = vld [vmem:[%s5679_s26 + $0x64] sm:$0xf] }
  0xa1   : > { %v2060_v38 = vshll.u32 %v4900_v23, 16 }
  0xa2   : > { %1736 = vmatmul.bf16.gmra.mxu3 %v5420_v33  ;;  %v4896_v33 = vld [vmem:[%s5679_s26 + $0x54] sm:$0xf]  ;;  %v2025_v49 = vsel %vm5694_vm2, %v2020_v34, %v2024_v36  ;;  %v2051_v36 = vshrl.u32 %v4899_v22, 16 }
  0xa3   : > { %v2027_v42 = vshrl.u32 %v4896_v33, 16  ;;  %v2030_v44 = vshll.u32 %v4896_v33, 16  ;;  %v2294_v61 = vunpack.c.l.b16 %v2025_v49  ;;  %v2062_v49 = vrot.slane %v2060_v38, 5 }
  0xa4   : > { %v2053_v48 = vrot.slane %v2051_v36, 4  ;;  %v1215_v38 = vrot.slane %v5551_v37, 5 }
  0xa5   : > { %v2032_v55 = vrot.slane %v2030_v44, 5  ;;  %v2320_v8 = vpack.c.b16 %v2294_v61, %v2293_v58  ;;  %v1113_v44 = vld [vmem:[%s5679_s26 + $0x54] sm:$0xe]  ;;  %v4901_v61 = vld [vmem:[%s5679_s26 + $0x68] sm:$0x1] }
  0xa6   : > { %2418 = vmatmul.bf16.gmra.mxu0 %v2318_v41  ;;  %v5382_v41 = vld [vmem:[%s5679_s26 + $0x3c] sm:$0xff]  ;;  %v4677_v12 = vrot.slane %v1113_v44, 9  ;;  %v2057_v62 = vor.u32 %v2056_v35, %v2053_v48  ;;  %v2070_v3 = vshll.u32 %v4901_v61, 16  ;;  %v2084_v44 = vshll.u32 %v4903_v21, 16 }
  0xa7   : > { %v2080_v61 = vrot.slane %v2078_v27, 5  ;;  %v5385_v27 = vld [vmem:[%s5679_s26 + $0x60] sm:$0xff] }
  0xa8   : > { %v2058_v10 = vrot.slane %v2057_v62, 4  ;;  %v2072_v13 = vrot.slane %v2070_v3, 5 }
  0xa9   : > { %v6102_v56 = vpop.f32.mrf.mxu1 }
  0xac   : > { %v6107_v4 = vpop.f32.mrf.mxu0  ;;  %1045 = vmatmul.bf16.gmra.mxu1 %v5381_v31  ;;  %v2029_v31 = vrot.slane %v2027_v42, 4  ;;  %v2064_v42 = vshrl.u32 %v4900_v23, 16 }
  0xad   : > { %1426 = vmatmul.bf16.gmra.mxu2 %v1322_v57 }
  0xae   : > { %v2033_v7 = vor.u32 %v2032_v55, %v2029_v31  ;;  %v1211_v31 = vrot.slane %v5927_v53, 5  ;;  %v2066_v55 = vrot.slane %v2064_v42, 4  ;;  %v1114_v42 = vld [vmem:[%s5679_s26 + $0x60] sm:$0xe] }
  0xaf   : > { %v6112_v17 = vpop.f32.mrf.mxu2 }
  0xb0   : > { %v6115_v50 = vpop.f32.mrf.mxu3  ;;  %v2034_v15 = vrot.slane %v2033_v7, 4  ;;  %v2067_v1 = vor.u32 %v2066_v55, %v2062_v49 }
  0xb1   : > { %v6117_v16 = vpop.f32.mrf.mxu1 }
  0xb2   : > { %1741 = vmatmul.bf16.gmra.mxu3 %v5421_v9  ;;  %v2039_v32 = vsel %vm5694_vm2, %v2034_v15, %v2038_v60  ;;  %v5484_v15 = vld [vmem:[%s7128_s2 + $0x1d8] sm:$0xff] }
  0xb3   : > { %3822 = vmatpush.bf16.msra.mxu3 %v5484_v15 }
  0xb4   : > { %v6126_v26 = vpop.f32.mrf.mxu0 }
  0xb6   : > { %2423 = vmatmul.bf16.gmra.mxu0 %v2319_v51  ;;  %v1299_v51 = vunpack.c.l.b16 %v1205_v11  ;;  %v2068_v11 = vrot.slane %v2067_v1, 4 }
  0xb7   : > { %v6136_v39 = vpop.f32.mrf.mxu2 }
  0xb8   : > { %v6138_v40 = vpop.f32.mrf.mxu3  ;;  %v1324_v34 = vpack.c.b16 %v1299_v51, %v1298_v18  ;;  %v5452_v18 = vld [vmem:[%s7128_s2 + $0x158] sm:$0xff]  ;;  %v2073_v36 = vsel %vm5694_vm2, %v2068_v11, %v2072_v13 }
  0xb9   : > { %v6141_v45 = vpop.f32.mrf.mxu1  ;;  %2825 = vmatpush.bf16.msra.mxu1 %v5452_v18  ;;  %v2298_v35 = vunpack.c.l.b16 %v2073_v36 }
  0xbc   : > { %1050 = vmatmul.bf16.gmra.mxu1 %v5382_v41  ;;  %v1208_v41 = vrot.slane %v5924_v52, 5 }
  0xbd   : > { %v6152_v57 = vpop.f32.mrf.mxu0  ;;  %1431 = vmatmul.bf16.gmra.mxu2 %v1323_v46  ;;  %v2295_v46 = vunpack.c.l.b16 %v2039_v32 }
  0xbe   : > { %v1210_v19 = vrot.slane %v1208_v41, 4  ;;  %v1209_v14 = vsel %vm5994_vm5, %v4677_v12, %v1208_v41  ;;  %v4678_v12 = vrot.slane %v1114_v42, 9 }
  0xbf   : > { %v6156_v2 = vpop.f32.mrf.mxu2  ;;  %v2321_v60 = vpack.c.b16 %v2296_v47, %v2295_v46  ;;  %v1300_v7 = vunpack.c.l.b16 %v1209_v14  ;;  %v2088_v46 = vshrl.u32 %v4903_v21, 16  ;;  %v5492_v47 = vld [vmem:[%s7128_s2 + $0x218] sm:$0xff] }
  0xc0   : > { %v6159_v6 = vpop.f32.mrf.mxu3  ;;  %v1212_v53 = vsel %vm5994_vm5, %v1210_v19, %v1211_v31  ;;  %4248 = vmatpush.bf16.msra.mxu0 %v5492_v47  ;;  %v1217_v19 = vrot.slane %v1215_v38, 4  ;;  %v5552_v31 = vld [vmem:[%s5679_s26 + $0x68] sm:$0x1]  ;;  %v1216_v5 = vsel %vm5994_vm5, %v4678_v12, %v1215_v38  ;;  %v4906_v21 = vld [vmem:[%s5679_s26 + $0x7c] sm:$0xf] }
  0xc1   : > { %v6161_v9 = vpop.f32.mrf.mxu1  ;;  %v1218_v55 = vrot.slane %v5552_v31, 5  ;;  %v2090_v62 = vrot.slane %v2088_v46, 4  ;;  %v1302_v18 = vunpack.c.l.b16 %v1216_v5  ;;  %v2108_v42 = vshll.u32 %v4906_v21, 16  ;;  %v5553_v47 = vld [vmem:[%s5679_s26 + $0x70] sm:$0xf] }
  0xc2   : > { %1746 = vmatmul.bf16.gmra.mxu3 %v5422_v63 }
  0xc5   : > { %v6169_v24 = vpop.f32.mrf.mxu0 }
  0xc6   : > { %2428 = vmatmul.bf16.gmra.mxu0 %v2320_v8  ;;  %v1301_v8 = vunpack.c.l.b16 %v1212_v53  ;;  %v4904_v53 = vld [vmem:[%s5679_s26 + $0x74] sm:$0x1] }
  0xc7   : > { %v6171_v25 = vpop.f32.mrf.mxu2  ;;  %v2094_v13 = vshll.u32 %v4904_v53, 16 }
  0xc8   : > { %v6173_v28 = vpop.f32.mrf.mxu3  ;;  %v1325_v23 = vpack.c.b16 %v1301_v8, %v1300_v7  ;;  %v1219_v7 = vsel %vm5994_vm5, %v1217_v19, %v1218_v55 }
  0xc9   : > { %v6178_v33 = vpop.f32.mrf.mxu1 }
  0xcc   : > { %1055 = vmatmul.bf16.gmra.mxu1 %v5383_v29  ;;  %v2075_v29 = vshrl.u32 %v4902_v59, 16  ;;  %v4905_v59 = vld [vmem:[%s5679_s26 + $0x78] sm:$0xf] }
  0xcd   : > { %1436 = vmatmul.bf16.gmra.mxu2 %v1324_v34  ;;  %v2063_v34 = vsel %vm5694_vm2, %v2058_v10, %v2062_v49  ;;  %v2099_v36 = vshrl.u32 %v4905_v59, 16  ;;  %v2102_v37 = vshll.u32 %v4905_v59, 16 }
  0xce   : > { %v2297_v48 = vunpack.c.l.b16 %v2063_v34  ;;  %v2077_v49 = vrot.slane %v2075_v29, 4  ;;  %v2096_v34 = vrot.slane %v2094_v13, 5  ;;  %v5425_v13 = vld [vmem:[%s5679_s26 + $0x6c] sm:$0xff] }
  0xcf   : > { %v6186_v58 = vpop.f32.mrf.mxu2  ;;  %v2101_v55 = vrot.slane %v2099_v36, 4 }
  0xd0   : > { %v2322_v1 = vpack.c.b16 %v2298_v35, %v2297_v48  ;;  %v2081_v8 = vor.u32 %v2080_v61, %v2077_v49  ;;  %v1222_v48 = vrot.slane %v5553_v47, 5  ;;  %v2104_v61 = vrot.slane %v2102_v37, 5  ;;  %v5475_v47 = vld [vmem:[%s7128_s2 + $0x190] sm:$0xff] }
  0xd1   : > { %v6189_v52 = vpop.f32.mrf.mxu0  ;;  %v6191_v63 = vpop.f32.mrf.mxu3  ;;  %3141 = vmatpush.bf16.msra.mxu2 %v5475_v47 }
  0xd2   : > { %1751 = vmatmul.bf16.gmra.mxu3 %v5423_v54  ;;  %v6193_v0 = vpop.f32.mrf.mxu1  ;;  %v5424_v54 = vld [vmem:[%s5679_s26 + $0x60] sm:$0xff] }
  0xd6   : > { %2433 = vmatmul.bf16.gmra.mxu0 %v2321_v60  ;;  %v2086_v60 = vrot.slane %v2084_v44, 5  ;;  %v2112_v44 = vshrl.u32 %v4906_v21, 16 }
  0xd7   : > { %v6209_v51 = vpop.f32.mrf.mxu2 }
  0xd8   : > { %v2091_v11 = vor.u32 %v2090_v62, %v2086_v60  ;;  %v2110_v62 = vrot.slane %v2108_v42, 5  ;;  %v2114_v53 = vrot.slane %v2112_v44, 4 }
  0xd9   : > { %v6213_v22 = vpop.f32.mrf.mxu0  ;;  %v6222_v41 = vpop.f32.mrf.mxu3 }
  0xda   : > { %v6215_v32 = vpop.f32.mrf.mxu1  ;;  %v2092_v29 = vrot.slane %v2091_v11, 4  ;;  %v4907_v11 = vld [vmem:[%s5679_s26 + $0x80] sm:$0x1]  ;;  %v2115_v21 = vor.u32 %v2114_v53, %v2110_v62  ;;  %v5451_v53 = vld [vmem:[%s7128_s2 + $0x150] sm:$0xff] }
  0xdb   : > { %2826 = vmatpush.bf16.msra.mxu1 %v5451_v53 }
  0xdc   : > { %1060 = vmatmul.bf16.gmra.mxu1 %v5384_v20  ;;  %v1303_v20 = vunpack.c.l.b16 %v1219_v7  ;;  %v2097_v31 = vsel %vm5694_vm2, %v2092_v29, %v2096_v34  ;;  %v5554_v7 = vld [vmem:[%s5679_s26 + $0x74] sm:$0x1] }
  0xdd   : > { %1441 = vmatmul.bf16.gmra.mxu2 %v1325_v23  ;;  %v2082_v23 = vrot.slane %v2081_v8, 4  ;;  %v1225_v8 = vrot.slane %v5554_v7, 5  ;;  %v5386_v7 = vld [vmem:[%s5679_s26 + $0x6c] sm:$0xff] }
  0xde   : > { %v1326_v46 = vpack.c.b16 %v1303_v20, %v1302_v18  ;;  %v2300_v18 = vunpack.c.l.b16 %v2097_v31  ;;  %v4908_v31 = vld [vmem:[%s5679_s26 + $0x84] sm:$0xf] }
  0xdf   : > { %v2087_v49 = vsel %vm5694_vm2, %v2082_v23, %v2086_v60  ;;  %v1224_v60 = vrot.slane %v1222_v48, 4  ;;  %v2118_v23 = vshll.u32 %v4907_v11, 16 }
  0xe0   : > { %v6230_v14 = vpop.f32.mrf.mxu2  ;;  %v2299_v59 = vunpack.c.l.b16 %v2087_v49 }
  0xe1   : > { %v1226_v36 = vsel %vm5994_vm5, %v1224_v60, %v1225_v8 }
  0xe2   : > { %1756 = vmatmul.bf16.gmra.mxu3 %v5424_v54  ;;  %v6233_v3 = vpop.f32.mrf.mxu1  ;;  %v1115_v54 = vld [vmem:[%s5679_s26 + $0x6c] sm:$0xe]  ;;  %v2323_v37 = vpack.c.b16 %v2300_v18, %v2299_v59  ;;  %v1305_v49 = vunpack.c.l.b16 %v1226_v36 }
  0xe3   : > { %v6239_v10 = vpop.f32.mrf.mxu0  ;;  %v4679_v5 = vrot.slane %v1115_v54, 9  ;;  %v2116_v54 = vrot.slane %v2115_v21, 4 }
  0xe5   : > { %v6242_v15 = vpop.f32.mrf.mxu3  ;;  %v1223_v34 = vsel %vm5994_vm5, %v4679_v5, %v1222_v48  ;;  %v2120_v48 = vrot.slane %v2118_v23, 5 }
  0xe6   : > { %2438 = vmatmul.bf16.gmra.mxu0 %v2322_v1 }
  0xe7   : > { %v2121_v11 = vsel %vm5694_vm2, %v2116_v54, %v2120_v48 }
  0xe8   : > { %v6245_v38 = vpop.f32.mrf.mxu2 }
  0xea   : > { %v1026_v35 = vpop.f32.mrf.mxu1 }
  0xeb   : > { %v6252_v12 = vpop.f32.mrf.mxu0  ;;  %v1027_v19 = vadd.f32 %v1026_v35, %v6107_v4  ;;  %v2105_v4 = vor.u32 %v2104_v61, %v2101_v55  ;;  %v1304_v35 = vunpack.c.l.b16 %v1223_v34  ;;  %v4909_v61 = vld [vmem:[%s5679_s26 + $0x88] sm:$0xf] }
  0xec   : > { %1065 = vmatmul.bf16.gmra.mxu1 %v5385_v27  ;;  %v2136_v21 = vshrl.u32 %v4909_v61, 16 }
  0xed   : > { %v6257_v1 = vpop.f32.mrf.mxu3  ;;  %1446 = vmatmul.bf16.gmra.mxu2 %v1326_v46  ;;  %v2106_v46 = vrot.slane %v2105_v4, 4  ;;  %v1327_v8 = vpack.c.b16 %v1305_v49, %v1304_v35  ;;  %v2126_v4 = vshll.u32 %v4908_v31, 16 }
  0xee   : > { %v2138_v54 = vrot.slane %v2136_v21, 4 }
  0xef   : > { %v2111_v5 = vsel %vm5694_vm2, %v2106_v46, %v2110_v62  ;;  %v2128_v35 = vrot.slane %v2126_v4, 5 }
  0xf0   : > { %v1407_v20 = vpop.f32.mrf.mxu2 }
  0xf1   : > { %v1487_v29 = vadd.f32 %v1407_v20, %v1027_v19  ;;  %v2132_v20 = vshll.u32 %v4909_v61, 16 }
  0xf2   : > { %1761 = vmatmul.bf16.gmra.mxu3 %v5425_v13  ;;  %v1028_v27 = vpop.f32.mrf.mxu1  ;;  %v2123_v13 = vshrl.u32 %v4908_v31, 16 }
  0xf3   : > { %v2404_v42 = vpop.f32.mrf.mxu0  ;;  %v1029_v44 = vadd.f32 %v1028_v27, %v6126_v26  ;;  %v5483_v26 = vld [vmem:[%s7128_s2 + $0x1d0] sm:$0xff]  ;;  %v2134_v49 = vrot.slane %v2132_v20, 5 }
  0xf4   : > { %3823 = vmatpush.bf16.msra.mxu3 %v5483_v26  ;;  %v5491_v27 = vld [vmem:[%s7128_s2 + $0x210] sm:$0xff]  ;;  %v2125_v47 = vrot.slane %v2123_v13, 4  ;;  %v4910_v26 = vld [vmem:[%s5679_s26 + $0x8c] sm:$0x1] }
  0xf5   : > { %v1722_v19 = vpop.f32.mrf.mxu3  ;;  %4249 = vmatpush.bf16.msra.mxu0 %v5491_v27  ;;  %v2142_v4 = vshll.u32 %v4910_v26, 16  ;;  %v5557_v26 = vld [vmem:[%s5679_s26 + $0x88] sm:$0xf] }
  0xf6   : > { %2443 = vmatmul.bf16.gmra.mxu0 %v2323_v37  ;;  %v1802_v55 = vadd.f32 %v1722_v19, %v1487_v29  ;;  %v5555_v29 = vld [vmem:[%s5679_s26 + $0x7c] sm:$0xf]  ;;  %v1116_v37 = vld [vmem:[%s5679_s26 + $0x78] sm:$0xe] }
  0xf7   : > { %v1229_v34 = vrot.slane %v5555_v29, 5  ;;  %v5426_v19 = vld [vmem:[%s5679_s26 + $0x78] sm:$0xff] }
  0xf8   : > { %v1409_v60 = vpop.f32.mrf.mxu2  ;;  %v6283_v59 = vadd.f32 %v2404_v42, %v1802_v55  ;;  %v2301_v42 = vunpack.c.l.b16 %v2111_v5  ;;  %v5556_v55 = vld [vmem:[%s5679_s26 + $0x80] sm:$0x1] }
  0xf9   : > { %v1488_v18 = vadd.f32 %v1409_v60, %v1029_v44  ;;  %v2302_v44 = vunpack.c.l.b16 %v2121_v11  ;;  %v1231_v31 = vrot.slane %v1229_v34, 4  ;;  %v1232_v61 = vrot.slane %v5556_v55, 5 }
  0xfa   : > { %v1031_v23 = vpop.f32.mrf.mxu1 }
  0xfb   : > { %v2406_v62 = vpop.f32.mrf.mxu0  ;;  %v1032_v36 = vadd.f32 %v1031_v23, %v6152_v57  ;;  %v4680_v57 = vrot.slane %v1116_v37, 9  ;;  %v2324_v60 = vpack.c.b16 %v2302_v44, %v2301_v42  ;;  %v2129_v23 = vor.u32 %v2128_v35, %v2125_v47  ;;  %v5387_v47 = vld [vmem:[%s5679_s26 + $0x78] sm:$0xff]  ;;  %v4912_v35 = vld [vmem:[%s5679_s26 + $0x94] sm:$0xf] }
  0xfc   : > { %1070 = vmatmul.bf16.gmra.mxu1 %v5386_v7  ;;  %v1233_v13 = vsel %vm5994_vm5, %v1231_v31, %v1232_v61  ;;  %v2144_v44 = vrot.slane %v2142_v4, 5 }
  0xfd   : > { %v1724_v46 = vpop.f32.mrf.mxu3  ;;  %1451 = vmatmul.bf16.gmra.mxu2 %v1327_v8  ;;  %v1230_v11 = vsel %vm5994_vm5, %v4680_v57, %v1229_v34  ;;  %v2130_v27 = vrot.slane %v2129_v23, 4  ;;  %v4911_v34 = vld [vmem:[%s5679_s26 + $0x90] sm:$0xf]  ;;  %v1117_v23 = vld [vmem:[%s5679_s26 + $0x84] sm:$0xe] }
  0xfe   : > { %v1803_v48 = vadd.f32 %v1724_v46, %v1488_v18  ;;  %v2139_v18 = vor.u32 %v2138_v54, %v2134_v49  ;;  %v2147_v57 = vshrl.u32 %v4911_v34, 16 }
  0xff   : > { %v2135_v55 = vsel %vm5694_vm2, %v2130_v27, %v2134_v49 }
 0x100   : > { %v1412_v53 = vpop.f32.mrf.mxu2  ;;  %v6294_v5 = vadd.f32 %v2406_v62, %v1803_v48  ;;  %v1307_v62 = vunpack.c.l.b16 %v1233_v13  ;;  %v2140_v42 = vrot.slane %v2139_v18, 4  ;;  %v2303_v18 = vunpack.c.l.b16 %v2135_v55 }
 0x101   : > { %v1489_v7 = vadd.f32 %v1412_v53, %v1032_v36  ;;  %v1306_v36 = vunpack.c.l.b16 %v1230_v11  ;;  %v1236_v53 = vrot.slane %v5557_v26, 5  ;;  %v2160_v11 = vshrl.u32 %v4912_v35, 16 }
 0x102   : > { %1766 = vmatmul.bf16.gmra.mxu3 %v5426_v19  ;;  %v1033_v8 = vpop.f32.mrf.mxu1  ;;  %v2145_v61 = vsel %vm5694_vm2, %v2140_v42, %v2144_v44  ;;  %v2149_v49 = vrot.slane %v2147_v57, 4 }
 0x103   : > { %v2409_v20 = vpop.f32.mrf.mxu0  ;;  %v1034_v21 = vadd.f32 %v1033_v8, %v6169_v24  ;;  %v1328_v19 = vpack.c.b16 %v1307_v62, %v1306_v36  ;;  %v2150_v24 = vshll.u32 %v4911_v34, 16  ;;  %v2156_v8 = vshll.u32 %v4912_v35, 16  ;;  %v4913_v34 = vld [vmem:[%s5679_s26 + $0x98] sm:$0x1] }
 0x104   : > { %v2304_v4 = vunpack.c.l.b16 %v2145_v61  ;;  %v4681_v36 = vrot.slane %v1117_v23, 9  ;;  %v1238_v62 = vrot.slane %v1236_v53, 4  ;;  %v2166_v26 = vshll.u32 %v4913_v34, 16 }
 0x105   : > { %v1727_v29 = vpop.f32.mrf.mxu3  ;;  %v6315_v42 = vrot.slane %v2156_v8, 5 }
 0x106   : > { %2448 = vmatmul.bf16.gmra.mxu0 %v2324_v60  ;;  %v1804_v37 = vadd.f32 %v1727_v29, %v1489_v7  ;;  %v5427_v29 = vld [vmem:[%s5679_s26 + $0x84] sm:$0xff]  ;;  %v2325_v35 = vpack.c.b16 %v2304_v4, %v2303_v18 }
 0x107   : > { %v5450_v4 = vld [vmem:[%s7128_s2 + $0x148] sm:$0xff] }
 0x108   : > { %v1414_v46 = vpop.f32.mrf.mxu2  ;;  %v6304_v48 = vadd.f32 %v2409_v20, %v1804_v37  ;;  %v2152_v20 = vrot.slane %v2150_v24, 5  ;;  %v5558_v37 = vld [vmem:[%s5679_s26 + $0x8c] sm:$0x1]  ;;  %2827 = vmatpush.bf16.msra.mxu1 %v5450_v4 }
 0x109   : > { %v1490_v54 = vadd.f32 %v1414_v46, %v1034_v21  ;;  %v1239_v27 = vrot.slane %v5558_v37, 5 }
 0x10a   : > { %v1036_v31 = vpop.f32.mrf.mxu1  ;;  %v2153_v24 = vor.u32 %v2152_v20, %v2149_v49  ;;  %v2168_v20 = vrot.slane %v2166_v26, 5 }
 0x10b   : > { %v2411_v60 = vpop.f32.mrf.mxu0  ;;  %v1037_v7 = vadd.f32 %v1036_v31, %v6189_v52  ;;  %v2162_v52 = vrot.slane %v2160_v11, 4  ;;  %v1240_v57 = vsel %vm5994_vm5, %v1238_v62, %v1239_v27  ;;  %v5388_v62 = vld [vmem:[%s5679_s26 + $0x84] sm:$0xff] }
 0x10c   : > { %1075 = vmatmul.bf16.gmra.mxu1 %v5387_v47  ;;  %v1309_v11 = vunpack.c.l.b16 %v1240_v57  ;;  %v2154_v18 = vrot.slane %v2153_v24, 4  ;;  %v1118_v57 = vld [vmem:[%s5679_s26 + $0x90] sm:$0xe] }
 0x10d   : > { %v1729_v13 = vpop.f32.mrf.mxu3  ;;  %1456 = vmatmul.bf16.gmra.mxu2 %v1328_v19  ;;  %v2163_v61 = vor.u32 %v2162_v52, %v6315_v42 }
 0x10e   : > { %v1805_v21 = vadd.f32 %v1729_v13, %v1490_v54  ;;  %v1237_v54 = vsel %vm5994_vm5, %v4681_v36, %v1236_v53  ;;  %v4915_v53 = vld [vmem:[%s5679_s26 + $0xa0] sm:$0xf] }
 0x10f   : > { %v1308_v8 = vunpack.c.l.b16 %v1237_v54  ;;  %v2164_v49 = vrot.slane %v2163_v61, 4  ;;  %v2180_v37 = vshll.u32 %v4915_v53, 16  ;;  %v2184_v27 = vshrl.u32 %v4915_v53, 16  ;;  %v5560_v53 = vld [vmem:[%s5679_s26 + $0x98] sm:$0x1] }
 0x110   : > { %v1417_v44 = vpop.f32.mrf.mxu2  ;;  %v6318_v47 = vadd.f32 %v2411_v60, %v1805_v21  ;;  %v5474_v60 = vld [vmem:[%s7128_s2 + $0x188] sm:$0xff]  ;;  %v2159_v54 = vsel %vm5694_vm2, %v2154_v18, %v6315_v42  ;;  %v4682_v42 = vrot.slane %v1118_v57, 9 }
 0x111   : > { %v1491_v46 = vadd.f32 %v1417_v44, %v1037_v7  ;;  %v4914_v7 = vld [vmem:[%s5679_s26 + $0x9c] sm:$0xf]  ;;  %3142 = vmatpush.bf16.msra.mxu2 %v5474_v60  ;;  %v1329_v34 = vpack.c.b16 %v1309_v11, %v1308_v8  ;;  %v2169_v26 = vsel %vm5694_vm2, %v2164_v49, %v2168_v20  ;;  %v5490_v60 = vld [vmem:[%s7128_s2 + $0x208] sm:$0xff]  ;;  %v2305_v4 = vunpack.c.l.b16 %v2159_v54 }
 0x112   : > { %1771 = vmatmul.bf16.gmra.mxu3 %v5427_v29  ;;  %v1038_v19 = vpop.f32.mrf.mxu1  ;;  %v2171_v21 = vshrl.u32 %v4914_v7, 16  ;;  %v2174_v29 = vshll.u32 %v4914_v7, 16  ;;  %v2182_v7 = vrot.slane %v2180_v37, 5  ;;  %4250 = vmatpush.bf16.msra.mxu0 %v5490_v60  ;;  %v2306_v49 = vunpack.c.l.b16 %v2169_v26 }
 0x113   : > { %v2414_v31 = vpop.f32.mrf.mxu0  ;;  %v1039_v55 = vadd.f32 %v1038_v19, %v6213_v22  ;;  %v5482_v22 = vld [vmem:[%s7128_s2 + $0x1c8] sm:$0xff] }
 0x114   : > { %3824 = vmatpush.bf16.msra.mxu3 %v5482_v22  ;;  %v5428_v22 = vld [vmem:[%s5679_s26 + $0x90] sm:$0xff] }
 0x115   : > { %v1732_v23 = vpop.f32.mrf.mxu3 }
 0x116   : > { %2453 = vmatmul.bf16.gmra.mxu0 %v2325_v35  ;;  %v1806_v13 = vadd.f32 %v1732_v23, %v1491_v46  ;;  %v5559_v46 = vld [vmem:[%s5679_s26 + $0x94] sm:$0xf]  ;;  %v2186_v23 = vrot.slane %v2184_v27, 4 }
 0x117   : > { %v1243_v35 = vrot.slane %v5559_v46, 5 }
 0x118   : > { %v1419_v36 = vpop.f32.mrf.mxu2  ;;  %v6338_v52 = vadd.f32 %v2414_v31, %v1806_v13  ;;  %v2173_v31 = vrot.slane %v2171_v21, 4  ;;  %v1246_v13 = vrot.slane %v5560_v53, 5 }
 0x119   : > { %v1492_v44 = vadd.f32 %v1419_v36, %v1039_v55  ;;  %v2176_v55 = vrot.slane %v2174_v29, 5  ;;  %v1245_v11 = vrot.slane %v1243_v35, 4  ;;  %v2187_v29 = vor.u32 %v2186_v23, %v2182_v7 }
 0x11a   : > { %v1041_v19 = vpop.f32.mrf.mxu1  ;;  %v1244_v37 = vsel %vm5994_vm5, %v4682_v42, %v1243_v35  ;;  %v4917_v35 = vld [vmem:[%s5679_s26 + $0xa8] sm:$0xf] }
 0x11b   : > { %v2416_v24 = vpop.f32.mrf.mxu0  ;;  %v1042_v61 = vadd.f32 %v1041_v19, %v6239_v10  ;;  %v4916_v10 = vld [vmem:[%s5679_s26 + $0xa4] sm:$0x1]  ;;  %v2177_v20 = vor.u32 %v2176_v55, %v2173_v31  ;;  %v1247_v27 = vsel %vm5994_vm5, %v1245_v11, %v1246_v13  ;;  %v1310_v26 = vunpack.c.l.b16 %v1244_v37  ;;  %v5389_v11 = vld [vmem:[%s5679_s26 + $0x90] sm:$0xff] }
 0x11c   : > { %1080 = vmatmul.bf16.gmra.mxu1 %v5388_v62  ;;  %v2190_v36 = vshll.u32 %v4916_v10, 16  ;;  %v1311_v31 = vunpack.c.l.b16 %v1247_v27  ;;  %v2195_v13 = vshrl.u32 %v4917_v35, 16 }
 0x11d   : > { %v1734_v8 = vpop.f32.mrf.mxu3  ;;  %1461 = vmatmul.bf16.gmra.mxu2 %v1329_v34  ;;  %v2178_v57 = vrot.slane %v2177_v20, 4 }
 0x11e   : > { %v1807_v18 = vadd.f32 %v1734_v8, %v1492_v44  ;;  %v2326_v44 = vpack.c.b16 %v2306_v49, %v2305_v4  ;;  %v2192_v55 = vrot.slane %v2190_v36, 5  ;;  %v4918_v8 = vld [vmem:[%s5679_s26 + $0xac] sm:$0xf]  ;;  %v1330_v53 = vpack.c.b16 %v1311_v31, %v1310_v26  ;;  %v5429_v26 = vld [vmem:[%s5679_s26 + $0x9c] sm:$0xff] }
 0x11f   : > { %v2204_v4 = vshll.u32 %v4918_v8, 16  ;;  %v2208_v49 = vshrl.u32 %v4918_v8, 16 }
 0x120   : > { %v1422_v21 = vpop.f32.mrf.mxu2  ;;  %v6358_v34 = vadd.f32 %v2416_v24, %v1807_v18  ;;  %v2183_v24 = vsel %vm5694_vm2, %v2178_v57, %v2182_v7  ;;  %v1119_v7 = vld [vmem:[%s5679_s26 + $0x9c] sm:$0xe] }
 0x121   : > { %v1493_v62 = vadd.f32 %v1422_v21, %v1042_v61  ;;  %v2188_v61 = vrot.slane %v2187_v29, 4  ;;  %v5561_v21 = vld [vmem:[%s5679_s26 + $0xa0] sm:$0xf]  ;;  %v4683_v31 = vrot.slane %v1119_v7, 9  ;;  %v4920_v7 = vld [vmem:[%s5679_s26 + $0xb4] sm:$0xf] }
 0x122   : > { %1776 = vmatmul.bf16.gmra.mxu3 %v5428_v22  ;;  %v1043_v46 = vpop.f32.mrf.mxu1  ;;  %v2198_v22 = vshll.u32 %v4917_v35, 16  ;;  %v1250_v29 = vrot.slane %v5561_v21, 5 }
 0x123   : > { %v2419_v19 = vpop.f32.mrf.mxu0  ;;  %v1044_v54 = vadd.f32 %v1043_v46, %v6252_v12  ;;  %v2193_v12 = vsel %vm5694_vm2, %v2188_v61, %v2192_v55  ;;  %v5562_v55 = vld [vmem:[%s5679_s26 + $0xa4] sm:$0x1] }
 0x124   : > { %v2308_v37 = vunpack.c.l.b16 %v2193_v12  ;;  %v2200_v46 = vrot.slane %v2198_v22, 5  ;;  %v1252_v61 = vrot.slane %v1250_v29, 4 }
 0x125   : > { %v1737_v60 = vpop.f32.mrf.mxu3 }
 0x126   : > { %2458 = vmatmul.bf16.gmra.mxu0 %v2326_v44  ;;  %v1808_v23 = vadd.f32 %v1737_v60, %v1493_v62  ;;  %v2307_v62 = vunpack.c.l.b16 %v2183_v24  ;;  %v2197_v44 = vrot.slane %v2195_v13, 4  ;;  %v1253_v60 = vrot.slane %v5562_v55, 5 }
 0x127   : > { %v1251_v13 = vsel %vm5994_vm5, %v4683_v31, %v1250_v29  ;;  %v4921_v31 = vld [vmem:[%s5679_s26 + $0xb8] sm:$0xf]  ;;  %v2222_v55 = vshll.u32 %v4920_v7, 16 }
 0x128   : > { %v1424_v42 = vpop.f32.mrf.mxu2  ;;  %v6368_v10 = vadd.f32 %v2419_v19, %v1808_v23  ;;  %v2206_v19 = vrot.slane %v2204_v4, 5  ;;  %v4919_v23 = vld [vmem:[%s5679_s26 + $0xb0] sm:$0x1]  ;;  %v1312_v21 = vunpack.c.l.b16 %v1251_v13  ;;  %v1120_v13 = vld [vmem:[%s5679_s26 + $0xa8] sm:$0xe] }
 0x129   : > { %v1494_v18 = vadd.f32 %v1424_v42, %v1044_v54  ;;  %v2210_v54 = vrot.slane %v2208_v49, 4  ;;  %v2327_v42 = vpack.c.b16 %v2308_v37, %v2307_v62  ;;  %v2214_v4 = vshll.u32 %v4919_v23, 16 }
 0x12a   : > { %v1046_v20 = vpop.f32.mrf.mxu1 }
 0x12b   : > { %v2421_v36 = vpop.f32.mrf.mxu0  ;;  %v1047_v35 = vadd.f32 %v1046_v20, %v6102_v56  ;;  %v2211_v22 = vor.u32 %v2210_v54, %v2206_v19  ;;  %v5473_v56 = vld [vmem:[%s7128_s2 + $0x180] sm:$0xff] }
 0x12c   : > { %1085 = vmatmul.bf16.gmra.mxu1 %v5389_v11  ;;  %v2201_v11 = vor.u32 %v2200_v46, %v2197_v44  ;;  %3143 = vmatpush.bf16.msra.mxu2 %v5473_v56  ;;  %v5481_v44 = vld [vmem:[%s7128_s2 + $0x1c0] sm:$0xff]  ;;  %v2224_v56 = vrot.slane %v2222_v55, 5 }
 0x12d   : > { %v1739_v27 = vpop.f32.mrf.mxu3  ;;  %1466 = vmatmul.bf16.gmra.mxu2 %v1330_v53  ;;  %v2212_v37 = vrot.slane %v2211_v22, 4  ;;  %v5449_v46 = vld [vmem:[%s7128_s2 + $0x140] sm:$0xff]  ;;  %3825 = vmatpush.bf16.msra.mxu3 %v5481_v44  ;;  %v2232_v22 = vshrl.u32 %v4921_v31, 16 }
 0x12e   : > { %v1809_v57 = vadd.f32 %v1739_v27, %v1494_v18  ;;  %v1254_v18 = vsel %vm5994_vm5, %v1252_v61, %v1253_v60  ;;  %v2202_v29 = vrot.slane %v2201_v11, 4  ;;  %v2216_v27 = vrot.slane %v2214_v4, 5  ;;  %2828 = vmatpush.bf16.msra.mxu1 %v5449_v46  ;;  %v5489_v4 = vld [vmem:[%s7128_s2 + $0x200] sm:$0xff] }
 0x12f   : > { %v2219_v61 = vshrl.u32 %v4920_v7, 16  ;;  %4251 = vmatpush.bf16.msra.mxu0 %v5489_v4  ;;  %v5430_v7 = vld [vmem:[%s5679_s26 + $0xa8] sm:$0xff]  ;;  %v4923_v4 = vld [vmem:[%s5679_s26 + $0xc0] sm:$0xf] }
 0x130   : > { %v1427_v8 = vpop.f32.mrf.mxu2  ;;  %v6376_v12 = vadd.f32 %v2421_v36, %v1809_v57  ;;  %v1313_v36 = vunpack.c.l.b16 %v1254_v18  ;;  %v2228_v18 = vshll.u32 %v4921_v31, 16 }
 0x131   : > { %v1495_v24 = vadd.f32 %v1427_v8, %v1047_v35 }
 0x132   : > { %1781 = vmatmul.bf16.gmra.mxu3 %v5429_v26  ;;  %v1048_v53 = vpop.f32.mrf.mxu1  ;;  %v5390_v26 = vld [vmem:[%s5679_s26 + $0x9c] sm:$0xff]  ;;  %v1331_v23 = vpack.c.b16 %v1313_v36, %v1312_v21  ;;  %v2230_v46 = vrot.slane %v2228_v18, 5 }
 0x133   : > { %v2424_v49 = vpop.f32.mrf.mxu0  ;;  %v1049_v54 = vadd.f32 %v1048_v53, %v6117_v16  ;;  %v5563_v16 = vld [vmem:[%s5679_s26 + $0xac] sm:$0xf] }
 0x134   : > { %v1257_v11 = vrot.slane %v5563_v16, 5 }
 0x135   : > { %v1742_v20 = vpop.f32.mrf.mxu3 }
 0x136   : > { %2463 = vmatmul.bf16.gmra.mxu0 %v2327_v42  ;;  %v1810_v62 = vadd.f32 %v1742_v20, %v1495_v24  ;;  %v2207_v42 = vsel %vm5694_vm2, %v2202_v29, %v2206_v19  ;;  %v2217_v24 = vsel %vm5694_vm2, %v2212_v37, %v2216_v27  ;;  %v1259_v29 = vrot.slane %v1257_v11, 4  ;;  %v5564_v37 = vld [vmem:[%s5679_s26 + $0xb0] sm:$0x1] }
 0x137   : > { %v2309_v20 = vunpack.c.l.b16 %v2207_v42  ;;  %v2310_v21 = vunpack.c.l.b16 %v2217_v24  ;;  %v1260_v27 = vrot.slane %v5564_v37, 5  ;;  %v2243_v37 = vshrl.u32 %v4923_v4, 16 }
 0x138   : > { %v1429_v57 = vpop.f32.mrf.mxu2  ;;  %v6395_v60 = vadd.f32 %v2424_v49, %v1810_v62  ;;  %v2221_v49 = vrot.slane %v2219_v61, 4  ;;  %v4684_v62 = vrot.slane %v1120_v13, 9 }
 0x139   : > { %v1496_v35 = vadd.f32 %v1429_v57, %v1049_v54  ;;  %v2234_v54 = vrot.slane %v2232_v22, 4 }
 0x13a   : > { %v1051_v8 = vpop.f32.mrf.mxu1  ;;  %v2225_v31 = vor.u32 %v2224_v56, %v2221_v49  ;;  %v1258_v42 = vsel %vm5994_vm5, %v4684_v62, %v1257_v11  ;;  %v4924_v56 = vld [vmem:[%s5679_s26 + $0xc4] sm:$0xf]  ;;  %v5391_v62 = vld [vmem:[%s5679_s26 + $0xa8] sm:$0xff] }
 0x13b   : > { %v2426_v53 = vpop.f32.mrf.mxu0  ;;  %v1052_v44 = vadd.f32 %v1051_v8, %v6141_v45  ;;  %v1261_v45 = vsel %vm5994_vm5, %v1259_v29, %v1260_v27  ;;  %v2235_v24 = vor.u32 %v2234_v54, %v2230_v46  ;;  %v1314_v22 = vunpack.c.l.b16 %v1258_v42 }
 0x13c   : > { %1090 = vmatmul.bf16.gmra.mxu1 %v5390_v26  ;;  %v4922_v26 = vld [vmem:[%s5679_s26 + $0xbc] sm:$0x1]  ;;  %v2226_v13 = vrot.slane %v2225_v31, 4  ;;  %v2246_v27 = vshll.u32 %v4923_v4, 16  ;;  %v2256_v31 = vshrl.u32 %v4924_v56, 16 }
 0x13d   : > { %v1744_v19 = vpop.f32.mrf.mxu3  ;;  %1471 = vmatmul.bf16.gmra.mxu2 %v1331_v23  ;;  %v2238_v16 = vshll.u32 %v4922_v26, 16  ;;  %v2252_v26 = vshll.u32 %v4924_v56, 16 }
 0x13e   : > { %v1811_v36 = vadd.f32 %v1744_v19, %v1496_v35  ;;  %v2328_v35 = vpack.c.b16 %v2310_v21, %v2309_v20  ;;  %v5565_v19 = vld [vmem:[%s5679_s26 + $0x10] sm:$0xf]  ;;  %v2236_v21 = vrot.slane %v2235_v24, 4  ;;  %v2231_v29 = vsel %vm5694_vm2, %v2226_v13, %v2230_v46 }
 0x13f   : > { %v2582_v20 = vrot.slane %v5565_v19, 5  ;;  %v2245_v13 = vrot.slane %v2243_v37, 4  ;;  %v2258_v56 = vrot.slane %v2256_v31, 4 }
 0x140   : > { %v1432_v57 = vpop.f32.mrf.mxu2  ;;  %v6410_v55 = vadd.f32 %v2426_v53, %v1811_v36  ;;  %v1315_v53 = vunpack.c.l.b16 %v1261_v45  ;;  %v2240_v36 = vrot.slane %v2238_v16, 5  ;;  %v5567_v45 = vld [vmem:[%s5679_s26 + $0x14] sm:$0x1] }
 0x141   : > { %v1497_v61 = vadd.f32 %v1432_v57, %v1052_v44  ;;  %v2584_v42 = vrot.slane %v2582_v20, 4  ;;  %v2585_v24 = vrot.slane %v5567_v45, 5 }
 0x142   : > { %7134 = vst [vmem:[#allocation3_spill] sm:$0xff] %v6410_v55  ;;  %1786 = vmatmul.bf16.gmra.mxu3 %v5430_v7  ;;  %v1053_v23 = vpop.f32.mrf.mxu1  ;;  %v1332_v57 = vpack.c.b16 %v1315_v53, %v1314_v22  ;;  %v2241_v46 = vsel %vm5694_vm2, %v2236_v21, %v2240_v36  ;;  %v4974_v22 = vld [vmem:[%s5679_s26 + $0xc] sm:$0xe]  ;;  %v4925_v21 = vld [vmem:[%s5679_s26 + $0xc8] sm:$0x1] }
 0x143   : > { %v2429_v8 = vpop.f32.mrf.mxu0  ;;  %v1054_v11 = vadd.f32 %v1053_v23, %v6161_v9  ;;  %v5566_v9 = vld [vmem:[%s5679_s26 + $0xb8] sm:$0xf]  ;;  %v4990_v19 = vrot.slane %v4974_v22, 9 }
 0x144   : > { %v1264_v23 = vrot.slane %v5566_v9, 5  ;;  %v2312_v9 = vunpack.c.l.b16 %v2241_v46 }
 0x145   : > { %v1747_v18 = vpop.f32.mrf.mxu3 }
 0x146   : > { %2468 = vmatmul.bf16.gmra.mxu0 %v2328_v35  ;;  %v1812_v49 = vadd.f32 %v1747_v18, %v1497_v61  ;;  %v1121_v35 = vld [vmem:[%s5679_s26 + $0xb4] sm:$0xe]  ;;  %v2248_v18 = vrot.slane %v2246_v27, 5  ;;  %v1266_v45 = vrot.slane %v1264_v23, 4 }
 0x147   : > { %v4685_v4 = vrot.slane %v1121_v35, 9  ;;  %v2262_v35 = vshll.u32 %v4925_v21, 16  ;;  %v5392_v21 = vld [vmem:[%s5679_s26 + $0xb4] sm:$0xff] }
 0x148   : > { %v1434_v7 = vpop.f32.mrf.mxu2  ;;  %v6423_v44 = vadd.f32 %v2429_v8, %v1812_v49  ;;  %v2311_v8 = vunpack.c.l.b16 %v2231_v29  ;;  %v2254_v49 = vrot.slane %v2252_v26, 5  ;;  %v2586_v29 = vsel %vm5994_vm5, %v2584_v42, %v2585_v24  ;;  %v5198_v42 = vld [vmem:[%s5679_s26 + $0x18] sm:$0xf] }
 0x149   : > { %v1498_v54 = vadd.f32 %v1434_v7, %v1054_v11  ;;  %v5431_v7 = vld [vmem:[%s5679_s26 + $0xb4] sm:$0xff]  ;;  %v2249_v27 = vor.u32 %v2248_v18, %v2245_v13  ;;  %v1265_v31 = vsel %vm5994_vm5, %v4685_v4, %v1264_v23  ;;  %v6449_v18 = vld [vmem:[%s5679_s26 + $0x1c] sm:$0xf] }
 0x14a   : > { %7135 = vst [vmem:[#allocation4_spill] sm:$0xff] %v6423_v44  ;;  %v1056_v61 = vpop.f32.mrf.mxu1  ;;  %v5568_v44 = vld [vmem:[%s5679_s26 + $0xbc] sm:$0x1]  ;;  %v1316_v22 = vunpack.c.l.b16 %v1265_v31 }
 0x14b   : > { %v2431_v16 = vpop.f32.mrf.mxu0  ;;  %v1267_v55 = vrot.slane %v5568_v44, 5  ;;  %v1057_v36 = vadd.f32 %v1056_v61, %v6178_v33  ;;  %v2259_v44 = vor.u32 %v2258_v56, %v2254_v49  ;;  %v2329_v33 = vpack.c.b16 %v2312_v9, %v2311_v8 }
 0x14c   : > { %1095 = vmatmul.bf16.gmra.mxu1 %v5391_v62  ;;  %v2583_v62 = vsel %vm5994_vm5, %v4990_v19, %v2582_v20  ;;  %v2264_v19 = vrot.slane %v2262_v35, 5  ;;  %v3306_v8 = vshrl.u32 %v5198_v42, 16  ;;  %v3309_v9 = vshll.u32 %v5198_v42, 16  ;;  %v5200_v35 = vld [vmem:[%s5679_s26 + $0x20] sm:$0x1] }
 0x14d   : > { %v1749_v53 = vpop.f32.mrf.mxu3  ;;  %1476 = vmatmul.bf16.gmra.mxu2 %v1332_v57  ;;  %v2709_v57 = vunpack.c.l.b16 %v2583_v62  ;;  %v1268_v20 = vsel %vm5994_vm5, %v1266_v45, %v1267_v55  ;;  %v2260_v56 = vrot.slane %v2259_v44, 4  ;;  %v3315_v55 = vshll.u32 %v6449_v18, 16 }
 0x14e   : > { %v1813_v11 = vadd.f32 %v1749_v53, %v1498_v54  ;;  %v2710_v54 = vunpack.c.l.b16 %v2586_v29  ;;  %v2250_v53 = vrot.slane %v2249_v27, 4  ;;  %v1317_v4 = vunpack.c.l.b16 %v1268_v20 }
 0x14f   : > { %v2265_v27 = vsel %vm5694_vm2, %v2260_v56, %v2264_v19  ;;  %v3317_v31 = vrot.slane %v3315_v55, 5  ;;  %v5201_v56 = vld [vmem:[%s5679_s26 + $0x24] sm:$0xf] }
 0x150   : > { %v1437_v37 = vpop.f32.mrf.mxu2  ;;  %v6443_v46 = vpack.c.b16 %v2710_v54, %v2709_v57  ;;  %v6446_v24 = vadd.f32 %v2431_v16, %v1813_v11  ;;  %v3319_v16 = vshrl.u32 %v6449_v18, 16  ;;  %v1333_v29 = vpack.c.b16 %v1317_v4, %v1316_v22 }
 0x151   : > { %v1499_v26 = vadd.f32 %v1437_v37, %v1057_v36  ;;  %v2255_v37 = vsel %vm5694_vm2, %v2250_v53, %v2254_v49  ;;  %v3308_v54 = vrot.slane %v3306_v8, 4  ;;  %v2314_v20 = vunpack.c.l.b16 %v2265_v27 }
 0x152   : > { %1791 = vmatmul.bf16.gmra.mxu3 %v5431_v7  ;;  %v1058_v61 = vpop.f32.mrf.mxu1  ;;  %v3321_v44 = vrot.slane %v3319_v16, 4  ;;  %v3325_v53 = vshll.u32 %v5200_v35, 16  ;;  %v3333_v27 = vshll.u32 %v5201_v56, 16 }
 0x153   : > { %v2434_v13 = vpop.f32.mrf.mxu0  ;;  %v1059_v11 = vadd.f32 %v1058_v61, %v6193_v0  ;;  %v2313_v61 = vunpack.c.l.b16 %v2255_v37  ;;  %v3330_v37 = vshrl.u32 %v5201_v56, 16  ;;  %v5569_v56 = vld [vmem:[%s5679_s26 + $0x1c] sm:$0xf] }
 0x154   : > { %v3322_v22 = vor.u32 %v3321_v44, %v3317_v31 }
 0x155   : > { %v1752_v23 = vpop.f32.mrf.mxu3  ;;  %v2330_v19 = vpack.c.b16 %v2314_v20, %v2313_v61  ;;  %v4008_v20 = vrot.slane %v5200_v35, 5 }
 0x156   : > { %2473 = vmatmul.bf16.gmra.mxu0 %v2329_v33  ;;  %v1814_v7 = vadd.f32 %v1752_v23, %v1499_v26  ;;  %v3311_v26 = vrot.slane %v3309_v9, 5  ;;  %v3323_v16 = vrot.slane %v3322_v22, 4 }
 0x158   : > { %v1439_v45 = vpop.f32.mrf.mxu2  ;;  %v6455_v36 = vadd.f32 %v2434_v13, %v1814_v7  ;;  %v5432_v13 = vld [vmem:[%s5679_s26 + $0xc0] sm:$0xff]  ;;  %v3312_v49 = vor.u32 %v3311_v26, %v3308_v54  ;;  %v6466_v7 = vld [vmem:[%s5679_s26 + $0x28] sm:$0xf] }
 0x159   : > { %v1500_v62 = vadd.f32 %v1439_v45, %v1059_v11  ;;  %v3327_v11 = vrot.slane %v3325_v53, 5 }
 0x15a   : > { %v1061_v57 = vpop.f32.mrf.mxu1  ;;  %v3313_v55 = vrot.slane %v3312_v49, 4  ;;  %v3335_v49 = vrot.slane %v3333_v27, 5 }
 0x15b   : > { %v2436_v0 = vpop.f32.mrf.mxu0  ;;  %v1062_v23 = vadd.f32 %v1061_v57, %v6215_v32  ;;  %v3339_v32 = vshll.u32 %v6466_v7, 16  ;;  %v3343_v57 = vshrl.u32 %v6466_v7, 16 }
 0x15c   : > { %1100 = vmatmul.bf16.gmra.mxu1 %v5392_v21  ;;  %v3318_v44 = vsel %vm5694_vm2, %v3313_v55, %v3317_v31  ;;  %v5457_v31 = vld [vmem:[%s5679_s26 + $0x18] sm:$0xff] }
 0x15d   : > { %v1754_v33 = vpop.f32.mrf.mxu3  ;;  %1481 = vmatmul.bf16.gmra.mxu2 %v1333_v29  ;;  %v4005_v29 = vrot.slane %v6449_v18, 5  ;;  %v6479_v22 = vrot.slane %v3339_v32, 5  ;;  %v3345_v53 = vrot.slane %v3343_v57, 4 }
 0x15e   : > { %v1815_v42 = vadd.f32 %v1754_v33, %v1500_v62  ;;  %v5294_v62 = vld [vmem:[%s5679_s26 + $0x18] sm:$0xe] }
 0x15f   : > { %v5310_v33 = vrot.slane %v5294_v62, 9  ;;  %v4007_v61 = vrot.slane %v4005_v29, 4 }
 0x160   : > { %v1442_v4 = vpop.f32.mrf.mxu2  ;;  %v6468_v45 = vadd.f32 %v2436_v0, %v1815_v42  ;;  %v3328_v0 = vsel %vm5694_vm2, %v3323_v16, %v3327_v11  ;;  %v3332_v42 = vrot.slane %v3330_v37, 4  ;;  %v4975_v16 = vld [vmem:[%s5679_s26 + $0x18] sm:$0xe]  ;;  %v3346_v37 = vor.u32 %v3345_v53, %v6479_v22 }
 0x161   : > { %v1501_v8 = vadd.f32 %v1442_v4, %v1062_v23  ;;  %v4006_v11 = vsel %vm5994_vm5, %v5310_v33, %v4005_v29  ;;  %v4009_v62 = vsel %vm5994_vm5, %v4007_v61, %v4008_v20  ;;  %v4991_v57 = vrot.slane %v4975_v16, 9  ;;  %v5204_v16 = vld [vmem:[%s5679_s26 + $0x30] sm:$0xf] }
 0x162   : > { %1796 = vmatmul.bf16.gmra.mxu3 %v5432_v13  ;;  %v1063_v9 = vpop.f32.mrf.mxu1  ;;  %v4132_v29 = vunpack.c.l.b16 %v4006_v11  ;;  %v4133_v33 = vunpack.c.l.b16 %v4009_v62  ;;  %v6508_v11 = vld [vmem:[%s5679_s26 + $0x34] sm:$0xf] }
 0x163   : > { %v2439_v21 = vpop.f32.mrf.mxu0  ;;  %v1064_v18 = vadd.f32 %v1063_v9, %v6233_v3  ;;  %v3706_v3 = vunpack.c.l.b16 %v3318_v44  ;;  %v3707_v9 = vunpack.c.l.b16 %v3328_v0 }
 0x165   : > { %v1757_v54 = vpop.f32.mrf.mxu3 }
 0x166   : > { %2478 = vmatmul.bf16.gmra.mxu0 %v2330_v19  ;;  %v1816_v26 = vadd.f32 %v1757_v54, %v1501_v8  ;;  %v2589_v19 = vrot.slane %v5569_v56, 5  ;;  %v6486_v8 = vld [vmem:[%s5679_s26 + $0x2c] sm:$0x1]  ;;  %v5295_v56 = vld [vmem:[%s5679_s26 + $0x24] sm:$0xe] }
 0x167   : > { %v3349_v27 = vshll.u32 %v6486_v8, 16 }
 0x168   : > { %v1444_v13 = vpop.f32.mrf.mxu2  ;;  %v6481_v23 = vadd.f32 %v2439_v21, %v1816_v26  ;;  %v3336_v21 = vor.u32 %v3335_v49, %v3332_v42  ;;  %v2591_v54 = vrot.slane %v2589_v19, 4  ;;  %v5570_v26 = vld [vmem:[%s5679_s26 + $0x20] sm:$0x1]  ;;  %v3347_v42 = vrot.slane %v3346_v37, 4 }
 0x169   : > { %v1502_v4 = vadd.f32 %v1444_v13, %v1064_v18  ;;  %v2592_v44 = vrot.slane %v5570_v26, 5  ;;  %v3738_v18 = vpack.c.b16 %v3707_v9, %v3706_v3  ;;  %v3351_v13 = vrot.slane %v3349_v27, 5 }
 0x16a   : > { %v1066_v55 = vpop.f32.mrf.mxu1  ;;  %v3337_v20 = vrot.slane %v3336_v21, 4  ;;  %v2590_v53 = vsel %vm5994_vm5, %v4991_v57, %v2589_v19  ;;  %v4164_v3 = vpack.c.b16 %v4133_v33, %v4132_v29  ;;  %v5311_v37 = vrot.slane %v5295_v56, 9 }
 0x16b   : > { %v2441_v35 = vpop.f32.mrf.mxu0  ;;  %v1067_v61 = vadd.f32 %v1066_v55, %v6112_v17  ;;  %v2711_v62 = vunpack.c.l.b16 %v2590_v53  ;;  %v3354_v57 = vshrl.u32 %v5204_v16, 16  ;;  %v4015_v26 = vrot.slane %v6486_v8, 5  ;;  %v4976_v53 = vld [vmem:[%s5679_s26 + $0x24] sm:$0xe] }
 0x16c   : > { %2829 = vmatmul.bf16.vlgmr.msra.gmra.mxu1 %v6443_v46  ;;  %v3342_v19 = vsel %vm5694_vm2, %v3337_v20, %v6479_v22 }
 0x16d   : > { %v1759_v32 = vpop.f32.mrf.mxu3  ;;  %3144 = vmatmul.bf16.vlgmr.msra.gmra.mxu2 %v5457_v31  ;;  %v2593_v31 = vsel %vm5994_vm5, %v2591_v54, %v2592_v44  ;;  %v3363_v44 = vshll.u32 %v6508_v11, 16  ;;  %v3708_v33 = vunpack.c.l.b16 %v3342_v19  ;;  %v3356_v8 = vrot.slane %v3354_v57, 4 }
 0x16e   : > { %v1817_v0 = vadd.f32 %v1759_v32, %v1502_v4  ;;  %v4012_v4 = vrot.slane %v6466_v7, 5  ;;  %v2712_v21 = vunpack.c.l.b16 %v2593_v31  ;;  %v3352_v7 = vsel %vm5694_vm2, %v3347_v42, %v3351_v13  ;;  %v5458_v13 = vld [vmem:[%s5679_s26 + $0x24] sm:$0xff] }
 0x170   : > { %v1447_v46 = vpop.f32.mrf.mxu2  ;;  %v6505_v17 = vadd.f32 %v2441_v35, %v1817_v0  ;;  %v4014_v32 = vrot.slane %v4012_v4, 4  ;;  %v3357_v35 = vshll.u32 %v5204_v16, 16  ;;  %v3367_v0 = vshrl.u32 %v6508_v11, 16 }
 0x171   : > { %v1503_v49 = vadd.f32 %v1447_v46, %v1067_v61  ;;  %v2742_v29 = vpack.c.b16 %v2712_v21, %v2711_v62  ;;  %v5571_v61 = vld [vmem:[%s5679_s26 + $0x28] sm:$0xf]  ;;  %v4992_v21 = vrot.slane %v4976_v53, 9 }
 0x172   : > { %3826 = vmatmul.bf16.vlgmr.msra.gmra.mxu3 %v3738_v18  ;;  %v1068_v9 = vpop.f32.mrf.mxu1  ;;  %v2596_v46 = vrot.slane %v5571_v61, 5  ;;  %v3359_v31 = vrot.slane %v3357_v35, 5  ;;  %v3369_v16 = vrot.slane %v3367_v0, 4  ;;  %v5207_v61 = vld [vmem:[%s5679_s26 + $0x3c] sm:$0xf] }
 0x173   : > { %v2444_v55 = vpop.f32.mrf.mxu0  ;;  %v1069_v22 = vadd.f32 %v1068_v9, %v6136_v39  ;;  %v4016_v39 = vsel %vm5994_vm5, %v4014_v32, %v4015_v26  ;;  %v6528_v9 = vrot.slane %v3363_v44, 5 }
 0x174   : > { %v2598_v19 = vrot.slane %v2596_v46, 4 }
 0x175   : > { %v1762_v27 = vpop.f32.mrf.mxu3  ;;  %v3370_v26 = vor.u32 %v3369_v16, %v6528_v9  ;;  %v5296_v16 = vld [vmem:[%s5679_s26 + $0x30] sm:$0xe] }
 0x176   : > { %4252 = vmatmul.bf16.vlgmr.msra.gmra.mxu0 %v4164_v3  ;;  %v1818_v54 = vadd.f32 %v1762_v27, %v1503_v49  ;;  %v3709_v49 = vunpack.c.l.b16 %v3352_v7  ;;  %v4013_v3 = vsel %vm5994_vm5, %v5311_v37, %v4012_v4  ;;  %v5572_v27 = vld [vmem:[%s5679_s26 + $0x2c] sm:$0x1]  ;;  %v4135_v4 = vunpack.c.l.b16 %v4016_v39 }
 0x177   : > { %v2599_v7 = vrot.slane %v5572_v27, 5  ;;  %v4134_v35 = vunpack.c.l.b16 %v4013_v3  ;;  %v3360_v37 = vor.u32 %v3359_v31, %v3356_v8 }
 0x178   : > { %v1449_v18 = vpop.f32.mrf.mxu2  ;;  %v6520_v20 = vadd.f32 %v2444_v55, %v1818_v54  ;;  %v6531_v55 = vld [vmem:[%s5679_s26 + $0x38] sm:$0x1]  ;;  %v3739_v32 = vpack.c.b16 %v3709_v49, %v3708_v33  ;;  %v3371_v49 = vrot.slane %v3370_v26, 4 }
 0x179   : > { %v1504_v42 = vadd.f32 %v1449_v18, %v1069_v22  ;;  %v3373_v44 = vshll.u32 %v6531_v55, 16  ;;  %v2597_v18 = vsel %vm5994_vm5, %v4992_v21, %v2596_v46  ;;  %v3361_v8 = vrot.slane %v3360_v37, 4 }
 0x17a   : > { %v1071_v56 = vpop.f32.mrf.mxu1  ;;  %v2713_v46 = vunpack.c.l.b16 %v2597_v18  ;;  %v3378_v21 = vshrl.u32 %v5207_v61, 16  ;;  %v4022_v26 = vrot.slane %v6531_v55, 5 }
 0x17b   : > { %v2446_v62 = vpop.f32.mrf.mxu0  ;;  %v1072_v0 = vadd.f32 %v1071_v56, %v6156_v2  ;;  %v3375_v31 = vrot.slane %v3373_v44, 5  ;;  %v4019_v2 = vrot.slane %v6508_v11, 5 }
 0x17c   : > { %2834 = vmatmul.bf16.gmra.mxu1 %v2742_v29  ;;  %v2600_v29 = vsel %vm5994_vm5, %v2598_v19, %v2599_v7  ;;  %v3381_v19 = vshll.u32 %v5207_v61, 16  ;;  %v3380_v44 = vrot.slane %v3378_v21, 4 }
 0x17d   : > { %v1764_v57 = vpop.f32.mrf.mxu3  ;;  %3149 = vmatmul.bf16.gmra.mxu2 %v5458_v13  ;;  %v4165_v13 = vpack.c.b16 %v4135_v4, %v4134_v35  ;;  %v2714_v39 = vunpack.c.l.b16 %v2600_v29  ;;  %v3366_v35 = vsel %vm5694_vm2, %v3361_v8, %v6528_v9  ;;  %v5312_v4 = vrot.slane %v5296_v16, 9 }
 0x17e   : > { %v1819_v54 = vadd.f32 %v1764_v57, %v1504_v42  ;;  %v6543_v42 = vld [vmem:[%s5679_s26 + $0x40] sm:$0xf]  ;;  %v4021_v37 = vrot.slane %v4019_v2, 4 }
 0x17f   : > { %v3387_v27 = vshll.u32 %v6543_v42, 16  ;;  %v3391_v7 = vshrl.u32 %v6543_v42, 16 }
 0x180   : > { %v1452_v22 = vpop.f32.mrf.mxu2  ;;  %v6546_v56 = vadd.f32 %v2446_v62, %v1819_v54  ;;  %v3376_v62 = vsel %vm5694_vm2, %v3371_v49, %v3375_v31  ;;  %v6565_v49 = vld [vmem:[%s5679_s26 + $0x44] sm:$0x1]  ;;  %v4023_v16 = vsel %vm5994_vm5, %v4021_v37, %v4022_v26 }
 0x181   : > { %v1505_v53 = vadd.f32 %v1452_v22, %v1072_v0  ;;  %v3383_v22 = vrot.slane %v3381_v19, 5  ;;  %v6558_v9 = vrot.slane %v3387_v27, 5  ;;  %v3393_v18 = vrot.slane %v3391_v7, 4 }
 0x182   : > { %3831 = vmatmul.bf16.gmra.mxu3 %v3739_v32  ;;  %v1073_v33 = vpop.f32.mrf.mxu1  ;;  %v2743_v32 = vpack.c.b16 %v2714_v39, %v2713_v46  ;;  %v3711_v31 = vunpack.c.l.b16 %v3376_v62  ;;  %v4977_v46 = vld [vmem:[%s5679_s26 + $0x30] sm:$0xe]  ;;  %v4020_v39 = vsel %vm5994_vm5, %v5312_v4, %v4019_v2  ;;  %v3397_v19 = vshll.u32 %v6565_v49, 16 }
 0x183   : > { %v2449_v3 = vpop.f32.mrf.mxu0  ;;  %v1074_v54 = vadd.f32 %v1073_v33, %v6171_v25  ;;  %v3710_v33 = vunpack.c.l.b16 %v3366_v35  ;;  %v3394_v21 = vor.u32 %v3393_v18, %v6558_v9  ;;  %v4993_v7 = vrot.slane %v4977_v46, 9  ;;  %v5574_v35 = vld [vmem:[%s5679_s26 + $0x38] sm:$0x1]  ;;  %v5210_v46 = vld [vmem:[%s5679_s26 + $0x48] sm:$0xf] }
 0x184   : > { %v4136_v2 = vunpack.c.l.b16 %v4020_v39  ;;  %v4137_v4 = vunpack.c.l.b16 %v4023_v16  ;;  %v6586_v39 = vld [vmem:[%s5679_s26 + $0x4c] sm:$0xf] }
 0x185   : > { %v1767_v57 = vpop.f32.mrf.mxu3 }
 0x186   : > { %4257 = vmatmul.bf16.gmra.mxu0 %v4165_v13  ;;  %v1820_v11 = vadd.f32 %v1767_v57, %v1505_v53  ;;  %v5459_v13 = vld [vmem:[%s5679_s26 + $0x30] sm:$0xff] }
 0x187   : > { %v5573_v53 = vld [vmem:[%s5679_s26 + $0x34] sm:$0xf] }
 0x188   : > { %v1454_v0 = vpop.f32.mrf.mxu2  ;;  %v6560_v29 = vadd.f32 %v2449_v3, %v1820_v11  ;;  %v2603_v8 = vrot.slane %v5573_v53, 5  ;;  %v3384_v3 = vor.u32 %v3383_v22, %v3380_v44  ;;  %v2606_v11 = vrot.slane %v5574_v35, 5  ;;  %v5297_v53 = vld [vmem:[%s5679_s26 + $0x3c] sm:$0xe] }
 0x189   : > { %v1506_v61 = vadd.f32 %v1454_v0, %v1074_v54  ;;  %v3740_v54 = vpack.c.b16 %v3711_v31, %v3710_v33  ;;  %v3395_v44 = vrot.slane %v3394_v21, 4  ;;  %v3399_v0 = vrot.slane %v3397_v19, 5 }
 0x18a   : > { %v1076_v25 = vpop.f32.mrf.mxu1  ;;  %v2605_v57 = vrot.slane %v2603_v8, 4  ;;  %v3385_v26 = vrot.slane %v3384_v3, 4  ;;  %v2604_v18 = vsel %vm5994_vm5, %v4993_v7, %v2603_v8  ;;  %v4166_v33 = vpack.c.b16 %v4137_v4, %v4136_v2 }
 0x18b   : > { %v2451_v55 = vpop.f32.mrf.mxu0  ;;  %v1077_v37 = vadd.f32 %v1076_v25, %v6186_v58  ;;  %v2715_v16 = vunpack.c.l.b16 %v2604_v18  ;;  %v5313_v21 = vrot.slane %v5297_v53, 9  ;;  %v3402_v7 = vshrl.u32 %v5210_v46, 16  ;;  %v4978_v18 = vld [vmem:[%s5679_s26 + $0x3c] sm:$0xe] }
 0x18c   : > { %2839 = vmatmul.bf16.gmra.mxu1 %v2743_v32  ;;  %v3390_v8 = vsel %vm5694_vm2, %v3385_v26, %v6558_v9  ;;  %v4029_v35 = vrot.slane %v6565_v49, 5 }
 0x18d   : > { %v1769_v27 = vpop.f32.mrf.mxu3  ;;  %3154 = vmatmul.bf16.gmra.mxu2 %v5459_v13  ;;  %v2607_v13 = vsel %vm5994_vm5, %v2605_v57, %v2606_v11  ;;  %v3411_v11 = vshll.u32 %v6586_v39, 16  ;;  %v3712_v4 = vunpack.c.l.b16 %v3390_v8  ;;  %v3404_v49 = vrot.slane %v3402_v7, 4 }
 0x18e   : > { %v1821_v62 = vadd.f32 %v1769_v27, %v1506_v61  ;;  %v4026_v61 = vrot.slane %v6543_v42, 5  ;;  %v2716_v3 = vunpack.c.l.b16 %v2607_v13  ;;  %v3400_v42 = vsel %vm5694_vm2, %v3395_v44, %v3399_v0  ;;  %v5460_v0 = vld [vmem:[%s5679_s26 + $0x3c] sm:$0xff] }
 0x190   : > { %v1457_v32 = vpop.f32.mrf.mxu2  ;;  %v6583_v58 = vadd.f32 %v2451_v55, %v1821_v62  ;;  %v4028_v27 = vrot.slane %v4026_v61, 4  ;;  %v3405_v55 = vshll.u32 %v5210_v46, 16  ;;  %v3415_v62 = vshrl.u32 %v6586_v39, 16 }
 0x191   : > { %v1507_v22 = vadd.f32 %v1457_v32, %v1077_v37  ;;  %v2744_v2 = vpack.c.b16 %v2716_v3, %v2715_v16  ;;  %v5575_v37 = vld [vmem:[%s5679_s26 + $0x40] sm:$0xf]  ;;  %v4994_v3 = vrot.slane %v4978_v18, 9 }
 0x192   : > { %3836 = vmatmul.bf16.gmra.mxu3 %v3740_v54  ;;  %v1078_v31 = vpop.f32.mrf.mxu1  ;;  %v2610_v32 = vrot.slane %v5575_v37, 5  ;;  %v3407_v13 = vrot.slane %v3405_v55, 5  ;;  %v3417_v46 = vrot.slane %v3415_v62, 4  ;;  %v5213_v37 = vld [vmem:[%s5679_s26 + $0x54] sm:$0xf] }
 0x193   : > { %v2454_v25 = vpop.f32.mrf.mxu0  ;;  %v1079_v9 = vadd.f32 %v1078_v31, %v6209_v51  ;;  %v4030_v51 = vsel %vm5994_vm5, %v4028_v27, %v4029_v35  ;;  %v6606_v31 = vrot.slane %v3411_v11, 5 }
 0x194   : > { %v2612_v8 = vrot.slane %v2610_v32, 4 }
 0x195   : > { %v1772_v19 = vpop.f32.mrf.mxu3  ;;  %v3418_v35 = vor.u32 %v3417_v46, %v6606_v31  ;;  %v5298_v46 = vld [vmem:[%s5679_s26 + $0x48] sm:$0xe] }
 0x196   : > { %4262 = vmatmul.bf16.gmra.mxu0 %v4166_v33  ;;  %v1822_v57 = vadd.f32 %v1772_v19, %v1507_v22  ;;  %v3713_v22 = vunpack.c.l.b16 %v3400_v42  ;;  %v4027_v33 = vsel %vm5994_vm5, %v5313_v21, %v4026_v61  ;;  %v5576_v19 = vld [vmem:[%s5679_s26 + $0x44] sm:$0x1]  ;;  %v4139_v61 = vunpack.c.l.b16 %v4030_v51 }
 0x197   : > { %v2613_v42 = vrot.slane %v5576_v19, 5  ;;  %v4138_v55 = vunpack.c.l.b16 %v4027_v33  ;;  %v3408_v21 = vor.u32 %v3407_v13, %v3404_v49 }
 0x198   : > { %v1459_v54 = vpop.f32.mrf.mxu2  ;;  %v6598_v26 = vadd.f32 %v2454_v25, %v1822_v57  ;;  %v6609_v25 = vld [vmem:[%s5679_s26 + $0x50] sm:$0x1]  ;;  %v3741_v27 = vpack.c.b16 %v3713_v22, %v3712_v4  ;;  %v3419_v22 = vrot.slane %v3418_v35, 4 }
 0x199   : > { %v1508_v44 = vadd.f32 %v1459_v54, %v1079_v9  ;;  %v3421_v11 = vshll.u32 %v6609_v25, 16  ;;  %v2611_v54 = vsel %vm5994_vm5, %v4994_v3, %v2610_v32  ;;  %v3409_v49 = vrot.slane %v3408_v21, 4 }
 0x19a   : > { %v1081_v53 = vpop.f32.mrf.mxu1  ;;  %v2717_v32 = vunpack.c.l.b16 %v2611_v54  ;;  %v3426_v3 = vshrl.u32 %v5213_v37, 16  ;;  %v4036_v35 = vrot.slane %v6609_v25, 5 }
 0x19b   : > { %v2456_v16 = vpop.f32.mrf.mxu0  ;;  %v1082_v62 = vadd.f32 %v1081_v53, %v6230_v14  ;;  %v3423_v13 = vrot.slane %v3421_v11, 5  ;;  %v4033_v14 = vrot.slane %v6586_v39, 5 }
 0x19c   : > { %2844 = vmatmul.bf16.gmra.mxu1 %v2744_v2  ;;  %v2614_v2 = vsel %vm5994_vm5, %v2612_v8, %v2613_v42  ;;  %v3429_v8 = vshll.u32 %v5213_v37, 16  ;;  %v3428_v11 = vrot.slane %v3426_v3, 4 }
 0x19d   : > { %v1774_v7 = vpop.f32.mrf.mxu3  ;;  %3159 = vmatmul.bf16.gmra.mxu2 %v5460_v0  ;;  %v4167_v0 = vpack.c.b16 %v4139_v61, %v4138_v55  ;;  %v2718_v51 = vunpack.c.l.b16 %v2614_v2  ;;  %v3414_v55 = vsel %vm5694_vm2, %v3409_v49, %v6606_v31  ;;  %v5314_v61 = vrot.slane %v5298_v46, 9 }
 0x19e   : > { %v1823_v57 = vadd.f32 %v1774_v7, %v1508_v44  ;;  %v6621_v44 = vld [vmem:[%s5679_s26 + $0x58] sm:$0xf]  ;;  %v4035_v21 = vrot.slane %v4033_v14, 4 }
 0x19f   : > { %v3435_v19 = vshll.u32 %v6621_v44, 16  ;;  %v3439_v42 = vshrl.u32 %v6621_v44, 16 }
 0x1a0   : > { %v1462_v9 = vpop.f32.mrf.mxu2  ;;  %v6624_v53 = vadd.f32 %v2456_v16, %v1823_v57  ;;  %v3424_v16 = vsel %vm5694_vm2, %v3419_v22, %v3423_v13  ;;  %v6643_v22 = vld [vmem:[%s5679_s26 + $0x5c] sm:$0x1]  ;;  %v4037_v46 = vsel %vm5994_vm5, %v4035_v21, %v4036_v35 }
 0x1a1   : > { %v1509_v18 = vadd.f32 %v1462_v9, %v1082_v62  ;;  %v3431_v9 = vrot.slane %v3429_v8, 5  ;;  %v6636_v31 = vrot.slane %v3435_v19, 5  ;;  %v3441_v54 = vrot.slane %v3439_v42, 4 }
 0x1a2   : > { %3841 = vmatmul.bf16.gmra.mxu3 %v3741_v27  ;;  %v1083_v4 = vpop.f32.mrf.mxu1  ;;  %v2745_v27 = vpack.c.b16 %v2718_v51, %v2717_v32  ;;  %v3715_v13 = vunpack.c.l.b16 %v3424_v16  ;;  %v4979_v32 = vld [vmem:[%s5679_s26 + $0x48] sm:$0xe]  ;;  %v4034_v51 = vsel %vm5994_vm5, %v5314_v61, %v4033_v14  ;;  %v3445_v8 = vshll.u32 %v6643_v22, 16 }
 0x1a3   : > { %v2459_v33 = vpop.f32.mrf.mxu0  ;;  %v1084_v57 = vadd.f32 %v1083_v4, %v6245_v38  ;;  %v3714_v4 = vunpack.c.l.b16 %v3414_v55  ;;  %v3442_v3 = vor.u32 %v3441_v54, %v6636_v31  ;;  %v4995_v42 = vrot.slane %v4979_v32, 9  ;;  %v5578_v55 = vld [vmem:[%s5679_s26 + $0x50] sm:$0x1]  ;;  %v5216_v32 = vld [vmem:[%s5679_s26 + $0x60] sm:$0xf] }
 0x1a4   : > { %v4140_v14 = vunpack.c.l.b16 %v4034_v51  ;;  %v4141_v61 = vunpack.c.l.b16 %v4037_v46  ;;  %v6664_v51 = vld [vmem:[%s5679_s26 + $0x64] sm:$0xf] }
 0x1a5   : > { %v1777_v7 = vpop.f32.mrf.mxu3 }
 0x1a6   : > { %4267 = vmatmul.bf16.gmra.mxu0 %v4167_v0  ;;  %v1824_v39 = vadd.f32 %v1777_v7, %v1509_v18  ;;  %v5461_v0 = vld [vmem:[%s5679_s26 + $0x48] sm:$0xff] }
 0x1a7   : > { %v5577_v18 = vld [vmem:[%s5679_s26 + $0x4c] sm:$0xf] }
 0x1a8   : > { %v1464_v62 = vpop.f32.mrf.mxu2  ;;  %v6638_v2 = vadd.f32 %v2459_v33, %v1824_v39  ;;  %v2617_v49 = vrot.slane %v5577_v18, 5  ;;  %v3432_v33 = vor.u32 %v3431_v9, %v3428_v11  ;;  %v2620_v39 = vrot.slane %v5578_v55, 5  ;;  %v5299_v18 = vld [vmem:[%s5679_s26 + $0x54] sm:$0xe] }
 0x1a9   : > { %v1510_v37 = vadd.f32 %v1464_v62, %v1084_v57  ;;  %v3742_v57 = vpack.c.b16 %v3715_v13, %v3714_v4  ;;  %v3443_v11 = vrot.slane %v3442_v3, 4  ;;  %v3447_v62 = vrot.slane %v3445_v8, 5 }
 0x1aa   : > { %v1086_v38 = vpop.f32.mrf.mxu1  ;;  %v2619_v7 = vrot.slane %v2617_v49, 4  ;;  %v3433_v35 = vrot.slane %v3432_v33, 4  ;;  %v2618_v54 = vsel %vm5994_vm5, %v4995_v42, %v2617_v49  ;;  %v4168_v4 = vpack.c.b16 %v4141_v61, %v4140_v14 }
 0x1ab   : > { %v2461_v25 = vpop.f32.mrf.mxu0  ;;  %v1087_v21 = vadd.f32 %v1086_v38, %v6115_v50  ;;  %v2719_v46 = vunpack.c.l.b16 %v2618_v54  ;;  %v5315_v3 = vrot.slane %v5299_v18, 9  ;;  %v3450_v42 = vshrl.u32 %v5216_v32, 16  ;;  %v4980_v54 = vld [vmem:[%s5679_s26 + $0x54] sm:$0xe] }
 0x1ac   : > { %2849 = vmatmul.bf16.gmra.mxu1 %v2745_v27  ;;  %v3438_v49 = vsel %vm5694_vm2, %v3433_v35, %v6636_v31  ;;  %v4043_v55 = vrot.slane %v6643_v22, 5 }
 0x1ad   : > { %v1779_v19 = vpop.f32.mrf.mxu3  ;;  %3164 = vmatmul.bf16.gmra.mxu2 %v5461_v0  ;;  %v2621_v0 = vsel %vm5994_vm5, %v2619_v7, %v2620_v39  ;;  %v3459_v39 = vshll.u32 %v6664_v51, 16  ;;  %v3716_v61 = vunpack.c.l.b16 %v3438_v49  ;;  %v3452_v22 = vrot.slane %v3450_v42, 4 }
 0x1ae   : > { %v1825_v16 = vadd.f32 %v1779_v19, %v1510_v37  ;;  %v4040_v37 = vrot.slane %v6621_v44, 5  ;;  %v2720_v33 = vunpack.c.l.b16 %v2621_v0  ;;  %v3448_v44 = vsel %vm5694_vm2, %v3443_v11, %v3447_v62  ;;  %v5462_v62 = vld [vmem:[%s5679_s26 + $0x54] sm:$0xff] }
 0x1b0   : > { %v1467_v27 = vpop.f32.mrf.mxu2  ;;  %v6661_v50 = vadd.f32 %v2461_v25, %v1825_v16  ;;  %v4042_v19 = vrot.slane %v4040_v37, 4  ;;  %v3453_v25 = vshll.u32 %v5216_v32, 16  ;;  %v3463_v16 = vshrl.u32 %v6664_v51, 16 }
 0x1b1   : > { %v1511_v9 = vadd.f32 %v1467_v27, %v1087_v21  ;;  %v2746_v14 = vpack.c.b16 %v2720_v33, %v2719_v46  ;;  %v5579_v21 = vld [vmem:[%s5679_s26 + $0x58] sm:$0xf]  ;;  %v4996_v33 = vrot.slane %v4980_v54, 9 }
 0x1b2   : > { %3846 = vmatmul.bf16.gmra.mxu3 %v3742_v57  ;;  %v1088_v13 = vpop.f32.mrf.mxu1  ;;  %v2624_v27 = vrot.slane %v5579_v21, 5  ;;  %v3455_v0 = vrot.slane %v3453_v25, 5  ;;  %v3465_v32 = vrot.slane %v3463_v16, 4  ;;  %v5219_v21 = vld [vmem:[%s5679_s26 + $0x6c] sm:$0xf] }
 0x1b3   : > { %v2464_v38 = vpop.f32.mrf.mxu0  ;;  %v1089_v31 = vadd.f32 %v1088_v13, %v6138_v40  ;;  %v4044_v40 = vsel %vm5994_vm5, %v4042_v19, %v4043_v55  ;;  %v6684_v13 = vrot.slane %v3459_v39, 5 }
 0x1b4   : > { %v2626_v49 = vrot.slane %v2624_v27, 4 }
 0x1b5   : > { %v1782_v8 = vpop.f32.mrf.mxu3  ;;  %v3466_v55 = vor.u32 %v3465_v32, %v6684_v13  ;;  %v5300_v32 = vld [vmem:[%s5679_s26 + $0x60] sm:$0xe] }
 0x1b6   : > { %4272 = vmatmul.bf16.gmra.mxu0 %v4168_v4  ;;  %v1826_v7 = vadd.f32 %v1782_v8, %v1511_v9  ;;  %v3717_v9 = vunpack.c.l.b16 %v3448_v44  ;;  %v4041_v4 = vsel %vm5994_vm5, %v5315_v3, %v4040_v37  ;;  %v5580_v8 = vld [vmem:[%s5679_s26 + $0x5c] sm:$0x1]  ;;  %v4143_v37 = vunpack.c.l.b16 %v4044_v40 }
 0x1b7   : > { %v2627_v44 = vrot.slane %v5580_v8, 5  ;;  %v4142_v25 = vunpack.c.l.b16 %v4041_v4  ;;  %v3456_v3 = vor.u32 %v3455_v0, %v3452_v22 }
 0x1b8   : > { %v1469_v57 = vpop.f32.mrf.mxu2  ;;  %v6676_v35 = vadd.f32 %v2464_v38, %v1826_v7  ;;  %v6687_v38 = vld [vmem:[%s5679_s26 + $0x68] sm:$0x1]  ;;  %v3743_v19 = vpack.c.b16 %v3717_v9, %v3716_v61  ;;  %v3467_v9 = vrot.slane %v3466_v55, 4 }
 0x1b9   : > { %v1512_v11 = vadd.f32 %v1469_v57, %v1089_v31  ;;  %v3469_v39 = vshll.u32 %v6687_v38, 16  ;;  %v2625_v57 = vsel %vm5994_vm5, %v4996_v33, %v2624_v27  ;;  %v3457_v22 = vrot.slane %v3456_v3, 4 }
 0x1ba   : > { %v1091_v18 = vpop.f32.mrf.mxu1  ;;  %v2721_v27 = vunpack.c.l.b16 %v2625_v57  ;;  %v3474_v33 = vshrl.u32 %v5219_v21, 16  ;;  %v4050_v55 = vrot.slane %v6687_v38, 5 }
 0x1bb   : > { %v2466_v46 = vpop.f32.mrf.mxu0  ;;  %v1092_v16 = vadd.f32 %v1091_v18, %v6159_v6  ;;  %v3471_v0 = vrot.slane %v3469_v39, 5  ;;  %v4047_v6 = vrot.slane %v6664_v51, 5 }
 0x1bc   : > { %2854 = vmatmul.bf16.gmra.mxu1 %v2746_v14  ;;  %v2628_v14 = vsel %vm5994_vm5, %v2626_v49, %v2627_v44  ;;  %v3477_v49 = vshll.u32 %v5219_v21, 16  ;;  %v3476_v39 = vrot.slane %v3474_v33, 4 }
 0x1bd   : > { %v1784_v42 = vpop.f32.mrf.mxu3  ;;  %3169 = vmatmul.bf16.gmra.mxu2 %v5462_v62  ;;  %v4169_v62 = vpack.c.b16 %v4143_v37, %v4142_v25  ;;  %v2722_v40 = vunpack.c.l.b16 %v2628_v14  ;;  %v3462_v25 = vsel %vm5694_vm2, %v3457_v22, %v6684_v13  ;;  %v5316_v37 = vrot.slane %v5300_v32, 9 }
 0x1be   : > { %v1827_v7 = vadd.f32 %v1784_v42, %v1512_v11  ;;  %v6699_v11 = vld [vmem:[%s5679_s26 + $0x70] sm:$0xf]  ;;  %v4049_v3 = vrot.slane %v4047_v6, 4 }
 0x1bf   : > { %v3483_v8 = vshll.u32 %v6699_v11, 16  ;;  %v3487_v44 = vshrl.u32 %v6699_v11, 16 }
 0x1c0   : > { %v1472_v31 = vpop.f32.mrf.mxu2  ;;  %v6702_v18 = vadd.f32 %v2466_v46, %v1827_v7  ;;  %v3472_v46 = vsel %vm5694_vm2, %v3467_v9, %v3471_v0  ;;  %v6721_v9 = vld [vmem:[%s5679_s26 + $0x74] sm:$0x1]  ;;  %v4051_v32 = vsel %vm5994_vm5, %v4049_v3, %v4050_v55 }
 0x1c1   : > { %v1513_v54 = vadd.f32 %v1472_v31, %v1092_v16  ;;  %v3479_v31 = vrot.slane %v3477_v49, 5  ;;  %v6714_v13 = vrot.slane %v3483_v8, 5  ;;  %v3489_v57 = vrot.slane %v3487_v44, 4 }
 0x1c2   : > { %3851 = vmatmul.bf16.gmra.mxu3 %v3743_v19  ;;  %v1093_v61 = vpop.f32.mrf.mxu1  ;;  %v2747_v19 = vpack.c.b16 %v2722_v40, %v2721_v27  ;;  %v3719_v0 = vunpack.c.l.b16 %v3472_v46  ;;  %v4981_v27 = vld [vmem:[%s5679_s26 + $0x60] sm:$0xe]  ;;  %v4048_v40 = vsel %vm5994_vm5, %v5316_v37, %v4047_v6  ;;  %v3493_v49 = vshll.u32 %v6721_v9, 16 }
 0x1c3   : > { %v2469_v4 = vpop.f32.mrf.mxu0  ;;  %v1094_v7 = vadd.f32 %v1093_v61, %v6173_v28  ;;  %v3718_v61 = vunpack.c.l.b16 %v3462_v25  ;;  %v3490_v33 = vor.u32 %v3489_v57, %v6714_v13  ;;  %v4997_v44 = vrot.slane %v4981_v27, 9  ;;  %v5582_v25 = vld [vmem:[%s5679_s26 + $0x68] sm:$0x1]  ;;  %v5222_v27 = vld [vmem:[%s5679_s26 + $0x78] sm:$0xf] }
 0x1c4   : > { %v4144_v6 = vunpack.c.l.b16 %v4048_v40  ;;  %v4145_v37 = vunpack.c.l.b16 %v4051_v32  ;;  %v6742_v40 = vld [vmem:[%s5679_s26 + $0x7c] sm:$0xf] }
 0x1c5   : > { %v1787_v42 = vpop.f32.mrf.mxu3 }
 0x1c6   : > { %4277 = vmatmul.bf16.gmra.mxu0 %v4169_v62  ;;  %v1828_v51 = vadd.f32 %v1787_v42, %v1513_v54  ;;  %v5463_v62 = vld [vmem:[%s5679_s26 + $0x60] sm:$0xff] }
 0x1c7   : > { %v5581_v54 = vld [vmem:[%s5679_s26 + $0x64] sm:$0xf] }
 0x1c8   : > { %v1474_v16 = vpop.f32.mrf.mxu2  ;;  %v6716_v14 = vadd.f32 %v2469_v4, %v1828_v51  ;;  %v2631_v22 = vrot.slane %v5581_v54, 5  ;;  %v3480_v4 = vor.u32 %v3479_v31, %v3476_v39  ;;  %v2634_v51 = vrot.slane %v5582_v25, 5  ;;  %v5301_v54 = vld [vmem:[%s5679_s26 + $0x6c] sm:$0xe] }
 0x1c9   : > { %v1514_v21 = vadd.f32 %v1474_v16, %v1094_v7  ;;  %v3744_v7 = vpack.c.b16 %v3719_v0, %v3718_v61  ;;  %v3491_v39 = vrot.slane %v3490_v33, 4  ;;  %v3495_v16 = vrot.slane %v3493_v49, 5 }
 0x1ca   : > { %v1096_v28 = vpop.f32.mrf.mxu1  ;;  %v2633_v42 = vrot.slane %v2631_v22, 4  ;;  %v3481_v55 = vrot.slane %v3480_v4, 4  ;;  %v2632_v57 = vsel %vm5994_vm5, %v4997_v44, %v2631_v22  ;;  %v4170_v61 = vpack.c.b16 %v4145_v37, %v4144_v6 }
 0x1cb   : > { %v2471_v38 = vpop.f32.mrf.mxu0  ;;  %v1097_v3 = vadd.f32 %v1096_v28, %v6191_v63  ;;  %v2723_v32 = vunpack.c.l.b16 %v2632_v57  ;;  %v5317_v33 = vrot.slane %v5301_v54, 9  ;;  %v3498_v44 = vshrl.u32 %v5222_v27, 16  ;;  %v4982_v57 = vld [vmem:[%s5679_s26 + $0x6c] sm:$0xe] }
 0x1cc   : > { %2859 = vmatmul.bf16.gmra.mxu1 %v2747_v19  ;;  %v3486_v22 = vsel %vm5694_vm2, %v3481_v55, %v6714_v13  ;;  %v4057_v25 = vrot.slane %v6721_v9, 5 }
 0x1cd   : > { %v1789_v8 = vpop.f32.mrf.mxu3  ;;  %3174 = vmatmul.bf16.gmra.mxu2 %v5463_v62  ;;  %v2635_v62 = vsel %vm5994_vm5, %v2633_v42, %v2634_v51  ;;  %v3507_v51 = vshll.u32 %v6742_v40, 16  ;;  %v3720_v37 = vunpack.c.l.b16 %v3486_v22  ;;  %v3500_v9 = vrot.slane %v3498_v44, 4 }
 0x1ce   : > { %v1829_v46 = vadd.f32 %v1789_v8, %v1514_v21  ;;  %v4054_v21 = vrot.slane %v6699_v11, 5  ;;  %v2724_v4 = vunpack.c.l.b16 %v2635_v62  ;;  %v3496_v11 = vsel %vm5694_vm2, %v3491_v39, %v3495_v16  ;;  %v5464_v16 = vld [vmem:[%s5679_s26 + $0x6c] sm:$0xff] }
 0x1d0   : > { %v1477_v19 = vpop.f32.mrf.mxu2  ;;  %v6739_v63 = vadd.f32 %v2471_v38, %v1829_v46  ;;  %v4056_v8 = vrot.slane %v4054_v21, 4  ;;  %v3501_v38 = vshll.u32 %v5222_v27, 16  ;;  %v3511_v46 = vshrl.u32 %v6742_v40, 16 }
 0x1d1   : > { %v1515_v31 = vadd.f32 %v1477_v19, %v1097_v3  ;;  %v2748_v6 = vpack.c.b16 %v2724_v4, %v2723_v32  ;;  %v5583_v3 = vld [vmem:[%s5679_s26 + $0x70] sm:$0xf]  ;;  %v4998_v4 = vrot.slane %v4982_v57, 9 }
 0x1d2   : > { %3856 = vmatmul.bf16.gmra.mxu3 %v3744_v7  ;;  %v1098_v0 = vpop.f32.mrf.mxu1  ;;  %v2638_v19 = vrot.slane %v5583_v3, 5  ;;  %v3503_v62 = vrot.slane %v3501_v38, 5  ;;  %v3513_v27 = vrot.slane %v3511_v46, 4  ;;  %v5225_v3 = vld [vmem:[%s5679_s26 + $0x84] sm:$0xf] }
 0x1d3   : > { %v2474_v28 = vpop.f32.mrf.mxu0  ;;  %v1099_v13 = vadd.f32 %v1098_v0, %v6222_v41  ;;  %v4058_v41 = vsel %vm5994_vm5, %v4056_v8, %v4057_v25  ;;  %v6762_v0 = vrot.slane %v3507_v51, 5 }
 0x1d4   : > { %v2640_v22 = vrot.slane %v2638_v19, 4 }
 0x1d5   : > { %v1792_v49 = vpop.f32.mrf.mxu3  ;;  %v3514_v25 = vor.u32 %v3513_v27, %v6762_v0  ;;  %v5302_v27 = vld [vmem:[%s5679_s26 + $0x78] sm:$0xe] }
 0x1d6   : > { %4282 = vmatmul.bf16.gmra.mxu0 %v4170_v61  ;;  %v1830_v42 = vadd.f32 %v1792_v49, %v1515_v31  ;;  %v3721_v31 = vunpack.c.l.b16 %v3496_v11  ;;  %v4055_v61 = vsel %vm5994_vm5, %v5317_v33, %v4054_v21  ;;  %v5584_v49 = vld [vmem:[%s5679_s26 + $0x74] sm:$0x1]  ;;  %v4147_v21 = vunpack.c.l.b16 %v4058_v41 }
 0x1d7   : > { %v2641_v11 = vrot.slane %v5584_v49, 5  ;;  %v4146_v38 = vunpack.c.l.b16 %v4055_v61  ;;  %v3504_v33 = vor.u32 %v3503_v62, %v3500_v9 }
 0x1d8   : > { %v1479_v7 = vpop.f32.mrf.mxu2  ;;  %v6754_v55 = vadd.f32 %v2474_v28, %v1830_v42  ;;  %v6765_v28 = vld [vmem:[%s5679_s26 + $0x80] sm:$0x1]  ;;  %v3745_v8 = vpack.c.b16 %v3721_v31, %v3720_v37  ;;  %v3515_v31 = vrot.slane %v3514_v25, 4 }
 0x1d9   : > { %v1516_v39 = vadd.f32 %v1479_v7, %v1099_v13  ;;  %v3517_v51 = vshll.u32 %v6765_v28, 16  ;;  %v2639_v7 = vsel %vm5994_vm5, %v4998_v4, %v2638_v19  ;;  %v3505_v9 = vrot.slane %v3504_v33, 4 }
 0x1da   : > { %v1101_v54 = vpop.f32.mrf.mxu1  ;;  %v2725_v19 = vunpack.c.l.b16 %v2639_v7  ;;  %v3522_v4 = vshrl.u32 %v5225_v3, 16  ;;  %v4064_v25 = vrot.slane %v6765_v28, 5 }
 0x1db   : > { %v2476_v32 = vpop.f32.mrf.mxu0  ;;  %v1102_v46 = vadd.f32 %v1101_v54, %v6242_v15  ;;  %v3519_v62 = vrot.slane %v3517_v51, 5  ;;  %v4061_v15 = vrot.slane %v6742_v40, 5 }
 0x1dc   : > { %2864 = vmatmul.bf16.gmra.mxu1 %v2748_v6  ;;  %v2642_v6 = vsel %vm5994_vm5, %v2640_v22, %v2641_v11  ;;  %v3525_v22 = vshll.u32 %v5225_v3, 16  ;;  %v3524_v51 = vrot.slane %v3522_v4, 4 }
 0x1dd   : > { %v1794_v44 = vpop.f32.mrf.mxu3  ;;  %3179 = vmatmul.bf16.gmra.mxu2 %v5464_v16  ;;  %v4171_v16 = vpack.c.b16 %v4147_v21, %v4146_v38  ;;  %v2726_v41 = vunpack.c.l.b16 %v2642_v6  ;;  %v3510_v38 = vsel %vm5694_vm2, %v3505_v9, %v6762_v0  ;;  %v5318_v21 = vrot.slane %v5302_v27, 9 }
 0x1de   : > { %v1831_v42 = vadd.f32 %v1794_v44, %v1516_v39  ;;  %v6777_v39 = vld [vmem:[%s5679_s26 + $0x88] sm:$0xf]  ;;  %v4063_v33 = vrot.slane %v4061_v15, 4 }
 0x1df   : > { %v3531_v49 = vshll.u32 %v6777_v39, 16  ;;  %v3535_v11 = vshrl.u32 %v6777_v39, 16 }
 0x1e0   : > { %v1482_v13 = vpop.f32.mrf.mxu2  ;;  %v6780_v54 = vadd.f32 %v2476_v32, %v1831_v42  ;;  %v3520_v32 = vsel %vm5694_vm2, %v3515_v31, %v3519_v62  ;;  %v6799_v31 = vld [vmem:[%s5679_s26 + $0x8c] sm:$0x1]  ;;  %v4065_v27 = vsel %vm5994_vm5, %v4063_v33, %v4064_v25 }
 0x1e1   : > { %v1517_v57 = vadd.f32 %v1482_v13, %v1102_v46  ;;  %v3527_v13 = vrot.slane %v3525_v22, 5  ;;  %v6792_v0 = vrot.slane %v3531_v49, 5  ;;  %v3537_v7 = vrot.slane %v3535_v11, 4 }
 0x1e2   : > { %3861 = vmatmul.bf16.gmra.mxu3 %v3745_v8  ;;  %v1103_v37 = vpop.f32.mrf.mxu1  ;;  %v2749_v8 = vpack.c.b16 %v2726_v41, %v2725_v19  ;;  %v3723_v62 = vunpack.c.l.b16 %v3520_v32  ;;  %v4983_v19 = vld [vmem:[%s5679_s26 + $0x78] sm:$0xe]  ;;  %v4062_v41 = vsel %vm5994_vm5, %v5318_v21, %v4061_v15  ;;  %v3541_v22 = vshll.u32 %v6799_v31, 16 }
 0x1e3   : > { %v2479_v61 = vpop.f32.mrf.mxu0  ;;  %v1104_v42 = vadd.f32 %v1103_v37, %v6257_v1  ;;  %v3722_v37 = vunpack.c.l.b16 %v3510_v38  ;;  %v3538_v4 = vor.u32 %v3537_v7, %v6792_v0  ;;  %v4999_v11 = vrot.slane %v4983_v19, 9  ;;  %v5586_v38 = vld [vmem:[%s5679_s26 + $0x80] sm:$0x1] }
 0x1e4   : > { %v4149_v15 = vunpack.c.l.b16 %v4065_v27 }
 0x1e5   : > { %v1797_v44 = vpop.f32.mrf.mxu3  ;;  %v3539_v25 = vrot.slane %v3538_v4, 4 }
 0x1e6   : > { %4287 = vmatmul.bf16.gmra.mxu0 %v4171_v16  ;;  %v1832_v40 = vadd.f32 %v1797_v44, %v1517_v57  ;;  %v5465_v16 = vld [vmem:[%s5679_s26 + $0x78] sm:$0xff] }
 0x1e7   : > { %v5585_v57 = vld [vmem:[%s5679_s26 + $0x7c] sm:$0xf] }
 0x1e8   : > { %v1484_v46 = vpop.f32.mrf.mxu2  ;;  %v6794_v6 = vadd.f32 %v2479_v61, %v1832_v40  ;;  %v2645_v9 = vrot.slane %v5585_v57, 5  ;;  %v3528_v61 = vor.u32 %v3527_v13, %v3524_v51  ;;  %v2648_v40 = vrot.slane %v5586_v38, 5 }
 0x1e9   : > { %v1518_v3 = vadd.f32 %v1484_v46, %v1104_v42  ;;  %v3746_v42 = vpack.c.b16 %v3723_v62, %v3722_v37  ;;  %v4148_v46 = vunpack.c.l.b16 %v4062_v41  ;;  %v3543_v51 = vrot.slane %v3541_v22, 5  ;;  %v5228_v62 = vld [vmem:[%s5679_s26 + $0x90] sm:$0xf]  ;;  %v5303_v41 = vld [vmem:[%s5679_s26 + $0x84] sm:$0xe] }
 0x1ea   : > { %v2830_v1 = vpop.f32.mrf.mxu1  ;;  %v2647_v44 = vrot.slane %v2645_v9, 4  ;;  %v2646_v13 = vsel %vm5994_vm5, %v4999_v11, %v2645_v9  ;;  %v4068_v37 = vrot.slane %v6777_v39, 5  ;;  %v3546_v39 = vshrl.u32 %v5228_v62, 16 }
 0x1eb   : > { %v2481_v28 = vpop.f32.mrf.mxu0  ;;  %v2910_v21 = vadd.f32 %v2830_v1, %v6283_v59  ;;  %v6819_v59 = vld [vmem:[%s5679_s26 + $0x94] sm:$0xf]  ;;  %v2727_v27 = vunpack.c.l.b16 %v2646_v13  ;;  %v3544_v4 = vsel %vm5694_vm2, %v3539_v25, %v3543_v51  ;;  %v5319_v38 = vrot.slane %v5303_v41, 9  ;;  %v5466_v25 = vld [vmem:[%s5679_s26 + $0x84] sm:$0xff] }
 0x1ec   : > { %2869 = vmatmul.bf16.gmra.mxu1 %v2749_v8  ;;  %v3529_v8 = vrot.slane %v3528_v61, 4  ;;  %v2649_v7 = vsel %vm5994_vm5, %v2647_v44, %v2648_v40  ;;  %v3555_v11 = vshll.u32 %v6819_v59, 16  ;;  %v4070_v40 = vrot.slane %v4068_v37, 4  ;;  %v5587_v51 = vld [vmem:[%s5679_s26 + $0x88] sm:$0xf] }
 0x1ed   : > { %v1799_v49 = vpop.f32.mrf.mxu3  ;;  %3184 = vmatmul.bf16.gmra.mxu2 %v5465_v16  ;;  %v2728_v9 = vunpack.c.l.b16 %v2649_v7  ;;  %v2652_v13 = vrot.slane %v5587_v51, 5  ;;  %v3548_v7 = vrot.slane %v3546_v39, 4  ;;  %v4069_v41 = vsel %vm5994_vm5, %v5319_v38, %v4068_v37  ;;  %v5588_v39 = vld [vmem:[%s5679_s26 + $0x8c] sm:$0x1] }
 0x1ee   : > { %v1833_v32 = vadd.f32 %v1799_v49, %v1518_v3  ;;  %v4172_v3 = vpack.c.b16 %v4149_v15, %v4148_v46  ;;  %v3534_v61 = vsel %vm5694_vm2, %v3529_v8, %v6792_v0  ;;  %v3549_v49 = vshll.u32 %v5228_v62, 16 }
 0x1ef   : > { %v4071_v0 = vrot.slane %v6799_v31, 5  ;;  %v3725_v46 = vunpack.c.l.b16 %v3544_v4  ;;  %v2750_v8 = vpack.c.b16 %v2728_v9, %v2727_v27  ;;  %v4984_v31 = vld [vmem:[%s5679_s26 + $0x84] sm:$0xe] }
 0x1f0   : > { %v3145_v33 = vpop.f32.mrf.mxu2  ;;  %v6821_v1 = vadd.f32 %v2481_v28, %v1833_v32  ;;  %v3559_v28 = vshrl.u32 %v6819_v59, 16  ;;  %v6834_v32 = vstv %s6809_s27  ;;  %v5000_v4 = vrot.slane %v4984_v31, 9 }
 0x1f1   : > { %v3225_v16 = vadd.f32 %v3145_v33, %v2910_v21  ;;  %v4072_v27 = vsel %vm5994_vm5, %v4070_v40, %v4071_v0 }
 0x1f2   : > { %3866 = vmatmul.bf16.gmra.mxu3 %v3746_v42  ;;  %v2832_v57 = vpop.f32.mrf.mxu1  ;;  %v3724_v42 = vunpack.c.l.b16 %v3534_v61  ;;  %v3561_v62 = vrot.slane %v3559_v28, 4  ;;  %v6853_v61 = vld [vmem:[%s5679_s26 + $0x98] sm:$0x1]  ;;  %v4150_v28 = vunpack.c.l.b16 %v4069_v41  ;;  %v2653_v51 = vsel %vm5994_vm5, %v5000_v4, %v2652_v13 }
 0x1f3   : > { %v4253_v19 = vpop.f32.mrf.mxu0  ;;  %v2911_v21 = vadd.f32 %v2832_v57, %v6294_v5  ;;  %v3565_v40 = vshll.u32 %v6853_v61, 16  ;;  %v2729_v41 = vunpack.c.l.b16 %v2653_v51  ;;  %v5467_v51 = vld [vmem:[%s5679_s26 + $0x90] sm:$0xff] }
 0x1f5   : > { %v3827_v22 = vpop.f32.mrf.mxu3 }
 0x1f6   : > { %4292 = vmatmul.bf16.gmra.mxu0 %v4172_v3  ;;  %v3907_v44 = vadd.f32 %v3827_v22, %v3225_v16  ;;  %v3551_v3 = vrot.slane %v3549_v49, 5  ;;  %v6845_v16 = vrot.slane %v3555_v11, 5  ;;  %v2654_v22 = vrot.slane %v2652_v13, 4 }
 0x1f7   : > { %v2655_v49 = vrot.slane %v5588_v39, 5 }
 0x1f8   : > { %v4333_v15 = vadd.f32 %v4253_v19, %v3907_v44  ;;  %v3147_v33 = vpop.f32.mrf.mxu2  ;;  %v4151_v44 = vunpack.c.l.b16 %v4072_v27  ;;  %v3562_v37 = vor.u32 %v3561_v62, %v6845_v16  ;;  %v5231_v62 = vld [vmem:[%s5679_s26 + $0x9c] sm:$0xf]  ;;  %v5304_v27 = vld [vmem:[%s5679_s26 + $0x90] sm:$0xe] }
 0x1f9   : > { %v3226_v57 = vadd.f32 %v3147_v33, %v2911_v21  ;;  %v3747_v21 = vpack.c.b16 %v3725_v46, %v3724_v42  ;;  %v3570_v4 = vshrl.u32 %v5231_v62, 16 }
 0x1fa   : > { %v4367_v5 = vmul.f32 %v6834_v32, %v4333_v15  ;;  %v2835_v19 = vpop.f32.mrf.mxu1  ;;  %v3552_v15 = vor.u32 %v3551_v3, %v3548_v7  ;;  %v4173_v31 = vpack.c.b16 %v4151_v44, %v4150_v28  ;;  %v3563_v3 = vrot.slane %v3562_v37, 4 }
 0x1fb   : > { %v4255_v9 = vpop.f32.mrf.mxu0  ;;  %v2912_v33 = vadd.f32 %v2835_v19, %v6304_v48  ;;  %v3567_v48 = vrot.slane %v3565_v40, 5  ;;  %v5320_v28 = vrot.slane %v5304_v27, 9  ;;  %v4078_v37 = vrot.slane %v6853_v61, 5 }
 0x1fc   : > { %4399 = vst [vmem:[%s6842_s30] sm:$0xff] %v4367_v5  ;;  %2874 = vmatmul.bf16.gmra.mxu1 %v2750_v8  ;;  %v3553_v7 = vrot.slane %v3552_v15, 4 }
 0x1fd   : > { %v3829_v11 = vpop.f32.mrf.mxu3  ;;  %3189 = vmatmul.bf16.gmra.mxu2 %v5466_v25  ;;  %v2656_v25 = vsel %vm5994_vm5, %v2654_v22, %v2655_v49  ;;  %v3573_v22 = vshll.u32 %v5231_v62, 16 }
 0x1fe   : > { %v3908_v38 = vadd.f32 %v3829_v11, %v3226_v57  ;;  %v4075_v57 = vrot.slane %v6819_v59, 5  ;;  %v2730_v13 = vunpack.c.l.b16 %v2656_v25  ;;  %v3558_v49 = vsel %vm5694_vm2, %v3553_v7, %v6845_v16  ;;  %v5589_v25 = vld [vmem:[%s5679_s26 + $0x94] sm:$0xf] }
 0x1ff   : > { %v3568_v59 = vsel %vm5694_vm2, %v3563_v3, %v3567_v48  ;;  %v3726_v62 = vunpack.c.l.b16 %v3558_v49  ;;  %v5590_v49 = vld [vmem:[%s5679_s26 + $0x98] sm:$0x1] }
 0x200   : > { %v4334_v0 = vadd.f32 %v4255_v9, %v3908_v38  ;;  %v3150_v8 = vpop.f32.mrf.mxu2  ;;  %v6870_v9 = vld [vmem:[%s5679_s26 + $0xa0] sm:$0xf]  ;;  %v4077_v44 = vrot.slane %v4075_v57, 4  ;;  %v2751_v15 = vpack.c.b16 %v2730_v13, %v2729_v41  ;;  %v6891_v13 = vld [vmem:[%s5679_s26 + $0xa4] sm:$0x1] }
 0x201   : > { %v3227_v46 = vadd.f32 %v3150_v8, %v2912_v33  ;;  %v3579_v38 = vshll.u32 %v6870_v9, 16  ;;  %v3572_v33 = vrot.slane %v3570_v4, 4  ;;  %v3575_v8 = vrot.slane %v3573_v22, 5 }
 0x202   : > { %v4368_v42 = vmul.f32 %v6834_v32, %v4334_v0  ;;  %3871 = vmatmul.bf16.gmra.mxu3 %v3747_v21  ;;  %v2837_v5 = vpop.f32.mrf.mxu1  ;;  %v3583_v21 = vshrl.u32 %v6870_v9, 16 }
 0x203   : > { %v4258_v19 = vpop.f32.mrf.mxu0  ;;  %v2913_v0 = vadd.f32 %v2837_v5, %v6318_v47  ;;  %v4076_v47 = vsel %vm5994_vm5, %v5320_v28, %v4075_v57  ;;  %v4079_v5 = vsel %vm5994_vm5, %v4077_v44, %v4078_v37  ;;  %v3576_v27 = vor.u32 %v3575_v8, %v3572_v33  ;;  %v5305_v8 = vld [vmem:[%s5679_s26 + $0x9c] sm:$0xe] }
 0x204   : > { %4400 = vst [vmem:[%s6842_s30 + $0x8] sm:$0xff] %v4368_v42  ;;  %v3727_v42 = vunpack.c.l.b16 %v3568_v59  ;;  %v3585_v41 = vrot.slane %v3583_v21, 4  ;;  %v4152_v57 = vunpack.c.l.b16 %v4076_v47  ;;  %v4153_v28 = vunpack.c.l.b16 %v4079_v5 }
 0x205   : > { %v3832_v39 = vpop.f32.mrf.mxu3  ;;  %v3589_v37 = vshll.u32 %v6891_v13, 16 }
 0x206   : > { %4297 = vmatmul.bf16.gmra.mxu0 %v4173_v31  ;;  %v3909_v11 = vadd.f32 %v3832_v39, %v3227_v46  ;;  %v2659_v31 = vrot.slane %v5589_v25, 5  ;;  %v4985_v46 = vld [vmem:[%s5679_s26 + $0x90] sm:$0xe]  ;;  %v4174_v25 = vpack.c.b16 %v4153_v28, %v4152_v57 }
 0x207   : > { %v5001_v22 = vrot.slane %v4985_v46, 9 }
 0x208   : > { %v4335_v40 = vadd.f32 %v4258_v19, %v3909_v11  ;;  %v3152_v16 = vpop.f32.mrf.mxu2  ;;  %v3581_v19 = vrot.slane %v3579_v38, 5  ;;  %v2661_v39 = vrot.slane %v2659_v31, 4  ;;  %v2662_v11 = vrot.slane %v5590_v49, 5 }
 0x209   : > { %v3228_v3 = vadd.f32 %v3152_v16, %v2913_v0  ;;  %v3577_v0 = vrot.slane %v3576_v27, 4  ;;  %v2660_v16 = vsel %vm5994_vm5, %v5001_v22, %v2659_v31 }
 0x20a   : > { %v4369_v7 = vmul.f32 %v6834_v32, %v4335_v40  ;;  %v2840_v61 = vpop.f32.mrf.mxu1  ;;  %v3748_v40 = vpack.c.b16 %v3727_v42, %v3726_v62  ;;  %v3586_v44 = vor.u32 %v3585_v41, %v3581_v19  ;;  %v2663_v33 = vsel %vm5994_vm5, %v2661_v39, %v2662_v11  ;;  %v5234_v42 = vld [vmem:[%s5679_s26 + $0xa8] sm:$0xf] }
 0x20b   : > { %v4260_v48 = vpop.f32.mrf.mxu0  ;;  %v2914_v38 = vadd.f32 %v2840_v61, %v6338_v52  ;;  %v4082_v62 = vrot.slane %v6870_v9, 5  ;;  %v6905_v52 = vld [vmem:[%s5679_s26 + $0xac] sm:$0xf]  ;;  %v2731_v31 = vunpack.c.l.b16 %v2660_v16  ;;  %v2732_v47 = vunpack.c.l.b16 %v2663_v33  ;;  %v5468_v16 = vld [vmem:[%s5679_s26 + $0x9c] sm:$0xff] }
 0x20c   : > { %4401 = vst [vmem:[%s6842_s30 + $0x10] sm:$0xff] %v4369_v7  ;;  %2879 = vmatmul.bf16.gmra.mxu1 %v2751_v15  ;;  %v3587_v46 = vrot.slane %v3586_v44, 4  ;;  %v3582_v5 = vsel %vm5694_vm2, %v3577_v0, %v3581_v19  ;;  %v5321_v41 = vrot.slane %v5305_v8, 9  ;;  %v3597_v22 = vshll.u32 %v5234_v42, 16  ;;  %v5591_v19 = vld [vmem:[%s5679_s26 + $0xa0] sm:$0xf] }
 0x20d   : > { %v3834_v4 = vpop.f32.mrf.mxu3  ;;  %3194 = vmatmul.bf16.gmra.mxu2 %v5467_v51  ;;  %v3603_v9 = vshll.u32 %v6905_v52, 16  ;;  %v3607_v39 = vshrl.u32 %v6905_v52, 16  ;;  %v4084_v11 = vrot.slane %v4082_v62, 4  ;;  %v3728_v57 = vunpack.c.l.b16 %v3582_v5  ;;  %v4986_v0 = vld [vmem:[%s5679_s26 + $0x9c] sm:$0xe] }
 0x20e   : > { %v3910_v59 = vadd.f32 %v3834_v4, %v3228_v3  ;;  %v3594_v4 = vshrl.u32 %v5234_v42, 16  ;;  %v2666_v28 = vrot.slane %v5591_v19, 5  ;;  %v3599_v33 = vrot.slane %v3597_v22, 5 }
 0x20f   : > { %v6921_v8 = vrot.slane %v3603_v9, 5 }
 0x210   : > { %v4336_v15 = vadd.f32 %v4260_v48, %v3910_v59  ;;  %v3155_v21 = vpop.f32.mrf.mxu2  ;;  %v3591_v48 = vrot.slane %v3589_v37, 5  ;;  %v4085_v59 = vrot.slane %v6891_v13, 5  ;;  %v3596_v13 = vrot.slane %v3594_v4, 4 }
 0x211   : > { %v3229_v7 = vadd.f32 %v3155_v21, %v2914_v38  ;;  %v2752_v38 = vpack.c.b16 %v2732_v47, %v2731_v31  ;;  %v4083_v21 = vsel %vm5994_vm5, %v5321_v41, %v4082_v62  ;;  %v5592_v31 = vld [vmem:[%s5679_s26 + $0xa4] sm:$0x1] }
 0x212   : > { %v4370_v51 = vmul.f32 %v6834_v32, %v4336_v15  ;;  %3876 = vmatmul.bf16.gmra.mxu3 %v3748_v40  ;;  %v2842_v3 = vpop.f32.mrf.mxu1  ;;  %v3592_v40 = vsel %vm5694_vm2, %v3587_v46, %v3591_v48  ;;  %v5002_v46 = vrot.slane %v4986_v0, 9  ;;  %v2668_v48 = vrot.slane %v2666_v28, 4 }
 0x213   : > { %v4263_v61 = vpop.f32.mrf.mxu0  ;;  %v2915_v37 = vadd.f32 %v2842_v3, %v6358_v34  ;;  %v4086_v34 = vsel %vm5994_vm5, %v4084_v11, %v4085_v59  ;;  %v6927_v3 = vld [vmem:[%s5679_s26 + $0xb0] sm:$0x1]  ;;  %v2669_v47 = vrot.slane %v5592_v31, 5  ;;  %v4154_v5 = vunpack.c.l.b16 %v4083_v21 }
 0x214   : > { %4402 = vst [vmem:[%s6842_s30 + $0x18] sm:$0xff] %v4370_v51  ;;  %v3609_v51 = vrot.slane %v3607_v39, 4  ;;  %v3600_v4 = vor.u32 %v3599_v33, %v3596_v13  ;;  %v3613_v9 = vshll.u32 %v6927_v3, 16  ;;  %v2667_v11 = vsel %vm5994_vm5, %v5002_v46, %v2666_v28 }
 0x215   : > { %v3837_v27 = vpop.f32.mrf.mxu3  ;;  %v2670_v59 = vsel %vm5994_vm5, %v2668_v48, %v2669_v47  ;;  %v2733_v33 = vunpack.c.l.b16 %v2667_v11 }
 0x216   : > { %4302 = vmatmul.bf16.gmra.mxu0 %v4174_v25  ;;  %v3911_v49 = vadd.f32 %v3837_v27, %v3229_v7  ;;  %v4155_v27 = vunpack.c.l.b16 %v4086_v34  ;;  %v3610_v22 = vor.u32 %v3609_v51, %v6921_v8  ;;  %v3615_v0 = vrot.slane %v3613_v9, 5 }
 0x217   : > { %v2734_v51 = vunpack.c.l.b16 %v2670_v59  ;;  %v5469_v59 = vld [vmem:[%s5679_s26 + $0xa8] sm:$0xff] }
 0x218   : > { %v4337_v44 = vadd.f32 %v4263_v61, %v3911_v49  ;;  %v3157_v15 = vpop.f32.mrf.mxu2  ;;  %v3729_v61 = vunpack.c.l.b16 %v3592_v40  ;;  %v3611_v21 = vrot.slane %v3610_v22, 4 }
 0x219   : > { %v3230_v7 = vadd.f32 %v3157_v15, %v2915_v37  ;;  %v5237_v37 = vld [vmem:[%s5679_s26 + $0xb4] sm:$0xf]  ;;  %v4175_v15 = vpack.c.b16 %v4155_v27, %v4154_v5  ;;  %v2753_v47 = vpack.c.b16 %v2734_v51, %v2733_v33  ;;  %v4092_v27 = vrot.slane %v6927_v3, 5 }
 0x21a   : > { %v4371_v25 = vmul.f32 %v6834_v32, %v4337_v44  ;;  %v2845_v42 = vpop.f32.mrf.mxu1  ;;  %v3749_v49 = vpack.c.b16 %v3729_v61, %v3728_v57  ;;  %v3621_v61 = vshll.u32 %v5237_v37, 16 }
 0x21b   : > { %v4265_v62 = vpop.f32.mrf.mxu0  ;;  %v2916_v19 = vadd.f32 %v2845_v42, %v6368_v10  ;;  %v4089_v10 = vrot.slane %v6905_v52, 5  ;;  %v3618_v42 = vshrl.u32 %v5237_v37, 16  ;;  %v3616_v52 = vsel %vm5694_vm2, %v3611_v21, %v3615_v0  ;;  %v4987_v0 = vld [vmem:[%s5679_s26 + $0xa8] sm:$0xe] }
 0x21c   : > { %4403 = vst [vmem:[%s6842_s30 + $0x20] sm:$0xff] %v4371_v25  ;;  %2884 = vmatmul.bf16.gmra.mxu1 %v2752_v38  ;;  %v3601_v38 = vrot.slane %v3600_v4, 4  ;;  %v3623_v22 = vrot.slane %v3621_v61, 5  ;;  %v3731_v21 = vunpack.c.l.b16 %v3616_v52  ;;  %v5594_v61 = vld [vmem:[%s5679_s26 + $0xb0] sm:$0x1] }
 0x21d   : > { %v3839_v41 = vpop.f32.mrf.mxu3  ;;  %3199 = vmatmul.bf16.gmra.mxu2 %v5468_v16  ;;  %v6940_v16 = vld [vmem:[%s5679_s26 + $0xb8] sm:$0xf]  ;;  %v3620_v4 = vrot.slane %v3618_v42, 4 }
 0x21e   : > { %v3912_v39 = vadd.f32 %v3839_v41, %v3230_v7  ;;  %v5306_v7 = vld [vmem:[%s5679_s26 + $0xa8] sm:$0xe]  ;;  %v3627_v34 = vshll.u32 %v6940_v16, 16  ;;  %v3606_v48 = vsel %vm5694_vm2, %v3601_v38, %v6921_v8  ;;  %v4091_v41 = vrot.slane %v4089_v10, 4 }
 0x21f   : > { %v5322_v5 = vrot.slane %v5306_v7, 9  ;;  %v3730_v38 = vunpack.c.l.b16 %v3606_v48  ;;  %v5003_v7 = vrot.slane %v4987_v0, 9 }
 0x220   : > { %v4338_v40 = vadd.f32 %v4265_v62, %v3912_v39  ;;  %v3160_v44 = vpop.f32.mrf.mxu2  ;;  %v3631_v62 = vshrl.u32 %v6940_v16, 16  ;;  %v6955_v8 = vrot.slane %v3627_v34, 5  ;;  %v2676_v34 = vrot.slane %v5594_v61, 5  ;;  %v7136_v61 = vld [vmem:[#allocation3_spill] sm:$0xff] }
 0x221   : > { %v3231_v28 = vadd.f32 %v3160_v44, %v2916_v19  ;;  %v6960_v44 = vld [vmem:[%s5679_s26 + $0xbc] sm:$0x1] }
 0x222   : > { %v4372_v57 = vmul.f32 %v6834_v32, %v4338_v40  ;;  %3881 = vmatmul.bf16.gmra.mxu3 %v3749_v49  ;;  %v2847_v13 = vpop.f32.mrf.mxu1  ;;  %v3633_v11 = vrot.slane %v3631_v62, 4  ;;  %v5593_v40 = vld [vmem:[%s5679_s26 + $0xac] sm:$0xf]  ;;  %v3637_v51 = vshll.u32 %v6960_v44, 16 }
 0x223   : > { %v4268_v25 = vpop.f32.mrf.mxu0  ;;  %v2917_v39 = vadd.f32 %v2847_v13, %v6376_v12  ;;  %v2673_v19 = vrot.slane %v5593_v40, 5  ;;  %v4090_v12 = vsel %vm5994_vm5, %v5322_v5, %v4089_v10  ;;  %v3624_v13 = vor.u32 %v3623_v22, %v3620_v4  ;;  %v5240_v40 = vld [vmem:[%s5679_s26 + $0xc0] sm:$0xf] }
 0x224   : > { %4404 = vst [vmem:[%s6842_s30 + $0x28] sm:$0xff] %v4372_v57  ;;  %v3634_v33 = vor.u32 %v3633_v11, %v6955_v8  ;;  %v4156_v10 = vunpack.c.l.b16 %v4090_v12  ;;  %v4099_v12 = vrot.slane %v6960_v44, 5 }
 0x225   : > { %v3842_v46 = vpop.f32.mrf.mxu3  ;;  %v2675_v42 = vrot.slane %v2673_v19, 4  ;;  %v2674_v4 = vsel %vm5994_vm5, %v5003_v7, %v2673_v19 }
 0x226   : > { %4307 = vmatmul.bf16.gmra.mxu0 %v4175_v15  ;;  %v3913_v31 = vadd.f32 %v3842_v46, %v3231_v28  ;;  %v4093_v28 = vsel %vm5994_vm5, %v4091_v41, %v4092_v27  ;;  %v3750_v46 = vpack.c.b16 %v3731_v21, %v3730_v38  ;;  %v3635_v41 = vrot.slane %v3634_v33, 4 }
 0x227   : > { %v4157_v48 = vunpack.c.l.b16 %v4093_v28  ;;  %v3639_v27 = vrot.slane %v3637_v51, 5  ;;  %v2677_v22 = vsel %vm5994_vm5, %v2675_v42, %v2676_v34  ;;  %v2735_v19 = vunpack.c.l.b16 %v2674_v4 }
 0x228   : > { %v4339_v9 = vadd.f32 %v4268_v25, %v3913_v31  ;;  %v3162_v49 = vpop.f32.mrf.mxu2  ;;  %v3625_v31 = vrot.slane %v3624_v13, 4  ;;  %v2736_v38 = vunpack.c.l.b16 %v2677_v22  ;;  %v3642_v28 = vshrl.u32 %v5240_v40, 16  ;;  %v4988_v22 = vld [vmem:[%s5679_s26 + $0xb4] sm:$0xe] }
 0x229   : > { %v3232_v15 = vadd.f32 %v3162_v49, %v2917_v39  ;;  %v4096_v39 = vrot.slane %v6940_v16, 5  ;;  %v4176_v11 = vpack.c.b16 %v4157_v48, %v4156_v10  ;;  %v3640_v16 = vsel %vm5694_vm2, %v3635_v41, %v3639_v27  ;;  %v5470_v10 = vld [vmem:[%s5679_s26 + $0xb4] sm:$0xff] }
 0x22a   : > { %v4373_v37 = vmul.f32 %v6834_v32, %v4339_v9  ;;  %v2850_v3 = vpop.f32.mrf.mxu1  ;;  %v5307_v9 = vld [vmem:[%s5679_s26 + $0xb4] sm:$0xe]  ;;  %v3645_v13 = vshll.u32 %v5240_v40, 16  ;;  %v3733_v7 = vunpack.c.l.b16 %v3640_v16 }
 0x22b   : > { %v4270_v57 = vpop.f32.mrf.mxu0  ;;  %v5323_v21 = vrot.slane %v5307_v9, 9 }
 0x22c   : > { %4405 = vst [vmem:[%s6842_s30 + $0x30] sm:$0xff] %v4373_v37  ;;  %2889 = vmatmul.bf16.gmra.mxu1 %v2753_v47  ;;  %v2918_v47 = vadd.f32 %v2850_v3, %v6395_v60  ;;  %v6985_v3 = vld [vmem:[%s5679_s26 + $0xc4] sm:$0xf] }
 0x22d   : > { %v3844_v25 = vpop.f32.mrf.mxu3  ;;  %3204 = vmatmul.bf16.gmra.mxu2 %v5469_v59  ;;  %v3655_v51 = vshrl.u32 %v6985_v3, 16  ;;  %v4097_v44 = vsel %vm5994_vm5, %v5323_v21, %v4096_v39 }
 0x22e   : > { %v3914_v62 = vadd.f32 %v3844_v25, %v3232_v15  ;;  %v3630_v15 = vsel %vm5694_vm2, %v3625_v31, %v6955_v8  ;;  %v3651_v8 = vshll.u32 %v6985_v3, 16  ;;  %v5595_v31 = vld [vmem:[%s5679_s26 + $0xb8] sm:$0xf] }
 0x22f   : > { %v3732_v25 = vunpack.c.l.b16 %v3630_v15 }
 0x230   : > { %v4340_v52 = vadd.f32 %v4270_v57, %v3914_v62  ;;  %v3165_v5 = vpop.f32.mrf.mxu2  ;;  %v4098_v57 = vrot.slane %v4096_v39, 4  ;;  %v3653_v9 = vrot.slane %v3651_v8, 5  ;;  %v4158_v39 = vunpack.c.l.b16 %v4097_v44 }
 0x231   : > { %v3233_v59 = vadd.f32 %v3165_v5, %v2918_v47  ;;  %v3644_v47 = vrot.slane %v3642_v28, 4  ;;  %v3647_v5 = vrot.slane %v3645_v13, 5  ;;  %v7137_v13 = vld [vmem:[#allocation4_spill] sm:$0xff] }
 0x232   : > { %v4374_v49 = vmul.f32 %v6834_v32, %v4340_v52  ;;  %3886 = vmatmul.bf16.gmra.mxu3 %v3750_v46  ;;  %v2852_v60 = vpop.f32.mrf.mxu1  ;;  %v2754_v46 = vpack.c.b16 %v2736_v38, %v2735_v19  ;;  %v4100_v48 = vsel %vm5994_vm5, %v4098_v57, %v4099_v12  ;;  %v2680_v52 = vrot.slane %v5595_v31, 5  ;;  %v5596_v19 = vld [vmem:[%s5679_s26 + $0xbc] sm:$0x1] }
 0x233   : > { %v4273_v37 = vpop.f32.mrf.mxu0  ;;  %v2919_v34 = vadd.f32 %v2852_v60, %v7136_v61  ;;  %v4159_v60 = vunpack.c.l.b16 %v4100_v48  ;;  %v2683_v38 = vrot.slane %v5596_v19, 5  ;;  %v3648_v16 = vor.u32 %v3647_v5, %v3644_v47  ;;  %v5243_v47 = vld [vmem:[%s5679_s26 + $0xcc] sm:$0xf] }
 0x234   : > { %4406 = vst [vmem:[%s6842_s30 + $0x38] sm:$0xff] %v4374_v49  ;;  %v3657_v49 = vrot.slane %v3655_v51, 4  ;;  %v2682_v15 = vrot.slane %v2680_v52, 4  ;;  %v4103_v31 = vrot.slane %v6985_v3, 5  ;;  %v3669_v3 = vshll.u32 %v5243_v47, 16 }
 0x235   : > { %v3847_v0 = vpop.f32.mrf.mxu3  ;;  %v4177_v51 = vpack.c.b16 %v4159_v60, %v4158_v39  ;;  %v3666_v39 = vshrl.u32 %v5243_v47, 16  ;;  %v5598_v47 = vld [vmem:[%s5679_s26 + $0xc8] sm:$0x1] }
 0x236   : > { %4312 = vmatmul.bf16.gmra.mxu0 %v4176_v11  ;;  %v3915_v33 = vadd.f32 %v3847_v0, %v3233_v59  ;;  %v7003_v59 = vld [vmem:[%s5679_s26 + $0xc8] sm:$0x1]  ;;  %v3751_v0 = vpack.c.b16 %v3733_v7, %v3732_v25  ;;  %v3658_v57 = vor.u32 %v3657_v49, %v3653_v9  ;;  %v2684_v61 = vsel %vm5994_vm5, %v2682_v15, %v2683_v38 }
 0x237   : > { %v3661_v12 = vshll.u32 %v7003_v59, 16  ;;  %v4105_v60 = vrot.slane %v4103_v31, 4 }
 0x238   : > { %v4341_v42 = vadd.f32 %v4273_v37, %v3915_v33  ;;  %v3167_v62 = vpop.f32.mrf.mxu2  ;;  %v5004_v37 = vrot.slane %v4988_v22, 9 }
 0x239   : > { %v3234_v27 = vadd.f32 %v3167_v62, %v2919_v34  ;;  %v3649_v34 = vrot.slane %v3648_v16, 4  ;;  %v3663_v44 = vrot.slane %v3661_v12, 5  ;;  %v5597_v12 = vld [vmem:[%s5679_s26 + $0xc4] sm:$0xf] }
 0x23a   : > { %v4375_v41 = vmul.f32 %v6834_v32, %v4341_v42  ;;  %v2855_v4 = vpop.f32.mrf.mxu1  ;;  %v2681_v42 = vsel %vm5994_vm5, %v5004_v37, %v2680_v52  ;;  %v2738_v52 = vunpack.c.l.b16 %v2684_v61 }
 0x23b   : > { %v4275_v11 = vpop.f32.mrf.mxu0  ;;  %v2920_v33 = vadd.f32 %v2855_v4, %v7137_v13  ;;  %v2737_v5 = vunpack.c.l.b16 %v2681_v42  ;;  %v3654_v4 = vsel %vm5694_vm2, %v3649_v34, %v3653_v9  ;;  %v3671_v42 = vrot.slane %v3669_v3, 5 }
 0x23c   : > { %4407 = vst [vmem:[%s6842_s30 + $0x40] sm:$0xff] %v4375_v41  ;;  %2894 = vmatmul.bf16.gmra.mxu1 %v2754_v46  ;;  %v3659_v46 = vrot.slane %v3658_v57, 4  ;;  %v7019_v41 = vld [vmem:[%s5679_s26 + $0xd0] sm:$0xf] }
 0x23d   : > { %v3849_v40 = vpop.f32.mrf.mxu3  ;;  %3209 = vmatmul.bf16.gmra.mxu2 %v5470_v10  ;;  %v5308_v10 = vld [vmem:[%s5679_s26 + $0xc0] sm:$0xe]  ;;  %v3675_v37 = vshll.u32 %v7019_v41, 16  ;;  %v3679_v15 = vshrl.u32 %v7019_v41, 16  ;;  %v2755_v16 = vpack.c.b16 %v2738_v52, %v2737_v5  ;;  %v2690_v5 = vrot.slane %v5598_v47, 5 }
 0x23e   : > { %v3916_v21 = vadd.f32 %v3849_v40, %v3234_v27  ;;  %v5324_v22 = vrot.slane %v5308_v10, 9  ;;  %v4106_v40 = vrot.slane %v7003_v59, 5 }
 0x240   : > { %v4342_v28 = vadd.f32 %v4275_v11, %v3916_v21  ;;  %v3170_v8 = vpop.f32.mrf.mxu2  ;;  %v3664_v11 = vsel %vm5694_vm2, %v3659_v46, %v3663_v44  ;;  %v5471_v21 = vld [vmem:[%s5679_s26 + $0xc0] sm:$0xff]  ;;  %v4107_v34 = vsel %vm5994_vm5, %v4105_v60, %v4106_v40 }
 0x241   : > { %v3235_v7 = vadd.f32 %v3170_v8, %v2920_v33  ;;  %v3735_v57 = vunpack.c.l.b16 %v3664_v11  ;;  %v4989_v8 = vld [vmem:[%s5679_s26 + $0xc0] sm:$0xe] }
 0x242   : > { %v4376_v25 = vmul.f32 %v6834_v32, %v4342_v28  ;;  %3891 = vmatmul.bf16.gmra.mxu3 %v3751_v0  ;;  %v2857_v62 = vpop.f32.mrf.mxu1  ;;  %v3734_v0 = vunpack.c.l.b16 %v3654_v4  ;;  %v2687_v28 = vrot.slane %v5597_v12, 5  ;;  %v5005_v10 = vrot.slane %v4989_v8, 9 }
 0x243   : > { %v4278_v48 = vpop.f32.mrf.mxu0  ;;  %v2921_v9 = vadd.f32 %v2857_v62, %v6446_v24  ;;  %v4104_v24 = vsel %vm5994_vm5, %v5324_v22, %v4103_v31  ;;  %v5245_v62 = vld [vmem:[%s5679_s26 + $0xd4] sm:$0x1]  ;;  %v4161_v4 = vunpack.c.l.b16 %v4107_v34 }
 0x244   : > { %4408 = vst [vmem:[%s6842_s30 + $0x48] sm:$0xff] %v4376_v25  ;;  %v3677_v25 = vrot.slane %v3675_v37, 5  ;;  %v3752_v44 = vpack.c.b16 %v3735_v57, %v3734_v0  ;;  %v3685_v22 = vshll.u32 %v5245_v62, 16  ;;  %v2688_v60 = vsel %vm5994_vm5, %v5005_v10, %v2687_v28 }
 0x245   : > { %v3852_v27 = vpop.f32.mrf.mxu3  ;;  %v2739_v57 = vunpack.c.l.b16 %v2688_v60 }
 0x246   : > { %4317 = vmatmul.bf16.gmra.mxu0 %v4177_v51  ;;  %v3917_v49 = vadd.f32 %v3852_v27, %v3235_v7  ;;  %v3668_v51 = vrot.slane %v3666_v39, 4  ;;  %v3681_v7 = vrot.slane %v3679_v15, 4  ;;  %v4160_v27 = vunpack.c.l.b16 %v4104_v24 }
 0x247   : > { %v3687_v0 = vrot.slane %v3685_v22, 5 }
 0x248   : > { %v4343_v19 = vadd.f32 %v4278_v48, %v3917_v49  ;;  %v3172_v38 = vpop.f32.mrf.mxu2  ;;  %v2689_v48 = vrot.slane %v2687_v28, 4  ;;  %v3672_v49 = vor.u32 %v3671_v42, %v3668_v51  ;;  %v3682_v31 = vor.u32 %v3681_v7, %v3677_v25  ;;  %v5309_v28 = vld [vmem:[%s5679_s26 + $0xcc] sm:$0xe] }
 0x249   : > { %v3236_v33 = vadd.f32 %v3172_v38, %v2921_v9  ;;  %v4178_v15 = vpack.c.b16 %v4161_v4, %v4160_v27  ;;  %v5325_v51 = vrot.slane %v5309_v28, 9 }
 0x24a   : > { %v4377_v13 = vmul.f32 %v6834_v32, %v4343_v19  ;;  %v2860_v59 = vpop.f32.mrf.mxu1  ;;  %v2691_v40 = vsel %vm5994_vm5, %v2689_v48, %v2690_v5  ;;  %v3673_v38 = vrot.slane %v3672_v49, 4 }
 0x24b   : > { %v4280_v61 = vpop.f32.mrf.mxu0  ;;  %v2922_v39 = vadd.f32 %v2860_v59, %v6455_v36  ;;  %v4110_v36 = vrot.slane %v7019_v41, 5  ;;  %v2740_v12 = vunpack.c.l.b16 %v2691_v40 }
 0x24c   : > { %4409 = vst [vmem:[%s6842_s30 + $0x50] sm:$0xff] %v4377_v13  ;;  %2899 = vmatmul.bf16.gmra.mxu1 %v2755_v16  ;;  %v3678_v59 = vsel %vm5694_vm2, %v3673_v38, %v3677_v25 }
 0x24d   : > { %v3854_v46 = vpop.f32.mrf.mxu3  ;;  %3214 = vmatmul.bf16.gmra.mxu2 %v5471_v21  ;;  %v3683_v21 = vrot.slane %v3682_v31, 4  ;;  %v4112_v42 = vrot.slane %v4110_v36, 4  ;;  %v2756_v7 = vpack.c.b16 %v2740_v12, %v2739_v57  ;;  %v3736_v47 = vunpack.c.l.b16 %v3678_v59 }
 0x24e   : > { %v3918_v52 = vadd.f32 %v3854_v46, %v3236_v33  ;;  %v5472_v46 = vld [vmem:[%s5679_s26 + $0xcc] sm:$0xff]  ;;  %v4111_v30 = vsel %vm5994_vm5, %v5325_v51, %v4110_v36 }
 0x24f   : > { %v3688_v8 = vsel %vm5694_vm2, %v3683_v21, %v3687_v0  ;;  %v4162_v4 = vunpack.c.l.b16 %v4111_v30 }
 0x250   : > { %v4344_v11 = vadd.f32 %v4280_v61, %v3918_v52  ;;  %v3175_v3 = vpop.f32.mrf.mxu2  ;;  %v4113_v61 = vrot.slane %v5245_v62, 5  ;;  %v3737_v5 = vunpack.c.l.b16 %v3688_v8 }
 0x251   : > { %v3237_v19 = vadd.f32 %v3175_v3, %v2922_v39 }
 0x252   : > { %v4378_v37 = vmul.f32 %v6834_v32, %v4344_v11  ;;  %3896 = vmatmul.bf16.gmra.mxu3 %v3752_v44  ;;  %v2862_v9 = vpop.f32.mrf.mxu1  ;;  %v4114_v52 = vsel %vm5994_vm5, %v4112_v42, %v4113_v61  ;;  %v3753_v27 = vpack.c.b16 %v3737_v5, %v3736_v47 }
 0x253   : > { %v4283_v16 = vpop.f32.mrf.mxu0  ;;  %v2923_v41 = vadd.f32 %v2862_v9, %v6468_v45  ;;  %v4163_v49 = vunpack.c.l.b16 %v4114_v52 }
 0x254   : > { %4410 = vst [vmem:[%s6842_s30 + $0x58] sm:$0xff] %v4378_v37 }
 0x255   : > { %v3857_v13 = vpop.f32.mrf.mxu3  ;;  %v4179_v3 = vpack.c.b16 %v4163_v49, %v4162_v4 }
 0x256   : > { %4322 = vmatmul.bf16.gmra.mxu0 %v4178_v15  ;;  %v3919_v33 = vadd.f32 %v3857_v13, %v3237_v19 }
 0x258   : > { %v4345_v24 = vadd.f32 %v4283_v16, %v3919_v33  ;;  %v3177_v34 = vpop.f32.mrf.mxu2 }
 0x259   : > { %v3238_v10 = vadd.f32 %v3177_v34, %v2923_v41 }
 0x25a   : > { %v4379_v44 = vmul.f32 %v6834_v32, %v4345_v24  ;;  %v2865_v48 = vpop.f32.mrf.mxu1 }
 0x25b   : > { %v4285_v25 = vpop.f32.mrf.mxu0  ;;  %v2924_v22 = vadd.f32 %v2865_v48, %v6481_v23 }
 0x25c   : > { %4411 = vst [vmem:[%s6842_s30 + $0x60] sm:$0xff] %v4379_v44  ;;  %2904 = vmatmul.bf16.gmra.mxu1 %v2756_v7 }
 0x25d   : > { %v3859_v45 = vpop.f32.mrf.mxu3  ;;  %3219 = vmatmul.bf16.gmra.mxu2 %v5472_v46 }
 0x25e   : > { %v3920_v62 = vadd.f32 %v3859_v45, %v3238_v10 }
 0x260   : > { %v4346_v31 = vadd.f32 %v4285_v25, %v3920_v62  ;;  %v3180_v11 = vpop.f32.mrf.mxu2 }
 0x261   : > { %v3239_v43 = vadd.f32 %v3180_v11, %v2924_v22 }
 0x262   : > { %v4380_v39 = vmul.f32 %v6834_v32, %v4346_v31  ;;  %3901 = vmatmul.bf16.gmra.mxu3 %v3753_v27  ;;  %v2867_v60 = vpop.f32.mrf.mxu1 }
 0x263   : > { %v4288_v40 = vpop.f32.mrf.mxu0  ;;  %v2925_v9 = vadd.f32 %v2867_v60, %v6505_v17 }
 0x264   : > { %4412 = vst [vmem:[%s6842_s30 + $0x68] sm:$0xff] %v4380_v39 }
 0x265   : > { %v3862_v37 = vpop.f32.mrf.mxu3 }
 0x266   : > { %4327 = vmatmul.bf16.gmra.mxu0 %v4179_v3  ;;  %v3921_v15 = vadd.f32 %v3862_v37, %v3239_v43 }
 0x268   : > { %v4347_v19 = vadd.f32 %v4288_v40, %v3921_v15  ;;  %v3182_v38 = vpop.f32.mrf.mxu2 }
 0x269   : > { %v3240_v16 = vadd.f32 %v3182_v38, %v2925_v9 }
 0x26a   : > { %v4381_v23 = vmul.f32 %v6834_v32, %v4347_v19  ;;  %v2870_v21 = vpop.f32.mrf.mxu1 }
 0x26b   : > { %v4290_v0 = vpop.f32.mrf.mxu0  ;;  %v2926_v28 = vadd.f32 %v2870_v21, %v6520_v20 }
 0x26c   : > { %4413 = vst [vmem:[%s6842_s30 + $0x70] sm:$0xff] %v4381_v23 }
 0x26d   : > { %v3864_v36 = vpop.f32.mrf.mxu3 }
 0x26e   : > { %v3922_v57 = vadd.f32 %v3864_v36, %v3240_v16 }
 0x270   : > { %v4348_v12 = vadd.f32 %v4290_v0, %v3922_v57  ;;  %v3185_v13 = vpop.f32.mrf.mxu2 }
 0x271   : > { %v3241_v59 = vadd.f32 %v3185_v13, %v2926_v28 }
 0x272   : > { %v4382_v33 = vmul.f32 %v6834_v32, %v4348_v12  ;;  %v2872_v8 = vpop.f32.mrf.mxu1 }
 0x273   : > { %v4293_v17 = vpop.f32.mrf.mxu0  ;;  %v2927_v24 = vadd.f32 %v2872_v8, %v6546_v56 }
 0x274   : > { %4414 = vst [vmem:[%s6842_s30 + $0x78] sm:$0xff] %v4382_v33 }
 0x275   : > { %v3867_v51 = vpop.f32.mrf.mxu3 }
 0x276   : > { %v3923_v42 = vadd.f32 %v3867_v51, %v3241_v59 }
 0x278   : > { %v4349_v61 = vadd.f32 %v4293_v17, %v3923_v42  ;;  %v3187_v41 = vpop.f32.mrf.mxu2 }
 0x279   : > { %v3242_v7 = vadd.f32 %v3187_v41, %v2927_v24 }
 0x27a   : > { %v4383_v34 = vmul.f32 %v6834_v32, %v4349_v61  ;;  %v2875_v46 = vpop.f32.mrf.mxu1 }
 0x27b   : > { %v4295_v20 = vpop.f32.mrf.mxu0  ;;  %v2928_v47 = vadd.f32 %v2875_v46, %v6560_v29 }
 0x27c   : > { %4415 = vst [vmem:[%s6842_s30 + $0x80] sm:$0xff] %v4383_v34 }
 0x27d   : > { %v3869_v44 = vpop.f32.mrf.mxu3 }
 0x27e   : > { %v3924_v10 = vadd.f32 %v3869_v44, %v3242_v7 }
 0x280   : > { %v4350_v48 = vadd.f32 %v4295_v20, %v3924_v10  ;;  %v3190_v5 = vpop.f32.mrf.mxu2 }
 0x281   : > { %v3243_v30 = vadd.f32 %v3190_v5, %v2928_v47 }
 0x282   : > { %v4384_v25 = vmul.f32 %v6834_v32, %v4350_v48  ;;  %v2877_v52 = vpop.f32.mrf.mxu1 }
 0x283   : > { %v4298_v56 = vpop.f32.mrf.mxu0  ;;  %v2929_v4 = vadd.f32 %v2877_v52, %v6583_v58 }
 0x284   : > { %4416 = vst [vmem:[%s6842_s30 + $0x88] sm:$0xff] %v4384_v25 }
 0x285   : > { %v3872_v45 = vpop.f32.mrf.mxu3 }
 0x286   : > { %v3925_v62 = vadd.f32 %v3872_v45, %v3243_v30 }
 0x288   : > { %v4351_v27 = vadd.f32 %v4298_v56, %v3925_v62  ;;  %v3192_v49 = vpop.f32.mrf.mxu2 }
 0x289   : > { %v3244_v22 = vadd.f32 %v3192_v49, %v2929_v4 }
 0x28a   : > { %v4385_v31 = vmul.f32 %v6834_v32, %v4351_v27  ;;  %v2880_v11 = vpop.f32.mrf.mxu1 }
 0x28b   : > { %v4300_v29 = vpop.f32.mrf.mxu0  ;;  %v2930_v60 = vadd.f32 %v2880_v11, %v6598_v26 }
 0x28c   : > { %4417 = vst [vmem:[%s6842_s30 + $0x90] sm:$0xff] %v4385_v31 }
 0x28d   : > { %v3874_v39 = vpop.f32.mrf.mxu3 }
 0x28e   : > { %v3926_v3 = vadd.f32 %v3874_v39, %v3244_v22 }
 0x290   : > { %v4352_v43 = vadd.f32 %v4300_v29, %v3926_v3  ;;  %v3195_v40 = vpop.f32.mrf.mxu2 }
 0x291   : > { %v3245_v15 = vadd.f32 %v3195_v40, %v2930_v60 }
 0x292   : > { %v4386_v37 = vmul.f32 %v6834_v32, %v4352_v43  ;;  %v2882_v19 = vpop.f32.mrf.mxu1 }
 0x293   : > { %v4303_v58 = vpop.f32.mrf.mxu0  ;;  %v2931_v16 = vadd.f32 %v2882_v19, %v6624_v53 }
 0x294   : > { %4418 = vst [vmem:[%s6842_s30 + $0x98] sm:$0xff] %v4386_v37 }
 0x295   : > { %v3877_v9 = vpop.f32.mrf.mxu3 }
 0x296   : > { %v3927_v38 = vadd.f32 %v3877_v9, %v3245_v15 }
 0x298   : > { %v4353_v23 = vadd.f32 %v4303_v58, %v3927_v38  ;;  %v3197_v21 = vpop.f32.mrf.mxu2 }
 0x299   : > { %v3246_v36 = vadd.f32 %v3197_v21, %v2931_v16 }
 0x29a   : > { %v4387_v0 = vmul.f32 %v6834_v32, %v4353_v23  ;;  %v2885_v57 = vpop.f32.mrf.mxu1 }
 0x29b   : > { %v4305_v26 = vpop.f32.mrf.mxu0  ;;  %v2932_v33 = vadd.f32 %v2885_v57, %v6638_v2 }
 0x29c   : > { %4419 = vst [vmem:[%s6842_s30 + $0xa0] sm:$0xff] %v4387_v0 }
 0x29d   : > { %v3879_v12 = vpop.f32.mrf.mxu3 }
 0x29e   : > { %v3928_v28 = vadd.f32 %v3879_v12, %v3246_v36 }
 0x2a0   : > { %v4354_v13 = vadd.f32 %v4305_v26, %v3928_v28  ;;  %v3200_v59 = vpop.f32.mrf.mxu2 }
 0x2a1   : > { %v3247_v17 = vadd.f32 %v3200_v59, %v2932_v33 }
 0x2a2   : > { %v4388_v8 = vmul.f32 %v6834_v32, %v4354_v13  ;;  %v2887_v51 = vpop.f32.mrf.mxu1 }
 0x2a3   : > { %v4308_v53 = vpop.f32.mrf.mxu0  ;;  %v2933_v41 = vadd.f32 %v2887_v51, %v6661_v50 }
 0x2a4   : > { %4420 = vst [vmem:[%s6842_s30 + $0xa8] sm:$0xff] %v4388_v8 }
 0x2a5   : > { %v3882_v42 = vpop.f32.mrf.mxu3 }
 0x2a6   : > { %v3929_v61 = vadd.f32 %v3882_v42, %v3247_v17 }
 0x2a8   : > { %v4355_v24 = vadd.f32 %v4308_v53, %v3929_v61  ;;  %v3202_v34 = vpop.f32.mrf.mxu2 }
 0x2a9   : > { %v3248_v46 = vadd.f32 %v3202_v34, %v2933_v41 }
 0x2aa   : > { %v4389_v7 = vmul.f32 %v6834_v32, %v4355_v24  ;;  %v2890_v20 = vpop.f32.mrf.mxu1 }
 0x2ab   : > { %v4310_v2 = vpop.f32.mrf.mxu0  ;;  %v2934_v47 = vadd.f32 %v2890_v20, %v6676_v35 }
 0x2ac   : > { %4421 = vst [vmem:[%s6842_s30 + $0xb0] sm:$0xff] %v4389_v7 }
 0x2ad   : > { %v3884_v44 = vpop.f32.mrf.mxu3 }
 0x2ae   : > { %v3930_v10 = vadd.f32 %v3884_v44, %v3248_v46 }
 0x2b0   : > { %v4356_v48 = vadd.f32 %v4310_v2, %v3930_v10  ;;  %v3205_v5 = vpop.f32.mrf.mxu2 }
 0x2b1   : > { %v3249_v30 = vadd.f32 %v3205_v5, %v2934_v47 }
 0x2b2   : > { %v4390_v25 = vmul.f32 %v6834_v32, %v4356_v48  ;;  %v2892_v52 = vpop.f32.mrf.mxu1 }
 0x2b3   : > { %v4313_v50 = vpop.f32.mrf.mxu0  ;;  %v2935_v27 = vadd.f32 %v2892_v52, %v6702_v18 }
 0x2b4   : > { %4422 = vst [vmem:[%s6842_s30 + $0xb8] sm:$0xff] %v4390_v25 }
 0x2b5   : > { %v3887_v56 = vpop.f32.mrf.mxu3 }
 0x2b6   : > { %v3931_v45 = vadd.f32 %v3887_v56, %v3249_v30 }
 0x2b8   : > { %v4357_v62 = vadd.f32 %v4313_v50, %v3931_v45  ;;  %v3207_v4 = vpop.f32.mrf.mxu2 }
 0x2b9   : > { %v3250_v31 = vadd.f32 %v3207_v4, %v2935_v27 }
 0x2ba   : > { %v4391_v49 = vmul.f32 %v6834_v32, %v4357_v62  ;;  %v2895_v22 = vpop.f32.mrf.mxu1 }
 0x2bb   : > { %v4315_v35 = vpop.f32.mrf.mxu0  ;;  %v2936_v3 = vadd.f32 %v2895_v22, %v6716_v14 }
 0x2bc   : > { %4423 = vst [vmem:[%s6842_s30 + $0xc0] sm:$0xff] %v4391_v49 }
 0x2bd   : > { %v3889_v11 = vpop.f32.mrf.mxu3 }
 0x2be   : > { %v3932_v29 = vadd.f32 %v3889_v11, %v3250_v31 }
 0x2c0   : > { %v4358_v39 = vadd.f32 %v4315_v35, %v3932_v29  ;;  %v3210_v43 = vpop.f32.mrf.mxu2 }
 0x2c1   : > { %v3251_v40 = vadd.f32 %v3210_v43, %v2936_v3 }
 0x2c2   : > { %v4392_v60 = vmul.f32 %v6834_v32, %v4358_v39  ;;  %v2897_v37 = vpop.f32.mrf.mxu1 }
 0x2c3   : > { %v4318_v18 = vpop.f32.mrf.mxu0  ;;  %v2937_v9 = vadd.f32 %v2897_v37, %v6739_v63 }
 0x2c4   : > { %4424 = vst [vmem:[%s6842_s30 + $0xc8] sm:$0xff] %v4392_v60 }
 0x2c5   : > { %v3892_v15 = vpop.f32.mrf.mxu3 }
 0x2c6   : > { %v3933_v19 = vadd.f32 %v3892_v15, %v3251_v40 }
 0x2c8   : > { %v4359_v58 = vadd.f32 %v4318_v18, %v3933_v19  ;;  %v3212_v38 = vpop.f32.mrf.mxu2 }
 0x2c9   : > { %v3252_v16 = vadd.f32 %v3212_v38, %v2937_v9 }
 0x2ca   : > { %v4393_v23 = vmul.f32 %v6834_v32, %v4359_v58  ;;  %v2900_v21 = vpop.f32.mrf.mxu1 }
 0x2cb   : > { %v4320_v14 = vpop.f32.mrf.mxu0  ;;  %v2938_v26 = vadd.f32 %v2900_v21, %v6754_v55 }
 0x2cc   : > { %4425 = vst [vmem:[%s6842_s30 + $0xd0] sm:$0xff] %v4393_v23 }
 0x2cd   : > { %v3894_v0 = vpop.f32.mrf.mxu3 }
 0x2ce   : > { %v3934_v36 = vadd.f32 %v3894_v0, %v3252_v16 }
 0x2d0   : > { %v4360_v57 = vadd.f32 %v4320_v14, %v3934_v36  ;;  %v3215_v12 = vpop.f32.mrf.mxu2 }
 0x2d1   : > { %v3253_v13 = vadd.f32 %v3215_v12, %v2938_v26 }
 0x2d2   : > { %v4394_v28 = vmul.f32 %v6834_v32, %v4360_v57  ;;  %v2902_v33 = vpop.f32.mrf.mxu1 }
 0x2d3   : > { %v4323_v63 = vpop.f32.mrf.mxu0  ;;  %v2939_v51 = vadd.f32 %v2902_v33, %v6780_v54 }
 0x2d4   : > { %4426 = vst [vmem:[%s6842_s30 + $0xd8] sm:$0xff] %v4394_v28 }
 0x2d5   : > { %v3897_v59 = vpop.f32.mrf.mxu3 }
 0x2d6   : > { %v3935_v8 = vadd.f32 %v3897_v59, %v3253_v13 }
 0x2d8   : > { %v4361_v17 = vadd.f32 %v4323_v63, %v3935_v8  ;;  %v3217_v53 = vpop.f32.mrf.mxu2 }
 0x2d9   : > { %v3254_v61 = vadd.f32 %v3217_v53, %v2939_v51 }
 0x2da   : > { %v4395_v42 = vmul.f32 %v6834_v32, %v4361_v17  ;;  %v2905_v24 = vpop.f32.mrf.mxu1 }
 0x2db   : > { %v4325_v55 = vpop.f32.mrf.mxu0  ;;  %v2940_v46 = vadd.f32 %v2905_v24, %v6794_v6 }
 0x2dc   : > { %4427 = vst [vmem:[%s6842_s30 + $0xe0] sm:$0xff] %v4395_v42 }
 0x2dd   : > { %v3899_v41 = vpop.f32.mrf.mxu3 }
 0x2de   : > { %v3936_v34 = vadd.f32 %v3899_v41, %v3254_v61 }
 0x2e0   : > { %v4362_v7 = vadd.f32 %v4325_v55, %v3936_v34  ;;  %v3220_v20 = vpop.f32.mrf.mxu2 }
 0x2e1   : > { %v3255_v44 = vadd.f32 %v3220_v20, %v2940_v46 }
 0x2e2   : > { %v4396_v2 = vmul.f32 %v6834_v32, %v4362_v7  ;;  %v2907_v54 = vpop.f32.mrf.mxu1 }
 0x2e3   : > { %v4328_v10 = vpop.f32.mrf.mxu0  ;;  %v2941_v25 = vadd.f32 %v2907_v54, %v6821_v1 }
 0x2e4   : > { %4428 = vst [vmem:[%s6842_s30 + $0xe8] sm:$0xff] %v4396_v2 }
 0x2e5   : > { %v3902_v48 = vpop.f32.mrf.mxu3 }
 0x2e6   : > { %v3937_v47 = vadd.f32 %v3902_v48, %v3255_v44 }
 0x2e8   : > { %v4363_v5 = vadd.f32 %v4328_v10, %v3937_v47  ;;  %v3222_v30 = vpop.f32.mrf.mxu2 }
 0x2e9   : > { %v3256_v50 = vadd.f32 %v3222_v30, %v2941_v25 }
 0x2ea   : > { %v4397_v52 = vmul.f32 %v6834_v32, %v4363_v5 }
 0x2eb   : > { %v4330_v45 = vpop.f32.mrf.mxu0 }
 0x2ec   : > { %4429 = vst [vmem:[%s6842_s30 + $0xf0] sm:$0xff] %v4397_v52 }
 0x2ed   : > { %v3904_v56 = vpop.f32.mrf.mxu3 }
 0x2ee   : > { %v3938_v6 = vadd.f32 %v3904_v56, %v3256_v50 }
 0x2f0   : > { %v4364_v62 = vadd.f32 %v4330_v45, %v3938_v6 }
 0x2f2   : > { %v4398_v27 = vmul.f32 %v6834_v32, %v4364_v62 }
 0x2f4   : > { %4430 = vst [vmem:[%s6842_s30 + $0xf8] sm:$0xff] %v4398_v27 }
 0x2f5 PF: > { %s14_s16 = sadd.s32 1, %s5621_s16   ;;  %s7138_s14 = smov %s5617_s15 }
 0x2f6   : > { %p11_p5 = scmp.ge.s32.totalorder %s14_s16, 4   ;;  %s7139_s15 = smov %s7141_s0 }
 0x2f8   :  { %13 = sbr.rel (!%p11_p5) target bundleno = 2 (0x2), region = 72 }

</bundles_post_ra>
